<compile_context>
chip_gen: v5e
topology: v5e:2x2
jax: 0.10.0
libtpu: 0.0.40
codegen_flags: <defaults>
</compile_context>

<pallas_src>
import jax
import jax.numpy as jnp
from jax.experimental import pallas as pl
from jax.experimental.pallas import tpu as pltpu

# encoder: in -> 625 -> 256 -> 64 -> 1 (tanh)
# decoder:  1 ->  64 -> 256 -> 625 -> in (tanh)
def _layer_dims(input_size):
    return [
        (input_size, 625), (625, 256), (256, 64), (64, 1),     # encoder
        (1, 64), (64, 256), (256, 625), (625, input_size),     # decoder
    ]

_TANH_LAYERS = (3, 7)          # layers followed by tanh; all others ReLU
_BF16_RELU_LAYERS = (0, 1, 4, 5, 6)   # ReLU output feeds an MXU matmul -> fuse bf16 cast


def _round_up(n, m):
    return ((n + m - 1) // m) * m


def _pad_dim(d):
    # Lane-pad wide dims to a multiple of 128 (625 -> 640); narrow dims untouched.
    return _round_up(d, 128) if d >= 128 else d


def _choose_tb(batch, tb_cap=512):
    """Padding-aware batch tile: pb ≈ batch, ≥2 grid steps when batch ≥ 16."""
    pb8 = _round_up(batch, 8)
    n_tiles = pl.cdiv(pb8, tb_cap)
    if pb8 >= 16:
        n_tiles = max(n_tiles, 2)      # v7x: shard the parallel axis over both cores
    tb = _round_up(pl.cdiv(pb8, n_tiles), 8)
    pb = _round_up(pb8, tb)
    return tb, pb


def autoencoder_kernel(x_ref, *refs):
    """refs = (w0, b0, ..., w7, b7, out_ref). x/weights bf16, biases f32, out f32."""
    out_ref = refs[-1]
    params = refs[:-1]
    n_layers = len(params) // 2

    h = x_ref[...]                                             # (tb, in_p) bf16
    for i in range(n_layers):
        w_ref = params[2 * i]
        b = params[2 * i + 1][...]                             # (1, out_p) f32
        if i == 3:
            # (tb, 64) @ (64, 1): cross-lane reduce on VPU/XLU, not a 1-wide MXU pass.
            z = jnp.sum(h * w_ref[...].astype(jnp.float32),    # w fed as (1, 64)
                        axis=-1, keepdims=True) + b
        elif i == 4:
            # (tb, 1) @ (1, 64): broadcast outer product on the VPU.
            z = h * w_ref[...].astype(jnp.float32) + b
        else:
            # bf16 x bf16 MXU matmul, f32 accumulation.
            z = jnp.dot(h, w_ref[...], preferred_element_type=jnp.float32) + b

        if i == 7:
            h = jnp.tanh(z.astype(jnp.bfloat16))               # bf16 epilogue tanh
        elif i == 3:
            h = jnp.tanh(z)                                    # (tb, 1), keep f32
        elif i in _BF16_RELU_LAYERS:
            h = jnp.maximum(z, 0.0).astype(jnp.bfloat16)       # fused ReLU+cast
        else:                                                  # i == 2: feeds VPU path
            h = jnp.maximum(z, 0.0)
        # nn.Dropout(0.3): identity at inference time.
    out_ref[...] = h.astype(out_ref.dtype)


def make_params(input_size, key):
    """Deterministic synthetic parameters (shapes match the PyTorch module)."""
    params = []
    for (fan_in, fan_out) in _layer_dims(input_size):
        key, kw, kb = jax.random.split(key, 3)
        bound = 1.0 / jnp.sqrt(fan_in)
        # PyTorch stores weight as (out, in); we keep the transposed (in, out) layout.
        w = jax.random.uniform(kw, (fan_in, fan_out), jnp.float32, -bound, bound)
        b = jax.random.uniform(kb, (1, fan_out), jnp.float32, -bound, bound)
        params += [w, b]
    return params


def autoencoder_forward(x, params, *, tb=None, out_dtype=jnp.float32):
    batch, input_size = x.shape
    in_p = _pad_dim(input_size)

    if tb is None:
        tb, pb = _choose_tb(batch)
    else:
        tb = max(8, _round_up(tb, 8))
        pb = _round_up(batch, tb)

    # Host-side zero padding: batch -> pb, feature/625 dims -> multiples of 128.
    # x is fed in bf16 (±1 spins are exact in bf16) to halve the input DMA.
    xp = jnp.zeros((pb, in_p), jnp.bfloat16).at[:batch, :input_size].set(
        x.astype(jnp.bfloat16))

    dims = _layer_dims(input_size)
    padded_params = []
    for i, (fi, fo) in enumerate(dims):
        w, b = params[2 * i], params[2 * i + 1]
        pfi, pfo = _pad_dim(fi), _pad_dim(fo)
        wp = jnp.zeros((pfi, pfo), jnp.bfloat16).at[:fi, :fo].set(w.astype(jnp.bfloat16))
        if i == 3:
            wp = wp.reshape(1, pfi)     # feed the width-1 contraction as a (1, 64) row
        bp = jnp.zeros((1, pfo), jnp.float32).at[:, :fo].set(b.astype(jnp.float32))
        padded_params += [wp, bp]

    grid = (pb // tb,)
    x_spec = pl.BlockSpec((tb, in_p), lambda i: (i, 0))
    out_spec = pl.BlockSpec((tb, in_p), lambda i: (i, 0))
    # Weights/biases: full-array blocks, constant block index -> VMEM resident.
    param_specs = [pl.BlockSpec(p.shape, lambda i: (0, 0)) for p in padded_params]

    flops = 2 * pb * sum(_pad_dim(fi) * _pad_dim(fo) for fi, fo in dims)
    bytes_accessed = xp.nbytes + pb * in_p * jnp.dtype(out_dtype).itemsize \
        + sum(p.nbytes for p in padded_params)
    cost = pl.CostEstimate(
        flops=flops,
        transcendentals=pb * (1 + in_p),        # the two tanh layers (advisory)
        bytes_accessed=bytes_accessed,
    )

    out_p = pl.pallas_call(
        autoencoder_kernel,
        out_shape=jax.ShapeDtypeStruct((pb, in_p), out_dtype),
        grid=grid,
        in_specs=[x_spec] + param_specs,
        out_specs=out_spec,
        compiler_params=pltpu.CompilerParams(
            dimension_semantics=("parallel",),
            vmem_limit_bytes=32 << 20,
        ),
        cost_estimate=cost,
    )(xp, *padded_params)

    return out_p[:batch, :input_size].astype(jnp.float32)


def reference_forward(x, params):
    """Pure-JAX reference mirroring the kernel's bf16 numerics exactly."""
    h = x.astype(jnp.bfloat16)
    n_layers = len(params) // 2
    for i in range(n_layers):
        w, b = params[2 * i], params[2 * i + 1]
        wb = w.astype(jnp.bfloat16)
        if i == 3:
            z = jnp.sum(h * wb.astype(jnp.float32).reshape(1, -1),
                        axis=-1, keepdims=True) + b
        elif i == 4:
            z = h * wb.astype(jnp.float32) + b
        else:
            z = jnp.dot(h, wb, preferred_element_type=jnp.float32) + b
        if i == 7:
            h = jnp.tanh(z.astype(jnp.bfloat16))
        elif i == 3:
            h = jnp.tanh(z)
        elif i in _BF16_RELU_LAYERS:
            h = jnp.maximum(z, 0.0).astype(jnp.bfloat16)
        else:
            h = jnp.maximum(z, 0.0)
    return h.astype(jnp.float32)


if __name__ == "__main__":
    key = jax.random.PRNGKey(0)
    key, kx, kp = jax.random.split(key, 3)

    batch = 8
    input_size = 625   # 25x25 Ising lattice, flattened

    # Ising-like inputs: spins in {-1, +1}
    x = jnp.where(
        jax.random.bernoulli(kx, 0.5, (batch, input_size)), 1.0, -1.0
    ).astype(jnp.float32)

    params = make_params(input_size, kp)

    out = autoencoder_forward(x, params)
    out = jax.block_until_ready(out)

    ref = reference_forward(x, params)
    assert out.shape == (batch, input_size), out.shape
    max_err = float(jnp.max(jnp.abs(out - ref)))
    assert jnp.allclose(out, ref, atol=1e-2, rtol=1e-2), max_err

    print("KERNEL_OK")
</pallas_src>

<mosaic_0001>
module attributes {stable_mosaic.version = 11 : i64} {
  func.func @autoencoder_kernel(%arg0: i32, %arg1: memref<8x640xbf16, #tpu.memory_space<vmem>>, %arg2: memref<640x640xbf16, #tpu.memory_space<vmem>>, %arg3: memref<1x640xf32, #tpu.memory_space<vmem>>, %arg4: memref<640x256xbf16, #tpu.memory_space<vmem>>, %arg5: memref<1x256xf32, #tpu.memory_space<vmem>>, %arg6: memref<256x64xbf16, #tpu.memory_space<vmem>>, %arg7: memref<1x64xf32, #tpu.memory_space<vmem>>, %arg8: memref<1x64xbf16, #tpu.memory_space<vmem>>, %arg9: memref<1x1xf32, #tpu.memory_space<vmem>>, %arg10: memref<1x64xbf16, #tpu.memory_space<vmem>>, %arg11: memref<1x64xf32, #tpu.memory_space<vmem>>, %arg12: memref<64x256xbf16, #tpu.memory_space<vmem>>, %arg13: memref<1x256xf32, #tpu.memory_space<vmem>>, %arg14: memref<256x640xbf16, #tpu.memory_space<vmem>>, %arg15: memref<1x640xf32, #tpu.memory_space<vmem>>, %arg16: memref<640x640xbf16, #tpu.memory_space<vmem>>, %arg17: memref<1x640xf32, #tpu.memory_space<vmem>>, %arg18: memref<8x640xf32, #tpu.memory_space<vmem>>) attributes {dimension_semantics = [#tpu.dimension_semantics<parallel>], iteration_bounds = array<i64: 1>, scalar_prefetch = 0 : i64, scratch_operands = 0 : i64, tpu.core_type = #tpu.core_type<tc>, window_params = [{transform_indices = @transform_0, window_bounds = array<i64: 8, 640>}, {pipeline_mode = #tpu.pipeline_mode<synchronous>, transform_indices = @transform_1, window_bounds = array<i64: 640, 640>}, {pipeline_mode = #tpu.pipeline_mode<synchronous>, transform_indices = @transform_2, window_bounds = array<i64: 1, 640>}, {pipeline_mode = #tpu.pipeline_mode<synchronous>, transform_indices = @transform_3, window_bounds = array<i64: 640, 256>}, {pipeline_mode = #tpu.pipeline_mode<synchronous>, transform_indices = @transform_4, window_bounds = array<i64: 1, 256>}, {pipeline_mode = #tpu.pipeline_mode<synchronous>, transform_indices = @transform_5, window_bounds = array<i64: 256, 64>}, {pipeline_mode = #tpu.pipeline_mode<synchronous>, transform_indices = @transform_6, window_bounds = array<i64: 1, 64>}, {pipeline_mode = #tpu.pipeline_mode<synchronous>, transform_indices = @transform_7, window_bounds = array<i64: 1, 64>}, {pipeline_mode = #tpu.pipeline_mode<synchronous>, transform_indices = @transform_8, window_bounds = array<i64: 1, 1>}, {pipeline_mode = #tpu.pipeline_mode<synchronous>, transform_indices = @transform_9, window_bounds = array<i64: 1, 64>}, {pipeline_mode = #tpu.pipeline_mode<synchronous>, transform_indices = @transform_10, window_bounds = array<i64: 1, 64>}, {pipeline_mode = #tpu.pipeline_mode<synchronous>, transform_indices = @transform_11, window_bounds = array<i64: 64, 256>}, {pipeline_mode = #tpu.pipeline_mode<synchronous>, transform_indices = @transform_12, window_bounds = array<i64: 1, 256>}, {pipeline_mode = #tpu.pipeline_mode<synchronous>, transform_indices = @transform_13, window_bounds = array<i64: 256, 640>}, {pipeline_mode = #tpu.pipeline_mode<synchronous>, transform_indices = @transform_14, window_bounds = array<i64: 1, 640>}, {pipeline_mode = #tpu.pipeline_mode<synchronous>, transform_indices = @transform_15, window_bounds = array<i64: 640, 640>}, {pipeline_mode = #tpu.pipeline_mode<synchronous>, transform_indices = @transform_16, window_bounds = array<i64: 1, 640>}, {transform_indices = @transform_17, window_bounds = array<i64: 8, 640>}]} {
    %c0 = arith.constant 0 : index
    %c0_0 = arith.constant 0 : index
    %0 = vector.load %arg1[%c0, %c0_0] : memref<8x640xbf16, #tpu.memory_space<vmem>>, vector<8x640xbf16>
    %c0_1 = arith.constant 0 : index
    %c0_2 = arith.constant 0 : index
    %1 = vector.load %arg3[%c0_1, %c0_2] : memref<1x640xf32, #tpu.memory_space<vmem>>, vector<1x640xf32>
    %c0_3 = arith.constant 0 : index
    %c0_4 = arith.constant 0 : index
    %2 = vector.load %arg2[%c0_3, %c0_4] : memref<640x640xbf16, #tpu.memory_space<vmem>>, vector<640x640xbf16>
    %cst = arith.constant dense<0.000000e+00> : vector<8x640xf32>
    %3 = tpu.matmul %0, %2, %cst {dimension_numbers = #tpu.dot_dimension_numbers<[1], [0], [0], [1], [0, 0, 1, 1], [], []>} : vector<8x640xbf16>, vector<640x640xbf16>, vector<8x640xf32> -> vector<8x640xf32>
    %4 = vector.broadcast %1 : vector<1x640xf32> to vector<8x640xf32>
    %5 = arith.addf %3, %4 : vector<8x640xf32>
    %cst_5 = arith.constant 0.000000e+00 : f32
    %6 = vector.broadcast %cst_5 : f32 to vector<8x640xf32>
    %7 = arith.maximumf %5, %6 : vector<8x640xf32>
    %8 = arith.truncf %7 : vector<8x640xf32> to vector<8x640xbf16>
    %c0_6 = arith.constant 0 : index
    %c0_7 = arith.constant 0 : index
    %9 = vector.load %arg5[%c0_6, %c0_7] : memref<1x256xf32, #tpu.memory_space<vmem>>, vector<1x256xf32>
    %c0_8 = arith.constant 0 : index
    %c0_9 = arith.constant 0 : index
    %10 = vector.load %arg4[%c0_8, %c0_9] : memref<640x256xbf16, #tpu.memory_space<vmem>>, vector<640x256xbf16>
    %cst_10 = arith.constant dense<0.000000e+00> : vector<8x256xf32>
    %11 = tpu.matmul %8, %10, %cst_10 {dimension_numbers = #tpu.dot_dimension_numbers<[1], [0], [0], [1], [0, 0, 1, 1], [], []>} : vector<8x640xbf16>, vector<640x256xbf16>, vector<8x256xf32> -> vector<8x256xf32>
    %12 = vector.broadcast %9 : vector<1x256xf32> to vector<8x256xf32>
    %13 = arith.addf %11, %12 : vector<8x256xf32>
    %cst_11 = arith.constant 0.000000e+00 : f32
    %14 = vector.broadcast %cst_11 : f32 to vector<8x256xf32>
    %15 = arith.maximumf %13, %14 : vector<8x256xf32>
    %16 = arith.truncf %15 : vector<8x256xf32> to vector<8x256xbf16>
    %c0_12 = arith.constant 0 : index
    %c0_13 = arith.constant 0 : index
    %17 = vector.load %arg7[%c0_12, %c0_13] : memref<1x64xf32, #tpu.memory_space<vmem>>, vector<1x64xf32>
    %c0_14 = arith.constant 0 : index
    %c0_15 = arith.constant 0 : index
    %18 = vector.load %arg6[%c0_14, %c0_15] : memref<256x64xbf16, #tpu.memory_space<vmem>>, vector<256x64xbf16>
    %cst_16 = arith.constant dense<0.000000e+00> : vector<8x64xf32>
    %19 = tpu.matmul %16, %18, %cst_16 {dimension_numbers = #tpu.dot_dimension_numbers<[1], [0], [0], [1], [0, 0, 1, 1], [], []>} : vector<8x256xbf16>, vector<256x64xbf16>, vector<8x64xf32> -> vector<8x64xf32>
    %20 = vector.broadcast %17 : vector<1x64xf32> to vector<8x64xf32>
    %21 = arith.addf %19, %20 : vector<8x64xf32>
    %cst_17 = arith.constant 0.000000e+00 : f32
    %22 = vector.broadcast %cst_17 : f32 to vector<8x64xf32>
    %23 = arith.maximumf %21, %22 : vector<8x64xf32>
    %c0_18 = arith.constant 0 : index
    %c0_19 = arith.constant 0 : index
    %24 = vector.load %arg9[%c0_18, %c0_19] : memref<1x1xf32, #tpu.memory_space<vmem>>, vector<1x1xf32>
    %c0_20 = arith.constant 0 : index
    %c0_21 = arith.constant 0 : index
    %25 = vector.load %arg8[%c0_20, %c0_21] : memref<1x64xbf16, #tpu.memory_space<vmem>>, vector<1x64xbf16>
    %26 = arith.extf %25 : vector<1x64xbf16> to vector<1x64xf32>
    %27 = vector.broadcast %26 : vector<1x64xf32> to vector<8x64xf32>
    %28 = arith.mulf %23, %27 : vector<8x64xf32>
    %cst_22 = arith.constant dense<0.000000e+00> : vector<8xf32>
    %29 = vector.multi_reduction <add>, %28, %cst_22 [1] : vector<8x64xf32> to vector<8xf32>
    %30 = vector.shape_cast %29 : vector<8xf32> to vector<8x1xf32>
    %31 = vector.broadcast %24 : vector<1x1xf32> to vector<8x1xf32>
    %32 = arith.addf %30, %31 : vector<8x1xf32>
    %33 = math.tanh %32 : vector<8x1xf32>
    %c0_23 = arith.constant 0 : index
    %c0_24 = arith.constant 0 : index
    %34 = vector.load %arg11[%c0_23, %c0_24] : memref<1x64xf32, #tpu.memory_space<vmem>>, vector<1x64xf32>
    %c0_25 = arith.constant 0 : index
    %c0_26 = arith.constant 0 : index
    %35 = vector.load %arg10[%c0_25, %c0_26] : memref<1x64xbf16, #tpu.memory_space<vmem>>, vector<1x64xbf16>
    %36 = arith.extf %35 : vector<1x64xbf16> to vector<1x64xf32>
    %37 = vector.broadcast %33 : vector<8x1xf32> to vector<8x64xf32>
    %38 = vector.broadcast %36 : vector<1x64xf32> to vector<8x64xf32>
    %39 = arith.mulf %37, %38 : vector<8x64xf32>
    %40 = vector.broadcast %34 : vector<1x64xf32> to vector<8x64xf32>
    %41 = arith.addf %39, %40 : vector<8x64xf32>
    %cst_27 = arith.constant 0.000000e+00 : f32
    %42 = vector.broadcast %cst_27 : f32 to vector<8x64xf32>
    %43 = arith.maximumf %41, %42 : vector<8x64xf32>
    %44 = arith.truncf %43 : vector<8x64xf32> to vector<8x64xbf16>
    %c0_28 = arith.constant 0 : index
    %c0_29 = arith.constant 0 : index
    %45 = vector.load %arg13[%c0_28, %c0_29] : memref<1x256xf32, #tpu.memory_space<vmem>>, vector<1x256xf32>
    %c0_30 = arith.constant 0 : index
    %c0_31 = arith.constant 0 : index
    %46 = vector.load %arg12[%c0_30, %c0_31] : memref<64x256xbf16, #tpu.memory_space<vmem>>, vector<64x256xbf16>
    %cst_32 = arith.constant dense<0.000000e+00> : vector<8x256xf32>
    %47 = tpu.matmul %44, %46, %cst_32 {dimension_numbers = #tpu.dot_dimension_numbers<[1], [0], [0], [1], [0, 0, 1, 1], [], []>} : vector<8x64xbf16>, vector<64x256xbf16>, vector<8x256xf32> -> vector<8x256xf32>
    %48 = vector.broadcast %45 : vector<1x256xf32> to vector<8x256xf32>
    %49 = arith.addf %47, %48 : vector<8x256xf32>
    %cst_33 = arith.constant 0.000000e+00 : f32
    %50 = vector.broadcast %cst_33 : f32 to vector<8x256xf32>
    %51 = arith.maximumf %49, %50 : vector<8x256xf32>
    %52 = arith.truncf %51 : vector<8x256xf32> to vector<8x256xbf16>
    %c0_34 = arith.constant 0 : index
    %c0_35 = arith.constant 0 : index
    %53 = vector.load %arg15[%c0_34, %c0_35] : memref<1x640xf32, #tpu.memory_space<vmem>>, vector<1x640xf32>
    %c0_36 = arith.constant 0 : index
    %c0_37 = arith.constant 0 : index
    %54 = vector.load %arg14[%c0_36, %c0_37] : memref<256x640xbf16, #tpu.memory_space<vmem>>, vector<256x640xbf16>
    %cst_38 = arith.constant dense<0.000000e+00> : vector<8x640xf32>
    %55 = tpu.matmul %52, %54, %cst_38 {dimension_numbers = #tpu.dot_dimension_numbers<[1], [0], [0], [1], [0, 0, 1, 1], [], []>} : vector<8x256xbf16>, vector<256x640xbf16>, vector<8x640xf32> -> vector<8x640xf32>
    %56 = vector.broadcast %53 : vector<1x640xf32> to vector<8x640xf32>
    %57 = arith.addf %55, %56 : vector<8x640xf32>
    %cst_39 = arith.constant 0.000000e+00 : f32
    %58 = vector.broadcast %cst_39 : f32 to vector<8x640xf32>
    %59 = arith.maximumf %57, %58 : vector<8x640xf32>
    %60 = arith.truncf %59 : vector<8x640xf32> to vector<8x640xbf16>
    %c0_40 = arith.constant 0 : index
    %c0_41 = arith.constant 0 : index
    %61 = vector.load %arg17[%c0_40, %c0_41] : memref<1x640xf32, #tpu.memory_space<vmem>>, vector<1x640xf32>
    %c0_42 = arith.constant 0 : index
    %c0_43 = arith.constant 0 : index
    %62 = vector.load %arg16[%c0_42, %c0_43] : memref<640x640xbf16, #tpu.memory_space<vmem>>, vector<640x640xbf16>
    %cst_44 = arith.constant dense<0.000000e+00> : vector<8x640xf32>
    %63 = tpu.matmul %60, %62, %cst_44 {dimension_numbers = #tpu.dot_dimension_numbers<[1], [0], [0], [1], [0, 0, 1, 1], [], []>} : vector<8x640xbf16>, vector<640x640xbf16>, vector<8x640xf32> -> vector<8x640xf32>
    %64 = vector.broadcast %61 : vector<1x640xf32> to vector<8x640xf32>
    %65 = arith.addf %63, %64 : vector<8x640xf32>
    %66 = arith.truncf %65 : vector<8x640xf32> to vector<8x640xbf16>
    %67 = math.tanh %66 : vector<8x640xbf16>
    %68 = arith.extf %67 : vector<8x640xbf16> to vector<8x640xf32>
    %c0_45 = arith.constant 0 : index
    %c0_46 = arith.constant 0 : index
    %69 = vector.load %arg18[%c0_45, %c0_46] : memref<8x640xf32, #tpu.memory_space<vmem>>, vector<8x640xf32>
    tpu.vector_store %arg18[%c0_45, %c0_46], %68 {strides = array<i32>} : memref<8x640xf32, #tpu.memory_space<vmem>>, vector<8x640xf32>,
    return
  }
  func.func @transform_0(%arg0: i32) -> (i32, i32) {
    %c0_i32 = arith.constant 0 : i32
    %c0_i32_0 = arith.constant 0 : i32
    return %arg0, %c0_i32 : i32, i32
  }
  func.func @transform_1(%arg0: i32) -> (i32, i32) {
    %c0_i32 = arith.constant 0 : i32
    %c0_i32_0 = arith.constant 0 : i32
    %c0_i32_1 = arith.constant 0 : i32
    return %c0_i32, %c0_i32_0 : i32, i32
  }
  func.func @transform_2(%arg0: i32) -> (i32, i32) {
    %c0_i32 = arith.constant 0 : i32
    %c0_i32_0 = arith.constant 0 : i32
    %c0_i32_1 = arith.constant 0 : i32
    return %c0_i32, %c0_i32_0 : i32, i32
  }
  func.func @transform_3(%arg0: i32) -> (i32, i32) {
    %c0_i32 = arith.constant 0 : i32
    %c0_i32_0 = arith.constant 0 : i32
    %c0_i32_1 = arith.constant 0 : i32
    return %c0_i32, %c0_i32_0 : i32, i32
  }
  func.func @transform_4(%arg0: i32) -> (i32, i32) {
    %c0_i32 = arith.constant 0 : i32
    %c0_i32_0 = arith.constant 0 : i32
    %c0_i32_1 = arith.constant 0 : i32
    return %c0_i32, %c0_i32_0 : i32, i32
  }
  func.func @transform_5(%arg0: i32) -> (i32, i32) {
    %c0_i32 = arith.constant 0 : i32
    %c0_i32_0 = arith.constant 0 : i32
    %c0_i32_1 = arith.constant 0 : i32
    return %c0_i32, %c0_i32_0 : i32, i32
  }
  func.func @transform_6(%arg0: i32) -> (i32, i32) {
    %c0_i32 = arith.constant 0 : i32
    %c0_i32_0 = arith.constant 0 : i32
    %c0_i32_1 = arith.constant 0 : i32
    return %c0_i32, %c0_i32_0 : i32, i32
  }
  func.func @transform_7(%arg0: i32) -> (i32, i32) {
    %c0_i32 = arith.constant 0 : i32
    %c0_i32_0 = arith.constant 0 : i32
    %c0_i32_1 = arith.constant 0 : i32
    return %c0_i32, %c0_i32_0 : i32, i32
  }
  func.func @transform_8(%arg0: i32) -> (i32, i32) {
    %c0_i32 = arith.constant 0 : i32
    %c0_i32_0 = arith.constant 0 : i32
    %c0_i32_1 = arith.constant 0 : i32
    return %c0_i32, %c0_i32_0 : i32, i32
  }
  func.func @transform_9(%arg0: i32) -> (i32, i32) {
    %c0_i32 = arith.constant 0 : i32
    %c0_i32_0 = arith.constant 0 : i32
    %c0_i32_1 = arith.constant 0 : i32
    return %c0_i32, %c0_i32_0 : i32, i32
  }
  func.func @transform_10(%arg0: i32) -> (i32, i32) {
    %c0_i32 = arith.constant 0 : i32
    %c0_i32_0 = arith.constant 0 : i32
    %c0_i32_1 = arith.constant 0 : i32
    return %c0_i32, %c0_i32_0 : i32, i32
  }
  func.func @transform_11(%arg0: i32) -> (i32, i32) {
    %c0_i32 = arith.constant 0 : i32
    %c0_i32_0 = arith.constant 0 : i32
    %c0_i32_1 = arith.constant 0 : i32
    return %c0_i32, %c0_i32_0 : i32, i32
  }
  func.func @transform_12(%arg0: i32) -> (i32, i32) {
    %c0_i32 = arith.constant 0 : i32
    %c0_i32_0 = arith.constant 0 : i32
    %c0_i32_1 = arith.constant 0 : i32
    return %c0_i32, %c0_i32_0 : i32, i32
  }
  func.func @transform_13(%arg0: i32) -> (i32, i32) {
    %c0_i32 = arith.constant 0 : i32
    %c0_i32_0 = arith.constant 0 : i32
    %c0_i32_1 = arith.constant 0 : i32
    return %c0_i32, %c0_i32_0 : i32, i32
  }
  func.func @transform_14(%arg0: i32) -> (i32, i32) {
    %c0_i32 = arith.constant 0 : i32
    %c0_i32_0 = arith.constant 0 : i32
    %c0_i32_1 = arith.constant 0 : i32
    return %c0_i32, %c0_i32_0 : i32, i32
  }
  func.func @transform_15(%arg0: i32) -> (i32, i32) {
    %c0_i32 = arith.constant 0 : i32
    %c0_i32_0 = arith.constant 0 : i32
    %c0_i32_1 = arith.constant 0 : i32
    return %c0_i32, %c0_i32_0 : i32, i32
  }
  func.func @transform_16(%arg0: i32) -> (i32, i32) {
    %c0_i32 = arith.constant 0 : i32
    %c0_i32_0 = arith.constant 0 : i32
    %c0_i32_1 = arith.constant 0 : i32
    return %c0_i32, %c0_i32_0 : i32, i32
  }
  func.func @transform_17(%arg0: i32) -> (i32, i32) {
    %c0_i32 = arith.constant 0 : i32
    %c0_i32_0 = arith.constant 0 : i32
    return %arg0, %c0_i32 : i32, i32
  }
}

</mosaic_0001>

<bundles_post_ra>
// kernel: tpu_custom_call.1
= control target key start
LH: loop header
LB: loop body
LE: loop exit
PB: predicated region body
PF: predicated region fallthrough
CT: control target
= control target key end

     0   :  { %s8465_s0 = inlined_call_operand.vmem [shape: bf16[8,640], index: 0, kind: input, shape index: {}]   ;;  %s8466_s1 = inlined_call_operand.hbm [shape: bf16[640,640], index: 1, kind: input, shape index: {}]   ;;  %s8467_s2 = inlined_call_operand.vmem [shape: f32[1,640], index: 2, kind: input, shape index: {}]   ;;  %s8468_s3 = inlined_call_operand.hbm [shape: bf16[640,256], index: 3, kind: input, shape index: {}]   ;;  %s8469_s4 = inlined_call_operand.vmem [shape: f32[1,256], index: 4, kind: input, shape index: {}]   ;;  %s8470_s5 = inlined_call_operand.vmem [shape: bf16[256,64], index: 5, kind: input, shape index: {}]   ;;  %s8471_s6 = inlined_call_operand.vmem [shape: f32[1,64], index: 6, kind: input, shape index: {}]   ;;  %s8472_s7 = inlined_call_operand.vmem [shape: bf16[1,64], index: 7, kind: input, shape index: {}]   ;;  %s8473_s8 = inlined_call_operand.<no memory space> [shape: f32[1,1], index: 8, kind: input, shape index: {}]   ;;  %s8474_s9 = inlined_call_operand.vmem [shape: bf16[1,64], index: 9, kind: input, shape index: {}]   ;;  %s8475_s10 = inlined_call_operand.vmem [shape: f32[1,64], index: 10, kind: input, shape index: {}]   ;;  %s8476_s11 = inlined_call_operand.vmem [shape: bf16[64,256], index: 11, kind: input, shape index: {}]   ;;  %s8477_s12 = inlined_call_operand.vmem [shape: f32[1,256], index: 12, kind: input, shape index: {}]   ;;  %s8478_s13 = inlined_call_operand.hbm [shape: bf16[256,640], index: 13, kind: input, shape index: {}]   ;;  %s8479_s14 = inlined_call_operand.vmem [shape: f32[1,640], index: 14, kind: input, shape index: {}]   ;;  %s8480_s15 = inlined_call_operand.hbm [shape: bf16[640,640], index: 15, kind: input, shape index: {}]   ;;  %s8481_s16 = inlined_call_operand.vmem [shape: f32[1,640], index: 16, kind: input, shape index: {}]   ;;  %s8482_s17 = inlined_call_operand.hbm [shape: f32[8,640], index: 17, kind: output, shape index: {}]  }
   0x1   :  { %8484 = sst [smem:[#allocation16_spill]] %s8465_s0  ;;  %v22_v0 = vstv %s8473_s8 }
   0x2   :  { %8485 = sst [smem:[#allocation17_spill]] %s8466_s1  ;;  %23 = vst [vmem:[#allocation2] sm:$0x1] %v22_v0 }
   0x3   :  { %24 = vsyncpa [#allocation4], 0 }
   0x4   :  { %25 = vsyncpa [#allocation7], 0 }
   0x5   :  { %26 = vsyncpa [#allocation10], 0  ;;  %s49_s28 = sshll.u32 %s8468_s3, 4  ;;  %s50_s28 = int_to_ptr.hbm [resolvable:$true] %s49_s28 }
   0x6   :  { %27 = vsyncpa [#allocation5], 0  ;;  %s8073_s29 = smov [#allocation6]   ;;  %s8486_s19 = sld [smem:[#allocation17_spill]] }
   0x7   :  { %s51_s0 = sshll.u32 %s8073_s29, 4  ;;  %s8074_s20 = smov 128   ;;  %s52_s0 = int_to_ptr.vmem [resolvable:$true] %s51_s0 }
   0x8   :  { %s8075_s21 = smov 8   ;;  %s8076_s8 = smov [#allocation3]  }
   0x9   :  { %57 = dma.hbm_to_vmem [thread:$0]  %s50_s28, 10240, %s52_s0, [#allocation7], %s8074_s20, %s8074_s20, %s8075_s21  }
   0xa   :  { %s36_s22 = sshll.u32 %s8076_s8, 4  ;;  %s8077_s23 = smov 320   ;;  %s37_s22 = int_to_ptr.vmem [resolvable:$true] %s36_s22 }
   0xb   :  { %s8078_s24 = smov 20   ;;  %s80_s26 = sshll.u32 %s8478_s13, 4  ;;  %s81_s26 = int_to_ptr.hbm [resolvable:$true] %s80_s26 }
   0xc   :  { %s34_s1 = sshll.u32 %s8486_s19, 4  ;;  %s8079_s27 = smov [#allocation8]   ;;  %s35_s1 = int_to_ptr.hbm [resolvable:$true] %s34_s1 }
   0xd   :  { %42 = dma.hbm_to_vmem [thread:$0]  %s35_s1, 25600, %s37_s22, [#allocation4], %s8077_s23, %s8077_s23, %s8078_s24  }
   0xe   :  { %s82_s29 = sshll.u32 %s8079_s27, 4  ;;  %s95_s19 = sshll.u32 %s8480_s15, 4  ;;  %s83_s29 = int_to_ptr.vmem [resolvable:$true] %s82_s29  ;;  %s96_s19 = int_to_ptr.hbm [resolvable:$true] %s95_s19 }
   0xf   :  { %88 = dma.hbm_to_vmem [thread:$0]  %s81_s26, 10240, %s83_s29, [#allocation7], %s8077_s23, %s8077_s23, %s8078_s24  }
  0x10   :  { %s8080_s28 = smov [#allocation9]  }
  0x11   :  { %s97_s0 = sshll.u32 %s8080_s28, 4  ;;  %s98_s0 = int_to_ptr.vmem [resolvable:$true] %s97_s0 }
  0x12   :  { %103 = dma.hbm_to_vmem [thread:$0]  %s96_s19, 25600, %s98_s0, [#allocation10], %s8077_s23, %s8077_s23, %s8078_s24  }
  0x13   :  { %8065 = dma.done.wait [#allocation4], 25600  }
  0x14   :  { %8066 = vsyncadd [#allocation4], 4294941696 }
  0x15   :  { %8067 = dma.done.wait [#allocation7], 20480  }
  0x16   :  { %8068 = vsyncadd [#allocation7], 4294946816 }
  0x17   :  { %8069 = dma.done.wait [#allocation10], 25600  }
  0x18   :  { %8070 = vsyncadd [#allocation10], 4294941696  ;;  %v5139_v1 = vld [vmem:[#allocation3 + $0x118] sm:$0xf]  ;;  %v7372_v2 = vld [vmem:[#allocation3 + $0x128] sm:$0xf0] }
  0x19   :  { %v5299_v3 = vld [vmem:[#allocation3 + $0x258] sm:$0xf]  ;;  %v5140_v4 = vor.u32 %v7372_v2, %v5139_v1  ;;  %v7412_v5 = vld [vmem:[#allocation3 + $0x268] sm:$0xf0]  ;;  %v5119_v12 = vld [vmem:[#allocation3 + $0xf0] sm:$0xf] }
  0x1a   :  { %v5459_v6 = vld [vmem:[#allocation3 + $0x398] sm:$0xf]  ;;  %v7452_v7 = vld [vmem:[#allocation3 + $0x3a8] sm:$0xf0]  ;;  %v5300_v8 = vor.u32 %v7412_v5, %v5299_v3  ;;  %v7367_v14 = vld [vmem:[#allocation3 + $0x100] sm:$0xf0] }
  0x1b   :  { %v5460_v9 = vor.u32 %v7452_v7, %v5459_v6  ;;  %v5619_v10 = vld [vmem:[#allocation3 + $0x4d8] sm:$0xf]  ;;  %v7492_v11 = vld [vmem:[#allocation3 + $0x4e8] sm:$0xf0]  ;;  %1436 = vmatpush.bf16.msra.mxu0 %v5140_v4  ;;  %v5279_v15 = vld [vmem:[#allocation3 + $0x230] sm:$0xf]  ;;  %v5120_v17 = vor.u32 %v7367_v14, %v5119_v12 }
  0x1c   :  { %v5620_v13 = vor.u32 %v7492_v11, %v5619_v10  ;;  %v7407_v16 = vld [vmem:[#allocation3 + $0x240] sm:$0xf0]  ;;  %1449 = vmatpush.bf16.msra.mxu1 %v5300_v8  ;;  %v5439_v19 = vld [vmem:[#allocation3 + $0x370] sm:$0xf]  ;;  %v5099_v24 = vld [vmem:[#allocation3 + $0xc8] sm:$0xf] }
  0x1d   :  { %1462 = vmatpush.bf16.msra.mxu2 %v5460_v9  ;;  %v5280_v18 = vor.u32 %v7407_v16, %v5279_v15  ;;  %v7447_v20 = vld [vmem:[#allocation3 + $0x380] sm:$0xf0]  ;;  %v5599_v21 = vld [vmem:[#allocation3 + $0x4b0] sm:$0xf]  ;;  %v7362_v25 = vld [vmem:[#allocation3 + $0xd8] sm:$0xf0] }
  0x1e   :  { %1475 = vmatpush.bf16.msra.mxu3 %v5620_v13  ;;  %v5440_v22 = vor.u32 %v7447_v20, %v5439_v19  ;;  %v7487_v23 = vld [vmem:[#allocation3 + $0x4c0] sm:$0xf0]  ;;  %v5259_v27 = vld [vmem:[#allocation3 + $0x208] sm:$0xf]  ;;  %v7402_v28 = vld [vmem:[#allocation3 + $0x218] sm:$0xf0]  ;;  %v5100_v30 = vor.u32 %v7362_v25, %v5099_v24 }
  0x1f   :  { %v5600_v26 = vor.u32 %v7487_v23, %v5599_v21  ;;  %v5419_v29 = vld [vmem:[#allocation3 + $0x348] sm:$0xf]  ;;  %1437 = vmatpush.bf16.msra.mxu0 %v5120_v17  ;;  %v7442_v31 = vld [vmem:[#allocation3 + $0x358] sm:$0xf0]  ;;  %v5260_v34 = vor.u32 %v7402_v28, %v5259_v27  ;;  %v5079_v36 = vld [vmem:[#allocation3 + $0xa0] sm:$0xf] }
  0x20   :  { %v5579_v32 = vld [vmem:[#allocation3 + $0x488] sm:$0xf]  ;;  %v7482_v33 = vld [vmem:[#allocation3 + $0x498] sm:$0xf0]  ;;  %1450 = vmatpush.bf16.msra.mxu1 %v5280_v18  ;;  %v5420_v35 = vor.u32 %v7442_v31, %v5419_v29  ;;  %v7357_v37 = vld [vmem:[#allocation3 + $0xb0] sm:$0xf0] }
  0x21   :  { %1463 = vmatpush.bf16.msra.mxu2 %v5440_v22  ;;  %v5239_v38 = vld [vmem:[#allocation3 + $0x1e0] sm:$0xf]  ;;  %v5580_v39 = vor.u32 %v7482_v33, %v5579_v32  ;;  %v7397_v40 = vld [vmem:[#allocation3 + $0x1f0] sm:$0xf0]  ;;  %v5080_v45 = vor.u32 %v7357_v37, %v5079_v36  ;;  %v5059_v48 = vld [vmem:[#allocation3 + $0x78] sm:$0xf] }
  0x22   :  { %1476 = vmatpush.bf16.msra.mxu3 %v5600_v26  ;;  %v5399_v41 = vld [vmem:[#allocation3 + $0x320] sm:$0xf]  ;;  %v7437_v42 = vld [vmem:[#allocation3 + $0x330] sm:$0xf0]  ;;  %v5240_v46 = vor.u32 %v7397_v40, %v5239_v38  ;;  %v7352_v49 = vld [vmem:[#allocation3 + $0x88] sm:$0xf0] }
  0x23   :  { %v5559_v43 = vld [vmem:[#allocation3 + $0x460] sm:$0xf]  ;;  %v7477_v44 = vld [vmem:[#allocation3 + $0x470] sm:$0xf0]  ;;  %1438 = vmatpush.bf16.msra.mxu0 %v5100_v30  ;;  %v5400_v47 = vor.u32 %v7437_v42, %v5399_v41  ;;  %v5219_v50 = vld [vmem:[#allocation3 + $0x1b8] sm:$0xf]  ;;  %v5060_v57 = vor.u32 %v7352_v49, %v5059_v48 }
  0x24   :  { %1451 = vmatpush.bf16.msra.mxu1 %v5260_v34  ;;  %v5560_v51 = vor.u32 %v7477_v44, %v5559_v43  ;;  %v7392_v52 = vld [vmem:[#allocation3 + $0x1c8] sm:$0xf0]  ;;  %v5379_v53 = vld [vmem:[#allocation3 + $0x2f8] sm:$0xf]  ;;  %v5039_v60 = vld [vmem:[#allocation3 + $0x50] sm:$0xf] }
  0x25   :  { %1464 = vmatpush.bf16.msra.mxu2 %v5420_v35  ;;  %v7432_v54 = vld [vmem:[#allocation3 + $0x308] sm:$0xf0]  ;;  %v5539_v55 = vld [vmem:[#allocation3 + $0x438] sm:$0xf]  ;;  %v5220_v58 = vor.u32 %v7392_v52, %v5219_v50  ;;  %v7347_v61 = vld [vmem:[#allocation3 + $0x60] sm:$0xf0] }
  0x26   :  { %1477 = vmatpush.bf16.msra.mxu3 %v5580_v39  ;;  %v7472_v56 = vld [vmem:[#allocation3 + $0x448] sm:$0xf0]  ;;  %v5380_v59 = vor.u32 %v7432_v54, %v5379_v53  ;;  %v5199_v62 = vld [vmem:[#allocation3 + $0x190] sm:$0xf]  ;;  %v7387_v0 = vld [vmem:[#allocation3 + $0x1a0] sm:$0xf0]  ;;  %v5040_v5 = vor.u32 %v7347_v61, %v5039_v60 }
  0x27   :  { %1439 = vmatpush.bf16.msra.mxu0 %v5080_v45  ;;  %v5540_v63 = vor.u32 %v7472_v56, %v5539_v55  ;;  %v5359_v1 = vld [vmem:[#allocation3 + $0x2d0] sm:$0xf]  ;;  %v7427_v2 = vld [vmem:[#allocation3 + $0x2e0] sm:$0xf0]  ;;  %v5200_v6 = vor.u32 %v7387_v0, %v5199_v62  ;;  %v5019_v8 = vld [vmem:[#allocation3 + $0x28] sm:$0xf] }
  0x28   :  { %1452 = vmatpush.bf16.msra.mxu1 %v5240_v46  ;;  %v5519_v3 = vld [vmem:[#allocation3 + $0x410] sm:$0xf]  ;;  %v7467_v4 = vld [vmem:[#allocation3 + $0x420] sm:$0xf0]  ;;  %v5360_v7 = vor.u32 %v7427_v2, %v5359_v1  ;;  %v7342_v9 = vld [vmem:[#allocation3 + $0x38] sm:$0xf0] }
  0x29   :  { %1465 = vmatpush.bf16.msra.mxu2 %v5400_v47  ;;  %v5179_v10 = vld [vmem:[#allocation3 + $0x168] sm:$0xf]  ;;  %v5520_v11 = vor.u32 %v7467_v4, %v5519_v3  ;;  %v7382_v12 = vld [vmem:[#allocation3 + $0x178] sm:$0xf0]  ;;  %v5020_v17 = vor.u32 %v7342_v9, %v5019_v8  ;;  %v4999_v18 = vld [vmem:[#allocation3] sm:$0xf] }
  0x2a   :  { %1478 = vmatpush.bf16.msra.mxu3 %v5560_v51  ;;  %v5339_v13 = vld [vmem:[#allocation3 + $0x2a8] sm:$0xf]  ;;  %v7422_v14 = vld [vmem:[#allocation3 + $0x2b8] sm:$0xf0]  ;;  %v7337_v19 = vld [vmem:[#allocation3 + $0x10] sm:$0xf0]  ;;  %v5180_v20 = vor.u32 %v7382_v12, %v5179_v10 }
  0x2b   :  { %1440 = vmatpush.bf16.msra.mxu0 %v5060_v57  ;;  %v5499_v15 = vld [vmem:[#allocation3 + $0x3e8] sm:$0xf]  ;;  %v7462_v16 = vld [vmem:[#allocation3 + $0x3f8] sm:$0xf0]  ;;  %v5340_v21 = vor.u32 %v7422_v14, %v5339_v13  ;;  %v5159_v22 = vld [vmem:[#allocation3 + $0x140] sm:$0xf]  ;;  %v5000_v32 = vor.u32 %v7337_v19, %v4999_v18 }
  0x2c   :  { %1453 = vmatpush.bf16.msra.mxu1 %v5220_v58  ;;  %v7377_v23 = vld [vmem:[#allocation3 + $0x150] sm:$0xf0]  ;;  %v5319_v24 = vld [vmem:[#allocation3 + $0x280] sm:$0xf]  ;;  %v5500_v25 = vor.u32 %v7462_v16, %v5499_v15  ;;  %v5779_v27 = vld [vmem:[#allocation3 + $0x618] sm:$0xf] }
  0x2d   :  { %1466 = vmatpush.bf16.msra.mxu2 %v5380_v59  ;;  %v7417_v26 = vld [vmem:[#allocation3 + $0x290] sm:$0xf0]  ;;  %v7532_v28 = vld [vmem:[#allocation3 + $0x628] sm:$0xf0]  ;;  %v7370_v29 = vld [vmem:[#allocation3 + $0x11c] sm:$0xf]  ;;  %v5160_v36 = vor.u32 %v7377_v23, %v5159_v22 }
  0x2e   :  { %1479 = vmatpush.bf16.msra.mxu3 %v5540_v63  ;;  %v5141_v30 = vld [vmem:[#allocation3 + $0x12c] sm:$0xf0]  ;;  %v7410_v31 = vld [vmem:[#allocation3 + $0x25c] sm:$0xf]  ;;  %v5479_v34 = vld [vmem:[#allocation3 + $0x3c0] sm:$0xf]  ;;  %v5320_v37 = vor.u32 %v7417_v26, %v5319_v24  ;;  %v5780_v40 = vor.u32 %v7532_v28, %v5779_v27 }
  0x2f   :  { %1441 = vmatpush.bf16.msra.mxu0 %v5040_v5  ;;  %v5301_v33 = vld [vmem:[#allocation3 + $0x26c] sm:$0xf0]  ;;  %v7457_v35 = vld [vmem:[#allocation3 + $0x3d0] sm:$0xf0]  ;;  %v7450_v38 = vld [vmem:[#allocation3 + $0x39c] sm:$0xf]  ;;  %v5144_v41 = vor.u32 %v7370_v29, %v5141_v30 }
  0x30   :  { %1454 = vmatpush.bf16.msra.mxu1 %v5200_v6  ;;  %v5461_v39 = vld [vmem:[#allocation3 + $0x3ac] sm:$0xf0]  ;;  %v5304_v43 = vor.u32 %v7410_v31, %v5301_v33  ;;  %v5480_v44 = vor.u32 %v7457_v35, %v5479_v34  ;;  %v7527_v45 = vld [vmem:[#allocation3 + $0x600] sm:$0xf0]  ;;  %v7365_v46 = vld [vmem:[#allocation3 + $0xf4] sm:$0xf] }
  0x31   :  { %1467 = vmatpush.bf16.msra.mxu2 %v5360_v7  ;;  %v5759_v42 = vld [vmem:[#allocation3 + $0x5f0] sm:$0xf]  ;;  %v5121_v47 = vld [vmem:[#allocation3 + $0x104] sm:$0xf0]  ;;  %v5464_v48 = vor.u32 %v7450_v38, %v5461_v39  ;;  %v7405_v49 = vld [vmem:[#allocation3 + $0x234] sm:$0xf] }
  0x32   :  { %1480 = vmatpush.bf16.msra.mxu3 %v5520_v11  ;;  %v5281_v50 = vld [vmem:[#allocation3 + $0x244] sm:$0xf0]  ;;  %v7445_v51 = vld [vmem:[#allocation3 + $0x374] sm:$0xf]  ;;  %v5760_v53 = vor.u32 %v7527_v45, %v5759_v42  ;;  %v5124_v54 = vor.u32 %v7365_v46, %v5121_v47  ;;  %v7522_v57 = vld [vmem:[#allocation3 + $0x5d8] sm:$0xf0] }
  0x33   :  { %1442 = vmatpush.bf16.msra.mxu0 %v5020_v17  ;;  %v5441_v52 = vld [vmem:[#allocation3 + $0x384] sm:$0xf0]  ;;  %v5284_v56 = vor.u32 %v7405_v49, %v5281_v50  ;;  %v7360_v58 = vld [vmem:[#allocation3 + $0xcc] sm:$0xf]  ;;  %v5101_v59 = vld [vmem:[#allocation3 + $0xdc] sm:$0xf0] }
  0x34   :  { %1455 = vmatpush.bf16.msra.mxu1 %v5180_v20  ;;  %v5739_v55 = vld [vmem:[#allocation3 + $0x5c8] sm:$0xf]  ;;  %v5444_v60 = vor.u32 %v7445_v51, %v5441_v52  ;;  %v7400_v61 = vld [vmem:[#allocation3 + $0x20c] sm:$0xf]  ;;  %v5261_v62 = vld [vmem:[#allocation3 + $0x21c] sm:$0xf0]  ;;  %v5104_v3 = vor.u32 %v7360_v58, %v5101_v59 }
  0x35   :  { %1468 = vmatpush.bf16.msra.mxu2 %v5340_v21  ;;  %v7440_v63 = vld [vmem:[#allocation3 + $0x34c] sm:$0xf]  ;;  %v5421_v0 = vld [vmem:[#allocation3 + $0x35c] sm:$0xf0]  ;;  %s8487_s1 = sld [smem:[#allocation16_spill]]  ;;  %v5740_v2 = vor.u32 %v7522_v57, %v5739_v55  ;;  %v5264_v7 = vor.u32 %v7400_v61, %v5261_v62  ;;  %vm2555_vm0 = vcmask 523264  }
  0x36   :  { %1481 = vmatpush.bf16.msra.mxu3 %v5500_v25  ;;  %v5719_v4 = vld [vmem:[#allocation3 + $0x5a0] sm:$0xf]  ;;  %v7517_v8 = vld [vmem:[#allocation3 + $0x5b0] sm:$0xf0]  ;;  %v7355_v9 = vld [vmem:[#allocation3 + $0xa4] sm:$0xf]  ;;  %v5424_v11 = vor.u32 %v7440_v63, %v5421_v0 }
  0x37   :  { %1443 = vmatpush.bf16.msra.mxu0 %v5000_v32  ;;  %v5081_v10 = vld [vmem:[#allocation3 + $0xb4] sm:$0xf0]  ;;  %v7395_v12 = vld [vmem:[#allocation3 + $0x1e4] sm:$0xf]  ;;  %v5720_v19 = vor.u32 %v7517_v8, %v5719_v4  ;;  %v7512_v25 = vld [vmem:[#allocation3 + $0x588] sm:$0xf0] }
  0x38   :  { %1456 = vmatpush.bf16.msra.mxu1 %v5160_v36  ;;  %v5241_v13 = vld [vmem:[#allocation3 + $0x1f4] sm:$0xf0]  ;;  %v7435_v16 = vld [vmem:[#allocation3 + $0x324] sm:$0xf]  ;;  %v5084_v20 = vor.u32 %v7355_v9, %v5081_v10  ;;  %v7350_v26 = vld [vmem:[#allocation3 + $0x7c] sm:$0xf] }
  0x39   :  { %1469 = vmatpush.bf16.msra.mxu2 %v5320_v37  ;;  %v5401_v17 = vld [vmem:[#allocation3 + $0x334] sm:$0xf0]  ;;  %v5244_v24 = vor.u32 %v7395_v12, %v5241_v13  ;;  %v5061_v27 = vld [vmem:[#allocation3 + $0x8c] sm:$0xf0]  ;;  %v7390_v29 = vld [vmem:[#allocation3 + $0x1bc] sm:$0xf] }
  0x3a   :  { %1482 = vmatpush.bf16.msra.mxu3 %v5480_v44  ;;  %v5699_v21 = vld [vmem:[#allocation3 + $0x578] sm:$0xf]  ;;  %v5404_v28 = vor.u32 %v7435_v16, %v5401_v17  ;;  %v5221_v30 = vld [vmem:[#allocation3 + $0x1cc] sm:$0xf0]  ;;  %v7430_v33 = vld [vmem:[#allocation3 + $0x2fc] sm:$0xf]  ;;  %v5064_v36 = vor.u32 %v7350_v26, %v5061_v27 }
  0x3b   :  { %1488 = vmatpush.bf16.msrb.mxu0 %v5780_v40  ;;  %v123_v1 = vld [vmem:[%s8487_s1] sm:$0xff]  ;;  %v124_v18 = vld [vmem:[%s8487_s1 + $0x8] sm:$0xff]  ;;  %v5381_v34 = vld [vmem:[#allocation3 + $0x30c] sm:$0xf0]  ;;  %v5700_v35 = vor.u32 %v7512_v25, %v5699_v21  ;;  %v5224_v38 = vor.u32 %v7390_v29, %v5221_v30  ;;  %s4985_s19 = sshll.u32 %s8482_s17, 4  ;;  %s4986_s19 = int_to_ptr.hbm [resolvable:$true] %s4985_s19 }
  0x3c   :  { %1501 = vmatpush.bf16.msrb.mxu1 %v5144_v41  ;;  %v381_v5 = vunpack.c.l.b16 %v123_v1  ;;  %v382_v6 = vunpack.c.h.b16 %v123_v1  ;;  %v383_v22 = vunpack.c.l.b16 %v124_v18  ;;  %v384_v23 = vunpack.c.h.b16 %v124_v18  ;;  %v5679_v37 = vld [vmem:[#allocation3 + $0x550] sm:$0xf]  ;;  %v7507_v39 = vld [vmem:[#allocation3 + $0x560] sm:$0xf0]  ;;  %v7345_v40 = vld [vmem:[#allocation3 + $0x54] sm:$0xf] }
  0x3d   :  { %1514 = vmatpush.bf16.msrb.mxu2 %v5304_v43  ;;  %v5041_v41 = vld [vmem:[#allocation3 + $0x64] sm:$0xf0]  ;;  %v5384_v42 = vor.u32 %v7430_v33, %v5381_v34  ;;  %v7385_v43 = vld [vmem:[#allocation3 + $0x194] sm:$0xf]  ;;  %v5680_v47 = vor.u32 %v7507_v39, %v5679_v37  ;;  %v7502_v51 = vld [vmem:[#allocation3 + $0x538] sm:$0xf0] }
  0x3e   :  { %1527 = vmatpush.bf16.msrb.mxu3 %v5464_v48  ;;  %v8191_v14 = vpack.c.b16 %v381_v5, %v381_v5  ;;  %v8193_v15 = vpack.c.b16 %v382_v6, %v382_v6  ;;  %v8199_v31 = vpack.c.b16 %v383_v22, %v383_v22  ;;  %v8202_v32 = vpack.c.b16 %v384_v23, %v384_v23  ;;  %v5201_v44 = vld [vmem:[#allocation3 + $0x1a4] sm:$0xf0]  ;;  %v7425_v45 = vld [vmem:[#allocation3 + $0x2d4] sm:$0xf]  ;;  %v7340_v52 = vld [vmem:[#allocation3 + $0x2c] sm:$0xf] }
  0x3f   :  { %1489 = vmatpush.bf16.msrb.mxu0 %v5760_v53  ;;  %v5361_v46 = vld [vmem:[#allocation3 + $0x2e4] sm:$0xf0]  ;;  %v5044_v48 = vor.u32 %v7345_v40, %v5041_v41  ;;  %v5204_v50 = vor.u32 %v7385_v43, %v5201_v44  ;;  %v5021_v53 = vld [vmem:[#allocation3 + $0x3c] sm:$0xf0]  ;;  %v7380_v55 = vld [vmem:[#allocation3 + $0x16c] sm:$0xf] }
  0x40   :  { %1502 = vmatpush.bf16.msrb.mxu1 %v5124_v54  ;;  %1444 = vmatmul.bf16.vlgmr.msra.gmra.mxu0 %v8191_v14  ;;  %v5659_v49 = vld [vmem:[#allocation3 + $0x528] sm:$0xf]  ;;  %v5364_v54 = vor.u32 %v7425_v45, %v5361_v46  ;;  %v7420_v57 = vld [vmem:[#allocation3 + $0x2ac] sm:$0xf]  ;;  %v5341_v58 = vld [vmem:[#allocation3 + $0x2bc] sm:$0xf0]  ;;  %v5024_v61 = vor.u32 %v7340_v52, %v5021_v53 }
  0x41   :  { %1515 = vmatpush.bf16.msrb.mxu2 %v5284_v56  ;;  %1457 = vmatmul.bf16.vlgmr.msra.gmra.mxu1 %v8193_v15  ;;  %v5181_v56 = vld [vmem:[#allocation3 + $0x17c] sm:$0xf0]  ;;  %v7497_v62 = vld [vmem:[#allocation3 + $0x510] sm:$0xf0]  ;;  %v7335_v63 = vld [vmem:[#allocation3 + $0x4] sm:$0xf]  ;;  %v5344_v5 = vor.u32 %v7420_v57, %v5341_v58 }
  0x42   :  { %1528 = vmatpush.bf16.msrb.mxu3 %v5444_v60  ;;  %1470 = vmatmul.bf16.vlgmr.msra.gmra.mxu2 %v8199_v31  ;;  %v5639_v59 = vld [vmem:[#allocation3 + $0x500] sm:$0xf]  ;;  %v5660_v60 = vor.u32 %v7502_v51, %v5659_v49  ;;  %v125_v0 = vld [vmem:[%s8487_s1 + $0x10] sm:$0xf]  ;;  %v5184_v1 = vor.u32 %v7380_v55, %v5181_v56  ;;  %v5161_v4 = vld [vmem:[#allocation3 + $0x154] sm:$0xf0] }
  0x43   :  { %1490 = vmatpush.bf16.msrb.mxu0 %v5740_v2  ;;  %1483 = vmatmul.bf16.vlgmr.msra.gmra.mxu3 %v8202_v32  ;;  %v5001_v2 = vld [vmem:[#allocation3 + $0x14] sm:$0xf0]  ;;  %v7490_v6 = vld [vmem:[#allocation3 + $0x4dc] sm:$0xf]  ;;  %v5781_v9 = vld [vmem:[#allocation3 + $0x62c] sm:$0xf0]  ;;  %v385_v12 = vunpack.c.l.b16 %v125_v0  ;;  %v5640_v13 = vor.u32 %v7497_v62, %v5639_v59 }
  0x44   :  { %1503 = vmatpush.bf16.msrb.mxu1 %v5104_v3  ;;  %v7375_v3 = vld [vmem:[#allocation3 + $0x144] sm:$0xf]  ;;  %v7530_v8 = vld [vmem:[#allocation3 + $0x61c] sm:$0xf]  ;;  %v5147_v10 = vld [vmem:[#allocation3 + $0x120] sm:$0xf]  ;;  %v5004_v16 = vor.u32 %v7335_v63, %v5001_v2 }
  0x45   :  { %1516 = vmatpush.bf16.msrb.mxu2 %v5264_v7  ;;  %v5621_v7 = vld [vmem:[#allocation3 + $0x4ec] sm:$0xf0]  ;;  %v7415_v17 = vld [vmem:[#allocation3 + $0x284] sm:$0xf]  ;;  %v5321_v18 = vld [vmem:[#allocation3 + $0x294] sm:$0xf0]  ;;  %v5784_v23 = vor.u32 %v7530_v8, %v5781_v9  ;;  %v8209_v34 = vpack.c.b16 %v385_v12, %v385_v12 }
  0x46   :  { %1529 = vmatpush.bf16.msrb.mxu3 %v5424_v11  ;;  %v7373_v11 = vld [vmem:[#allocation3 + $0x130] sm:$0xf0]  ;;  %v5307_v21 = vld [vmem:[#allocation3 + $0x260] sm:$0xf]  ;;  %v5601_v26 = vld [vmem:[#allocation3 + $0x4c4] sm:$0xf0] }
  0x47   :  { %1491 = vmatpush.bf16.msrb.mxu0 %v5720_v19  ;;  %v5164_v19 = vor.u32 %v7375_v3, %v5161_v4  ;;  %v7413_v22 = vld [vmem:[#allocation3 + $0x270] sm:$0xf0]  ;;  %v5761_v29 = vld [vmem:[#allocation3 + $0x604] sm:$0xf0]  ;;  %v5127_v30 = vld [vmem:[#allocation3 + $0xf8] sm:$0xf] }
  0x48   :  { %1504 = vmatpush.bf16.msrb.mxu1 %v5084_v20  ;;  %v5624_v20 = vor.u32 %v7490_v6, %v5621_v7  ;;  %v7485_v25 = vld [vmem:[#allocation3 + $0x4b4] sm:$0xf]  ;;  %v7368_v33 = vld [vmem:[#allocation3 + $0x108] sm:$0xf0]  ;;  %v5287_v37 = vld [vmem:[#allocation3 + $0x238] sm:$0xf] }
  0x49   :  { %1517 = vmatpush.bf16.msrb.mxu2 %v5244_v24  ;;  %v5148_v24 = vor.u32 %v7373_v11, %v5147_v10  ;;  %v7525_v27 = vld [vmem:[#allocation3 + $0x5f4] sm:$0xf]  ;;  %v5128_v40 = vor.u32 %v7368_v33, %v5127_v30  ;;  %v7480_v41 = vld [vmem:[#allocation3 + $0x48c] sm:$0xf]  ;;  %v5741_v44 = vld [vmem:[#allocation3 + $0x5dc] sm:$0xf0] }
  0x4a   :  { %1530 = vmatpush.bf16.msrb.mxu3 %v5404_v28  ;;  %v5324_v28 = vor.u32 %v7415_v17, %v5321_v18  ;;  %v5764_v39 = vor.u32 %v7525_v27, %v5761_v29  ;;  %v7520_v43 = vld [vmem:[#allocation3 + $0x5cc] sm:$0xf]  ;;  %v5107_v45 = vld [vmem:[#allocation3 + $0xd0] sm:$0xf]  ;;  %v7363_v46 = vld [vmem:[#allocation3 + $0xe0] sm:$0xf0] }
  0x4b   :  { %1492 = vmatpush.bf16.msrb.mxu0 %v5700_v35  ;;  %v5308_v35 = vor.u32 %v7413_v22, %v5307_v21  ;;  %v5267_v49 = vld [vmem:[#allocation3 + $0x210] sm:$0xf]  ;;  %v5744_v51 = vor.u32 %v7520_v43, %v5741_v44  ;;  %v5108_v52 = vor.u32 %v7363_v46, %v5107_v45  ;;  %v7475_v53 = vld [vmem:[#allocation3 + $0x464] sm:$0xf]  ;;  %v5721_v56 = vld [vmem:[#allocation3 + $0x5b4] sm:$0xf0] }
  0x4c   :  { %1505 = vmatpush.bf16.msrb.mxu1 %v5064_v36  ;;  %v5604_v36 = vor.u32 %v7485_v25, %v5601_v26  ;;  %v7515_v55 = vld [vmem:[#allocation3 + $0x5a4] sm:$0xf]  ;;  %v5087_v57 = vld [vmem:[#allocation3 + $0xa8] sm:$0xf]  ;;  %v7358_v58 = vld [vmem:[#allocation3 + $0xb8] sm:$0xf0] }
  0x4d   :  { %1518 = vmatpush.bf16.msrb.mxu2 %v5224_v38  ;;  %v7408_v38 = vld [vmem:[#allocation3 + $0x248] sm:$0xf0]  ;;  %v7398_v62 = vld [vmem:[#allocation3 + $0x1f8] sm:$0xf0]  ;;  %v5724_v63 = vor.u32 %v7515_v55, %v5721_v56  ;;  %v5088_v0 = vor.u32 %v7358_v58, %v5087_v57  ;;  %v5541_v2 = vld [vmem:[#allocation3 + $0x44c] sm:$0xf0] }
  0x4e   :  { %1531 = vmatpush.bf16.msrb.mxu3 %v5384_v42  ;;  %v5581_v42 = vld [vmem:[#allocation3 + $0x49c] sm:$0xf0]  ;;  %v7510_v3 = vld [vmem:[#allocation3 + $0x57c] sm:$0xf]  ;;  %v5701_v4 = vld [vmem:[#allocation3 + $0x58c] sm:$0xf0] }
  0x4f   :  { %1493 = vmatpush.bf16.msrb.mxu0 %v5680_v47  ;;  %v5288_v47 = vor.u32 %v7408_v38, %v5287_v37  ;;  %v7353_v6 = vld [vmem:[#allocation3 + $0x90] sm:$0xf0]  ;;  %v5227_v9 = vld [vmem:[#allocation3 + $0x1c0] sm:$0xf]  ;;  %v5704_v11 = vor.u32 %v7510_v3, %v5701_v4  ;;  %v5681_v18 = vld [vmem:[#allocation3 + $0x564] sm:$0xf0] }
  0x50   :  { %1506 = vmatpush.bf16.msrb.mxu1 %v5044_v48  ;;  %v5584_v48 = vor.u32 %v7480_v41, %v5581_v42  ;;  %v7393_v10 = vld [vmem:[#allocation3 + $0x1d0] sm:$0xf0]  ;;  %v7460_v25 = vld [vmem:[#allocation3 + $0x3ec] sm:$0xf]  ;;  %v5661_v30 = vld [vmem:[#allocation3 + $0x53c] sm:$0xf0] }
  0x51   :  { %1519 = vmatpush.bf16.msrb.mxu2 %v5204_v50  ;;  %v7403_v50 = vld [vmem:[#allocation3 + $0x220] sm:$0xf0]  ;;  %v7505_v17 = vld [vmem:[#allocation3 + $0x554] sm:$0xf]  ;;  %v5228_v21 = vor.u32 %v7393_v10, %v5227_v9  ;;  %v7500_v29 = vld [vmem:[#allocation3 + $0x52c] sm:$0xf] }
  0x52   :  { %1532 = vmatpush.bf16.msrb.mxu3 %v5364_v54  ;;  %v5561_v54 = vld [vmem:[#allocation3 + $0x474] sm:$0xf0]  ;;  %v5268_v59 = vor.u32 %v7403_v50, %v5267_v49  ;;  %v5684_v26 = vor.u32 %v7505_v17, %v5681_v18  ;;  %v5027_v33 = vld [vmem:[#allocation3 + $0x30] sm:$0xf]  ;;  %v5664_v42 = vor.u32 %v7500_v29, %v5661_v30  ;;  %v7495_v44 = vld [vmem:[#allocation3 + $0x504] sm:$0xf] }
  0x53   :  { %1494 = vmatpush.bf16.msrb.mxu0 %v5660_v60  ;;  %v5564_v60 = vor.u32 %v7475_v53, %v5561_v54  ;;  %v5481_v41 = vld [vmem:[#allocation3 + $0x3d4] sm:$0xf0]  ;;  %v5007_v46 = vld [vmem:[#allocation3 + $0x8] sm:$0xf]  ;;  %v7453_v49 = vld [vmem:[#allocation3 + $0x3b0] sm:$0xf0] }
  0x54   :  { %1507 = vmatpush.bf16.msrb.mxu1 %v5024_v61  ;;  %v5247_v61 = vld [vmem:[#allocation3 + $0x1e8] sm:$0xf]  ;;  %v5641_v45 = vld [vmem:[#allocation3 + $0x514] sm:$0xf0]  ;;  %v5787_v53 = vld [vmem:[#allocation3 + $0x620] sm:$0xf] }
  0x55   :  { %1520 = vmatpush.bf16.msrb.mxu2 %v5184_v1  ;;  %v7470_v1 = vld [vmem:[#allocation3 + $0x43c] sm:$0xf]  ;;  %v5248_v7 = vor.u32 %v7398_v62, %v5247_v61  ;;  %v7533_v55 = vld [vmem:[#allocation3 + $0x630] sm:$0xf0]  ;;  %v5167_v56 = vld [vmem:[#allocation3 + $0x148] sm:$0xf]  ;;  %v5644_v58 = vor.u32 %v7495_v44, %v5641_v45 }
  0x56   :  { %1533 = vmatpush.bf16.msrb.mxu3 %v5344_v5  ;;  %v5067_v5 = vld [vmem:[#allocation3 + $0x80] sm:$0xf]  ;;  %v5544_v8 = vor.u32 %v7470_v1, %v5541_v2  ;;  %v7378_v57 = vld [vmem:[#allocation3 + $0x158] sm:$0xf0]  ;;  %v5149_v61 = vld [vmem:[#allocation3 + $0x134] sm:$0xf0]  ;;  %v5788_v1 = vor.u32 %v7533_v55, %v5787_v53 }
  0x57   :  { %1495 = vmatpush.bf16.msrb.mxu0 %v5640_v13  ;;  %v5068_v12 = vor.u32 %v7353_v6, %v5067_v5  ;;  %v7465_v13 = vld [vmem:[#allocation3 + $0x414] sm:$0xf]  ;;  %v5168_v2 = vor.u32 %v7378_v57, %v5167_v56  ;;  %v7448_v3 = vld [vmem:[#allocation3 + $0x388] sm:$0xf0]  ;;  %v5607_v4 = vld [vmem:[#allocation3 + $0x4b8] sm:$0xf] }
  0x58   :  { %1508 = vmatpush.bf16.msrb.mxu1 %v5004_v16  ;;  %v5521_v16 = vld [vmem:[#allocation3 + $0x424] sm:$0xf0]  ;;  %v7488_v5 = vld [vmem:[#allocation3 + $0x4c8] sm:$0xf0]  ;;  %v7366_v9 = vld [vmem:[#allocation3 + $0xfc] sm:$0xf] }
  0x59   :  { %1521 = vmatpush.bf16.msrb.mxu2 %v5164_v19  ;;  %v5047_v19 = vld [vmem:[#allocation3 + $0x58] sm:$0xf]  ;;  %v5524_v22 = vor.u32 %v7465_v13, %v5521_v16  ;;  %v5129_v10 = vld [vmem:[#allocation3 + $0x10c] sm:$0xf0]  ;;  %v7443_v17 = vld [vmem:[#allocation3 + $0x360] sm:$0xf0] }
  0x5a   :  { %1534 = vmatpush.bf16.msrb.mxu3 %v5324_v28  ;;  %1496 = vmatmul.bf16.vlgmr.msrb.gmra.mxu0 %v8209_v34  ;;  %v5501_v28 = vld [vmem:[#allocation3 + $0x3fc] sm:$0xf0]  ;;  %v5427_v13 = vld [vmem:[#allocation3 + $0x350] sm:$0xf]  ;;  %v7438_v29 = vld [vmem:[#allocation3 + $0x338] sm:$0xf0] }
  0x5b   :  { %1540 = vmatpush.bf16.msra.mxu0 %v5624_v20  ;;  %1509 = vmatmul.bf16.vlgmr.msrb.gmra.mxu1 %v8191_v14  ;;  %v7348_v20 = vld [vmem:[#allocation3 + $0x68] sm:$0xf0]  ;;  %v5504_v38 = vor.u32 %v7460_v25, %v5501_v28  ;;  %v5587_v18 = vld [vmem:[#allocation3 + $0x490] sm:$0xf]  ;;  %v5428_v25 = vor.u32 %v7443_v17, %v5427_v13  ;;  %v5567_v30 = vld [vmem:[#allocation3 + $0x468] sm:$0xf] }
  0x5c   :  { %1553 = vmatpush.bf16.msra.mxu1 %v5784_v23  ;;  %1522 = vmatmul.bf16.vlgmr.msrb.gmra.mxu2 %v8193_v15  ;;  %v5207_v23 = vld [vmem:[#allocation3 + $0x198] sm:$0xf]  ;;  %v5048_v27 = vor.u32 %v7348_v20, %v5047_v19  ;;  %v7483_v19 = vld [vmem:[#allocation3 + $0x4a0] sm:$0xf0]  ;;  %v5132_v20 = vor.u32 %v7366_v9, %v5129_v10  ;;  %v7433_v44 = vld [vmem:[#allocation3 + $0x310] sm:$0xf0] }
  0x5d   :  { %1566 = vmatpush.bf16.msra.mxu2 %v5148_v24  ;;  %1535 = vmatmul.bf16.vlgmr.msrb.gmra.mxu3 %v8199_v31  ;;  %v7388_v24 = vld [vmem:[#allocation3 + $0x1a8] sm:$0xf0]  ;;  %v5547_v45 = vld [vmem:[#allocation3 + $0x440] sm:$0xf]  ;;  %v5527_v57 = vld [vmem:[#allocation3 + $0x418] sm:$0xf] }
  0x5e   :  { %1579 = vmatpush.bf16.msra.mxu3 %v5308_v35  ;;  %v7343_v35 = vld [vmem:[#allocation3 + $0x40] sm:$0xf0]  ;;  %v5208_v37 = vor.u32 %v7388_v24, %v5207_v23  ;;  %v7361_v23 = vld [vmem:[#allocation3 + $0xd4] sm:$0xf]  ;;  %v5109_v24 = vld [vmem:[#allocation3 + $0xe4] sm:$0xf0] }
  0x5f   :  { %1541 = vmatpush.bf16.msra.mxu0 %v5604_v36  ;;  %v5187_v36 = vld [vmem:[#allocation3 + $0x170] sm:$0xf]  ;;  %v5028_v43 = vor.u32 %v7343_v35, %v5027_v33  ;;  %v7478_v33 = vld [vmem:[#allocation3 + $0x478] sm:$0xf0]  ;;  %v5112_v35 = vor.u32 %v7361_v23, %v5109_v24  ;;  %v7428_v56 = vld [vmem:[#allocation3 + $0x2e8] sm:$0xf0] }
  0x60   :  { %1554 = vmatpush.bf16.msra.mxu1 %v5764_v39  ;;  %v7383_v39 = vld [vmem:[#allocation3 + $0x180] sm:$0xf0]  ;;  %v7341_v10 = vld [vmem:[#allocation3 + $0x34] sm:$0xf]  ;;  %v7418_v17 = vld [vmem:[#allocation3 + $0x298] sm:$0xf0] }
  0x61   :  { %1567 = vmatpush.bf16.msra.mxu2 %v5128_v40  ;;  %v7455_v40 = vld [vmem:[#allocation3 + $0x3c4] sm:$0xf]  ;;  %v5188_v50 = vor.u32 %v7383_v39, %v5187_v36  ;;  %v5727_v36 = vld [vmem:[#allocation3 + $0x5a8] sm:$0xf]  ;;  %v5089_v39 = vld [vmem:[#allocation3 + $0xbc] sm:$0xf0] }
  0x62   :  { %1580 = vmatpush.bf16.msra.mxu3 %v5288_v47  ;;  %v7338_v47 = vld [vmem:[#allocation3 + $0x18] sm:$0xf0]  ;;  %v5484_v54 = vor.u32 %v7455_v40, %v5481_v41  ;;  %v5568_v41 = vor.u32 %v7478_v33, %v5567_v30  ;;  %v7503_v9 = vld [vmem:[#allocation3 + $0x540] sm:$0xf0] }
  0x63   :  { %1542 = vmatpush.bf16.msra.mxu0 %v5584_v48  ;;  %v5467_v48 = vld [vmem:[#allocation3 + $0x3a0] sm:$0xf]  ;;  %v7411_v24 = vld [vmem:[#allocation3 + $0x264] sm:$0xf] }
  0x64   :  { %1555 = vmatpush.bf16.msra.mxu1 %v5744_v51  ;;  %v5627_v51 = vld [vmem:[#allocation3 + $0x4e0] sm:$0xf]  ;;  %v5468_v62 = vor.u32 %v7453_v49, %v5467_v48  ;;  %v7513_v49 = vld [vmem:[#allocation3 + $0x590] sm:$0xf0] }
  0x65   :  { %1568 = vmatpush.bf16.msra.mxu2 %v5108_v52  ;;  %v7493_v52 = vld [vmem:[#allocation3 + $0x4f0] sm:$0xf0]  ;;  %v5707_v48 = vld [vmem:[#allocation3 + $0x580] sm:$0xf] }
  0x66   :  { %1581 = vmatpush.bf16.msra.mxu3 %v5268_v59  ;;  %v5008_v59 = vor.u32 %v7338_v47, %v5007_v46  ;;  %v7473_v46 = vld [vmem:[#allocation3 + $0x450] sm:$0xf0]  ;;  %v5708_v55 = vor.u32 %v7513_v49, %v5707_v48  ;;  %v7486_v48 = vld [vmem:[#allocation3 + $0x4bc] sm:$0xf]  ;;  %v5609_v49 = vld [vmem:[#allocation3 + $0x4cc] sm:$0xf0] }
  0x67   :  { %1543 = vmatpush.bf16.msra.mxu0 %v5564_v60  ;;  %v7371_v60 = vld [vmem:[#allocation3 + $0x124] sm:$0xf]  ;;  %v5548_v53 = vor.u32 %v7473_v46, %v5547_v45  ;;  %v7446_v45 = vld [vmem:[#allocation3 + $0x37c] sm:$0xf] }
  0x68   :  { %1556 = vmatpush.bf16.msra.mxu1 %v5724_v63  ;;  %v5628_v63 = vor.u32 %v7493_v52, %v5627_v51  ;;  %v5152_v6 = vor.u32 %v7371_v60, %v5149_v61  ;;  %v5069_v51 = vld [vmem:[#allocation3 + $0x94] sm:$0xf0]  ;;  %v7508_v61 = vld [vmem:[#allocation3 + $0x568] sm:$0xf0] }
  0x69   :  { %1569 = vmatpush.bf16.msra.mxu2 %v5088_v0  ;;  %v5447_v0 = vld [vmem:[#allocation3 + $0x378] sm:$0xf] }
  0x6a   :  { %1582 = vmatpush.bf16.msra.mxu3 %v5248_v7  ;;  %v5767_v7 = vld [vmem:[#allocation3 + $0x5f8] sm:$0xf] }
  0x6b   :  { %1544 = vmatpush.bf16.msra.mxu0 %v5544_v8  ;;  %v7528_v8 = vld [vmem:[#allocation3 + $0x608] sm:$0xf0]  ;;  %v5687_v60 = vld [vmem:[#allocation3 + $0x558] sm:$0xf] }
  0x6c   :  { %1557 = vmatpush.bf16.msra.mxu1 %v5704_v11  ;;  %v5448_v11 = vor.u32 %v7448_v3, %v5447_v0  ;;  %v5768_v16 = vor.u32 %v7528_v8, %v5767_v7  ;;  %v5688_v3 = vor.u32 %v7508_v61, %v5687_v60  ;;  %v5667_v8 = vld [vmem:[#allocation3 + $0x530] sm:$0xf]  ;;  %v7481_v60 = vld [vmem:[#allocation3 + $0x494] sm:$0xf]  ;;  %v5589_v61 = vld [vmem:[#allocation3 + $0x4a4] sm:$0xf0] }
  0x6d   :  { %1570 = vmatpush.bf16.msra.mxu2 %v5068_v12  ;;  %v5608_v12 = vor.u32 %v7488_v5, %v5607_v4  ;;  %v7423_v4 = vld [vmem:[#allocation3 + $0x2c0] sm:$0xf0]  ;;  %v5507_v5 = vld [vmem:[#allocation3 + $0x3f0] sm:$0xf] }
  0x6e   :  { %1583 = vmatpush.bf16.msra.mxu3 %v5228_v21  ;;  %v5747_v21 = vld [vmem:[#allocation3 + $0x5d0] sm:$0xf] }
  0x6f   :  { %1545 = vmatpush.bf16.msra.mxu0 %v5524_v22  ;;  %v7523_v22 = vld [vmem:[#allocation3 + $0x5e0] sm:$0xf0] }
  0x70   :  { %1558 = vmatpush.bf16.msra.mxu1 %v5684_v26  ;;  %v5588_v26 = vor.u32 %v7483_v19, %v5587_v18  ;;  %v5748_v28 = vor.u32 %v7523_v22, %v5747_v21  ;;  %v5487_v18 = vld [vmem:[#allocation3 + $0x3c8] sm:$0xf]  ;;  %v5668_v19 = vor.u32 %v7503_v9, %v5667_v8  ;;  %v7498_v22 = vld [vmem:[#allocation3 + $0x518] sm:$0xf0]  ;;  %v7476_v8 = vld [vmem:[#allocation3 + $0x46c] sm:$0xf] }
  0x71   :  { %1571 = vmatpush.bf16.msra.mxu2 %v5048_v27  ;;  %v5407_v27 = vld [vmem:[#allocation3 + $0x328] sm:$0xf]  ;;  %v5569_v9 = vld [vmem:[#allocation3 + $0x47c] sm:$0xf0] }
  0x72   :  { %1584 = vmatpush.bf16.msra.mxu3 %v5208_v37  ;;  %v7518_v37 = vld [vmem:[#allocation3 + $0x5b8] sm:$0xf0]  ;;  %v5408_v40 = vor.u32 %v7438_v29, %v5407_v27  ;;  %v5647_v21 = vld [vmem:[#allocation3 + $0x508] sm:$0xf]  ;;  %v5469_v27 = vld [vmem:[#allocation3 + $0x3b4] sm:$0xf0] }
  0x73   :  { %1546 = vmatpush.bf16.msra.mxu0 %v5504_v38  ;;  %v7356_v38 = vld [vmem:[#allocation3 + $0xac] sm:$0xf]  ;;  %v5629_v29 = vld [vmem:[#allocation3 + $0x4f4] sm:$0xf0] }
  0x74   :  { %1559 = vmatpush.bf16.msra.mxu1 %v5664_v42  ;;  %v5387_v42 = vld [vmem:[#allocation3 + $0x300] sm:$0xf]  ;;  %v5092_v47 = vor.u32 %v7356_v38, %v5089_v39  ;;  %v7531_v39 = vld [vmem:[#allocation3 + $0x624] sm:$0xf] }
  0x75   :  { %1572 = vmatpush.bf16.msra.mxu2 %v5028_v43  ;;  %v5728_v43 = vor.u32 %v7518_v37, %v5727_v36  ;;  %v5388_v52 = vor.u32 %v7433_v44, %v5387_v42  ;;  %v5009_v36 = vld [vmem:[#allocation3 + $0x1c] sm:$0xf0]  ;;  %v5648_v37 = vor.u32 %v7498_v22, %v5647_v21  ;;  %v5289_v44 = vld [vmem:[#allocation3 + $0x24c] sm:$0xf0]  ;;  %v5389_v21 = vld [vmem:[#allocation3 + $0x314] sm:$0xf0] }
  0x76   :  { %1585 = vmatpush.bf16.msra.mxu3 %v5188_v50  ;;  %v7351_v50 = vld [vmem:[#allocation3 + $0x84] sm:$0xf] }
  0x77   :  { %1547 = vmatpush.bf16.msra.mxu0 %v5484_v54  ;;  %v5367_v54 = vld [vmem:[#allocation3 + $0x2d8] sm:$0xf]  ;;  %v7471_v22 = vld [vmem:[#allocation3 + $0x444] sm:$0xf] }
  0x78   :  { %1560 = vmatpush.bf16.msra.mxu1 %v5644_v58  ;;  %v7468_v58 = vld [vmem:[#allocation3 + $0x428] sm:$0xf0]  ;;  %v5368_v0 = vor.u32 %v7428_v56, %v5367_v54  ;;  %v7401_v56 = vld [vmem:[#allocation3 + $0x214] sm:$0xf] }
  0x79   :  { %1573 = vmatpush.bf16.msra.mxu2 %v5008_v59  ;;  %v5072_v59 = vor.u32 %v7351_v50, %v5069_v51 }
  0x7a   :  { %1586 = vmatpush.bf16.msra.mxu3 %v5168_v2  ;;  %1548 = vmatmul.bf16.vlgmr.msra.gmra.mxu0 %v8202_v32  ;;  %v5347_v2 = vld [vmem:[#allocation3 + $0x2b0] sm:$0xf] }
  0x7b   :  { %1592 = vmatpush.bf16.msrb.mxu0 %v5468_v62  ;;  %1561 = vmatmul.bf16.vlgmr.msra.gmra.mxu1 %v8209_v34  ;;  %v7346_v62 = vld [vmem:[#allocation3 + $0x5c] sm:$0xf] }
  0x7c   :  { %1605 = vmatpush.bf16.msrb.mxu1 %v5628_v63  ;;  %1574 = vmatmul.bf16.vlgmr.msra.gmra.mxu2 %v8191_v14  ;;  %v5049_v63 = vld [vmem:[#allocation3 + $0x6c] sm:$0xf0] }
  0x7d   :  { %1618 = vmatpush.bf16.msrb.mxu2 %v5788_v1  ;;  %1587 = vmatmul.bf16.vlgmr.msra.gmra.mxu3 %v8193_v15  ;;  %v5528_v1 = vor.u32 %v7468_v58, %v5527_v57  ;;  %v5052_v7 = vor.u32 %v7346_v62, %v5049_v63  ;;  %v5269_v57 = vld [vmem:[#allocation3 + $0x224] sm:$0xf0]  ;;  %v7441_v58 = vld [vmem:[#allocation3 + $0x354] sm:$0xf] }
  0x7e   :  { %1631 = vmatpush.bf16.msrb.mxu3 %v5152_v6  ;;  %v7463_v6 = vld [vmem:[#allocation3 + $0x400] sm:$0xf0]  ;;  %v5272_v63 = vor.u32 %v7401_v56, %v5269_v57 }
  0x7f   :  { %1593 = vmatpush.bf16.msrb.mxu0 %v5448_v11  ;;  %v5029_v11 = vld [vmem:[#allocation3 + $0x44] sm:$0xf0]  ;;  %v5508_v13 = vor.u32 %v7463_v6, %v5507_v5  ;;  %v5249_v5 = vld [vmem:[#allocation3 + $0x1fc] sm:$0xf0]  ;;  %v7436_v6 = vld [vmem:[#allocation3 + $0x32c] sm:$0xf] }
  0x80   :  { %1606 = vmatpush.bf16.msrb.mxu1 %v5608_v12  ;;  %v5348_v12 = vor.u32 %v7423_v4, %v5347_v2  ;;  %v5032_v23 = vor.u32 %v7341_v10, %v5029_v11  ;;  %v7396_v4 = vld [vmem:[#allocation3 + $0x1ec] sm:$0xf] }
  0x81   :  { %1619 = vmatpush.bf16.msrb.mxu2 %v5768_v16  ;;  %v5327_v16 = vld [vmem:[#allocation3 + $0x288] sm:$0xf]  ;;  %v5252_v11 = vor.u32 %v7396_v4, %v5249_v5  ;;  %v7496_v5 = vld [vmem:[#allocation3 + $0x50c] sm:$0xf] }
  0x82   :  { %1632 = vmatpush.bf16.msrb.mxu3 %v5132_v20  ;;  %v7458_v20 = vld [vmem:[#allocation3 + $0x3d8] sm:$0xf0]  ;;  %v5328_v30 = vor.u32 %v7418_v17, %v5327_v16  ;;  %v5572_v17 = vor.u32 %v7476_v8, %v5569_v9  ;;  %v5475_v9 = vld [vmem:[#allocation3 + $0x3a8] sm:$0xf] }
  0x83   :  { %1594 = vmatpush.bf16.msrb.mxu0 %v5428_v25  ;;  %v5309_v25 = vld [vmem:[#allocation3 + $0x274] sm:$0xf0]  ;;  %v5488_v33 = vor.u32 %v7458_v20, %v5487_v18  ;;  %v7391_v18 = vld [vmem:[#allocation3 + $0x1c4] sm:$0xf] }
  0x84   :  { %1607 = vmatpush.bf16.msrb.mxu1 %v5588_v26  ;;  %v7451_v26 = vld [vmem:[#allocation3 + $0x3a4] sm:$0xf]  ;;  %v5312_v38 = vor.u32 %v7411_v24, %v5309_v25 }
  0x85   :  { %1620 = vmatpush.bf16.msrb.mxu2 %v5748_v28  ;;  %v7491_v28 = vld [vmem:[#allocation3 + $0x4e4] sm:$0xf] }
  0x86   :  { %1633 = vmatpush.bf16.msrb.mxu3 %v5112_v35  ;;  %v7336_v35 = vld [vmem:[#allocation3 + $0xc] sm:$0xf]  ;;  %v5632_v42 = vor.u32 %v7491_v28, %v5629_v29  ;;  %v7431_v20 = vld [vmem:[#allocation3 + $0x304] sm:$0xf] }
  0x87   :  { %1595 = vmatpush.bf16.msrb.mxu0 %v5408_v40  ;;  %v5789_v40 = vld [vmem:[#allocation3 + $0x634] sm:$0xf0]  ;;  %v5012_v46 = vor.u32 %v7336_v35, %v5009_v36  ;;  %v5392_v28 = vor.u32 %v7431_v20, %v5389_v21  ;;  %v7426_v35 = vld [vmem:[#allocation3 + $0x2dc] sm:$0xf]  ;;  %v5369_v36 = vld [vmem:[#allocation3 + $0x2ec] sm:$0xf0] }
  0x88   :  { %1608 = vmatpush.bf16.msrb.mxu1 %v5568_v41  ;;  %v5472_v41 = vor.u32 %v7451_v26, %v5469_v27  ;;  %v5792_v50 = vor.u32 %v7531_v39, %v5789_v40  ;;  %v7511_v26 = vld [vmem:[#allocation3 + $0x584] sm:$0xf]  ;;  %v5709_v27 = vld [vmem:[#allocation3 + $0x594] sm:$0xf0]  ;;  %v5295_v20 = vld [vmem:[#allocation3 + $0x240] sm:$0xf] }
  0x89   :  { %1621 = vmatpush.bf16.msrb.mxu2 %v5728_v43  ;;  %v7406_v43 = vld [vmem:[#allocation3 + $0x23c] sm:$0xf]  ;;  %v5712_v39 = vor.u32 %v7511_v26, %v5709_v27  ;;  %v7409_v21 = vld [vmem:[#allocation3 + $0x250] sm:$0xf0]  ;;  %v5615_v27 = vld [vmem:[#allocation3 + $0x4c0] sm:$0xf] }
  0x8a   :  { %1634 = vmatpush.bf16.msrb.mxu3 %v5092_v47  ;;  %v5449_v47 = vld [vmem:[#allocation3 + $0x38c] sm:$0xf0]  ;;  %v5292_v51 = vor.u32 %v7406_v43, %v5289_v44  ;;  %v5372_v43 = vor.u32 %v7426_v35, %v5369_v36  ;;  %v7449_v26 = vld [vmem:[#allocation3 + $0x390] sm:$0xf0]  ;;  %v5275_v35 = vld [vmem:[#allocation3 + $0x218] sm:$0xf] }
  0x8b   :  { %1596 = vmatpush.bf16.msrb.mxu0 %v5388_v52  ;;  %v7526_v52 = vld [vmem:[#allocation3 + $0x5fc] sm:$0xf]  ;;  %v5452_v54 = vor.u32 %v7446_v45, %v5449_v47  ;;  %v7381_v45 = vld [vmem:[#allocation3 + $0x174] sm:$0xf]  ;;  %v7404_v36 = vld [vmem:[#allocation3 + $0x228] sm:$0xf0] }
  0x8c   :  { %1609 = vmatpush.bf16.msrb.mxu1 %v5548_v53  ;;  %v5769_v53 = vld [vmem:[#allocation3 + $0x60c] sm:$0xf0]  ;;  %v7421_v47 = vld [vmem:[#allocation3 + $0x2b4] sm:$0xf] }
  0x8d   :  { %1622 = vmatpush.bf16.msrb.mxu2 %v5708_v55  ;;  %v5612_v55 = vor.u32 %v7486_v48, %v5609_v49  ;;  %v5772_v62 = vor.u32 %v7526_v52, %v5769_v53  ;;  %v5349_v48 = vld [vmem:[#allocation3 + $0x2c4] sm:$0xf0]  ;;  %v7461_v49 = vld [vmem:[#allocation3 + $0x3f4] sm:$0xf] }
  0x8e   :  { %1635 = vmatpush.bf16.msrb.mxu3 %v5072_v59  ;;  %v5429_v59 = vld [vmem:[#allocation3 + $0x364] sm:$0xf0]  ;;  %v7501_v53 = vld [vmem:[#allocation3 + $0x534] sm:$0xf]  ;;  %v5352_v56 = vor.u32 %v7421_v47, %v5349_v48  ;;  %v5255_v47 = vld [vmem:[#allocation3 + $0x1f0] sm:$0xf] }
  0x8f   :  { %1597 = vmatpush.bf16.msrb.mxu0 %v5368_v0  ;;  %v7521_v0 = vld [vmem:[#allocation3 + $0x5d4] sm:$0xf]  ;;  %v5432_v2 = vor.u32 %v7441_v58, %v5429_v59  ;;  %v5169_v58 = vld [vmem:[#allocation3 + $0x15c] sm:$0xf0]  ;;  %v7416_v59 = vld [vmem:[#allocation3 + $0x28c] sm:$0xf] }
  0x90   :  { %1610 = vmatpush.bf16.msrb.mxu1 %v5528_v1  ;;  %v5749_v1 = vld [vmem:[#allocation3 + $0x5e4] sm:$0xf0]  ;;  %v7399_v48 = vld [vmem:[#allocation3 + $0x200] sm:$0xf0] }
  0x91   :  { %1623 = vmatpush.bf16.msrb.mxu2 %v5688_v3  ;;  %v5592_v3 = vor.u32 %v7481_v60, %v5589_v61  ;;  %v5752_v10 = vor.u32 %v7521_v0, %v5749_v1  ;;  %v5329_v60 = vld [vmem:[#allocation3 + $0x29c] sm:$0xf0]  ;;  %v7456_v61 = vld [vmem:[#allocation3 + $0x3cc] sm:$0xf]  ;;  %v7374_v1 = vld [vmem:[#allocation3 + $0x138] sm:$0xf0] }
  0x92   :  { %1636 = vmatpush.bf16.msrb.mxu3 %v5052_v7  ;;  %v5409_v7 = vld [vmem:[#allocation3 + $0x33c] sm:$0xf0] }
  0x93   :  { %1598 = vmatpush.bf16.msrb.mxu0 %v5348_v12  ;;  %v7516_v12 = vld [vmem:[#allocation3 + $0x5ac] sm:$0xf]  ;;  %v5412_v16 = vor.u32 %v7436_v6, %v5409_v7  ;;  %v5649_v6 = vld [vmem:[#allocation3 + $0x51c] sm:$0xf0]  ;;  %v5332_v7 = vor.u32 %v7416_v59, %v5329_v60  ;;  %v5235_v59 = vld [vmem:[#allocation3 + $0x1c8] sm:$0xf] }
  0x94   :  { %1611 = vmatpush.bf16.msrb.mxu1 %v5508_v13  ;;  %v5729_v13 = vld [vmem:[#allocation3 + $0x5bc] sm:$0xf0]  ;;  %v7394_v60 = vld [vmem:[#allocation3 + $0x1d8] sm:$0xf0] }
  0x95   :  { %1624 = vmatpush.bf16.msrb.mxu2 %v5668_v19  ;;  %v5229_v19 = vld [vmem:[#allocation3 + $0x1d4] sm:$0xf0]  ;;  %v5732_v24 = vor.u32 %v7516_v12, %v5729_v13  ;;  %v7454_v12 = vld [vmem:[#allocation3 + $0x3b8] sm:$0xf0]  ;;  %v5635_v13 = vld [vmem:[#allocation3 + $0x4e8] sm:$0xf] }
  0x96   :  { %1637 = vmatpush.bf16.msrb.mxu3 %v5032_v23  ;;  %v5549_v23 = vld [vmem:[#allocation3 + $0x454] sm:$0xf0]  ;;  %v5232_v25 = vor.u32 %v7391_v18, %v5229_v19  ;;  %v5135_v18 = vld [vmem:[#allocation3 + $0x100] sm:$0xf]  ;;  %v7369_v19 = vld [vmem:[#allocation3 + $0x110] sm:$0xf0] }
  0x97   :  { %1599 = vmatpush.bf16.msrb.mxu0 %v5328_v30  ;;  %v5552_v29 = vor.u32 %v7471_v22, %v5549_v23  ;;  %v7386_v30 = vld [vmem:[#allocation3 + $0x19c] sm:$0xf]  ;;  %v5476_v22 = vor.u32 %v7454_v12, %v5475_v9  ;;  %v5455_v23 = vld [vmem:[#allocation3 + $0x380] sm:$0xf] }
  0x98   :  { %1612 = vmatpush.bf16.msrb.mxu1 %v5488_v33  ;;  %v5209_v33 = vld [vmem:[#allocation3 + $0x1ac] sm:$0xf0] }
  0x99   :  { %1625 = vmatpush.bf16.msrb.mxu2 %v5648_v37  ;;  %v7466_v37 = vld [vmem:[#allocation3 + $0x41c] sm:$0xf]  ;;  %v5212_v40 = vor.u32 %v7386_v30, %v5209_v33  ;;  %v5115_v30 = vld [vmem:[#allocation3 + $0xd8] sm:$0xf]  ;;  %v7364_v33 = vld [vmem:[#allocation3 + $0xe8] sm:$0xf0] }
  0x9a   :  { %1638 = vmatpush.bf16.msrb.mxu3 %v5012_v46  ;;  %1600 = vmatmul.bf16.vlgmr.msrb.gmra.mxu0 %v8199_v31  ;;  %v5189_v46 = vld [vmem:[#allocation3 + $0x184] sm:$0xf0] }
  0x9b   :  { %1644 = vmatpush.bf16.msra.mxu0 %v5312_v38  ;;  %1613 = vmatmul.bf16.vlgmr.msrb.gmra.mxu1 %v8202_v32  ;;  %v5529_v38 = vld [vmem:[#allocation3 + $0x42c] sm:$0xf0]  ;;  %v5192_v52 = vor.u32 %v7381_v45, %v5189_v46  ;;  %v7359_v46 = vld [vmem:[#allocation3 + $0xc0] sm:$0xf0] }
  0x9c   :  { %1657 = vmatpush.bf16.msra.mxu1 %v5472_v41  ;;  %1626 = vmatmul.bf16.vlgmr.msrb.gmra.mxu2 %v8209_v34  ;;  %v7506_v41 = vld [vmem:[#allocation3 + $0x55c] sm:$0xf]  ;;  %v5532_v44 = vor.u32 %v7466_v37, %v5529_v38  ;;  %v5456_v37 = vor.u32 %v7449_v26, %v5455_v23  ;;  %v5435_v38 = vld [vmem:[#allocation3 + $0x358] sm:$0xf]  ;;  %v5095_v45 = vld [vmem:[#allocation3 + $0xb0] sm:$0xf] }
  0x9d   :  { %1670 = vmatpush.bf16.msra.mxu2 %v5632_v42  ;;  %1639 = vmatmul.bf16.vlgmr.msrb.gmra.mxu3 %v8191_v14  ;;  %v5689_v42 = vld [vmem:[#allocation3 + $0x56c] sm:$0xf0]  ;;  %v5195_v23 = vld [vmem:[#allocation3 + $0x178] sm:$0xf] }
  0x9e   :  { %1683 = vmatpush.bf16.msra.mxu3 %v5792_v50  ;;  %v5509_v50 = vld [vmem:[#allocation3 + $0x404] sm:$0xf0]  ;;  %v5355_v26 = vld [vmem:[#allocation3 + $0x2b8] sm:$0xf] }
  0x9f   :  { %1645 = vmatpush.bf16.msra.mxu0 %v5292_v51  ;;  %v5692_v51 = vor.u32 %v7506_v41, %v5689_v42  ;;  %v5512_v57 = vor.u32 %v7461_v49, %v5509_v50  ;;  %v7444_v41 = vld [vmem:[#allocation3 + $0x368] sm:$0xf0]  ;;  %v5595_v42 = vld [vmem:[#allocation3 + $0x498] sm:$0xf]  ;;  %v5415_v50 = vld [vmem:[#allocation3 + $0x330] sm:$0xf] }
  0xa0   :  { %1658 = vmatpush.bf16.msra.mxu1 %v5452_v54  ;;  %v5669_v54 = vld [vmem:[#allocation3 + $0x544] sm:$0xf0]  ;;  %v5436_v49 = vor.u32 %v7444_v41, %v5435_v38  ;;  %v5175_v38 = vld [vmem:[#allocation3 + $0x150] sm:$0xf]  ;;  %v7534_v41 = vld [vmem:[#allocation3 + $0x638] sm:$0xf0] }
  0xa1   :  { %1671 = vmatpush.bf16.msra.mxu2 %v5612_v55  ;;  %v7376_v55 = vld [vmem:[#allocation3 + $0x14c] sm:$0xf]  ;;  %v5672_v0 = vor.u32 %v7501_v53, %v5669_v54  ;;  %v7439_v53 = vld [vmem:[#allocation3 + $0x340] sm:$0xf0]  ;;  %v5575_v54 = vld [vmem:[#allocation3 + $0x470] sm:$0xf] }
  0xa2   :  { %1684 = vmatpush.bf16.msra.mxu3 %v5772_v62  ;;  %v5489_v62 = vld [vmem:[#allocation3 + $0x3dc] sm:$0xf0]  ;;  %v5172_v4 = vor.u32 %v7376_v55, %v5169_v58  ;;  %v7479_v55 = vld [vmem:[#allocation3 + $0x480] sm:$0xf0]  ;;  %v7354_v58 = vld [vmem:[#allocation3 + $0x98] sm:$0xf0] }
  0xa3   :  { %1646 = vmatpush.bf16.msra.mxu0 %v5272_v63  ;;  %v5155_v63 = vld [vmem:[#allocation3 + $0x128] sm:$0xf]  ;;  %v5492_v8 = vor.u32 %v7456_v61, %v5489_v62  ;;  %v5416_v61 = vor.u32 %v7439_v53, %v5415_v50  ;;  %v7566_v53 = vld [vmem:[#allocation6 + $0xf4] sm:$0xf0] }
  0xa4   :  { %1659 = vmatpush.bf16.msra.mxu1 %v5432_v2  ;;  %v5315_v2 = vld [vmem:[#allocation3 + $0x268] sm:$0xf] }
  0xa5   :  { %1672 = vmatpush.bf16.msra.mxu2 %v5592_v3  ;;  %v7414_v3 = vld [vmem:[#allocation3 + $0x278] sm:$0xf0]  ;;  %v5395_v62 = vld [vmem:[#allocation3 + $0x308] sm:$0xf] }
  0xa6   :  { %1685 = vmatpush.bf16.msra.mxu3 %v5752_v10  ;;  %v5156_v10 = vor.u32 %v7374_v1, %v5155_v63  ;;  %v5576_v63 = vor.u32 %v7479_v55, %v5575_v54  ;;  %v7434_v1 = vld [vmem:[#allocation3 + $0x318] sm:$0xf0]  ;;  %v5495_v54 = vld [vmem:[#allocation3 + $0x3d0] sm:$0xf]  ;;  %v7459_v55 = vld [vmem:[#allocation3 + $0x3e0] sm:$0xf0] }
  0xa7   :  { %1647 = vmatpush.bf16.msra.mxu0 %v5252_v11  ;;  %v5316_v11 = vor.u32 %v7414_v3, %v5315_v2  ;;  %v5555_v2 = vld [vmem:[#allocation3 + $0x448] sm:$0xf]  ;;  %v7474_v3 = vld [vmem:[#allocation3 + $0x458] sm:$0xf0]  ;;  %v5396_v9 = vor.u32 %v7434_v1, %v5395_v62  ;;  %v5847_v62 = vld [vmem:[#allocation6 + $0x60] sm:$0xf] }
  0xa8   :  { %1660 = vmatpush.bf16.msra.mxu1 %v5412_v16  ;;  %v7494_v16 = vld [vmem:[#allocation3 + $0x4f8] sm:$0xf0] }
  0xa9   :  { %1673 = vmatpush.bf16.msra.mxu2 %v5572_v17  ;;  %v5652_v17 = vor.u32 %v7496_v5, %v5649_v6  ;;  %v5055_v5 = vld [vmem:[#allocation3 + $0x60] sm:$0xf]  ;;  %v7349_v6 = vld [vmem:[#allocation3 + $0x70] sm:$0xf0] }
  0xaa   :  { %1686 = vmatpush.bf16.msra.mxu3 %v5732_v24  ;;  %v5636_v24 = vor.u32 %v7494_v16, %v5635_v13  ;;  %v5056_v12 = vor.u32 %v7349_v6, %v5055_v5  ;;  %v7429_v13 = vld [vmem:[#allocation3 + $0x2f0] sm:$0xf0]  ;;  %v8238_v1 = vld [vmem:[%s8467_s2] sm:$0x1f]  ;;  %v7564_v6 = vld [vmem:[#allocation6 + $0xe4] sm:$0xf0] }
  0xab   :  { %1648 = vmatpush.bf16.msra.mxu0 %v5232_v25  ;;  %v5136_v25 = vor.u32 %v7369_v19, %v5135_v18  ;;  %v7469_v18 = vld [vmem:[#allocation3 + $0x430] sm:$0xf0]  ;;  %v5911_v5 = vld [vmem:[#allocation6 + $0xe0] sm:$0xf] }
  0xac   :  { %1661 = vmatpush.bf16.msra.mxu1 %v5392_v28  ;;  %v7489_v28 = vld [vmem:[#allocation3 + $0x4d0] sm:$0xf0] }
  0xad   :  { %1674 = vmatpush.bf16.msra.mxu2 %v5552_v29  ;;  %v5296_v29 = vor.u32 %v7409_v21, %v5295_v20  ;;  %v5035_v20 = vld [vmem:[#allocation3 + $0x38] sm:$0xf]  ;;  %v7344_v21 = vld [vmem:[#allocation3 + $0x48] sm:$0xf0] }
  0xae   :  { %1687 = vmatpush.bf16.msra.mxu3 %v5712_v39  ;;  %v5616_v39 = vor.u32 %v7489_v28, %v5615_v27  ;;  %v5036_v28 = vor.u32 %v7344_v21, %v5035_v20  ;;  %v5903_v21 = vld [vmem:[#allocation6 + $0xd0] sm:$0xf] }
  0xaf   :  { %1649 = vmatpush.bf16.msra.mxu0 %v5212_v40  ;;  %v5116_v40 = vor.u32 %v7364_v33, %v5115_v30  ;;  %v5515_v30 = vld [vmem:[#allocation3 + $0x3f8] sm:$0xf]  ;;  %v7464_v33 = vld [vmem:[#allocation3 + $0x408] sm:$0xf0] }
  0xb0   :  { %1662 = vmatpush.bf16.msra.mxu1 %v5372_v43  ;;  %v7484_v43 = vld [vmem:[#allocation3 + $0x4a8] sm:$0xf0] }
  0xb1   :  { %1675 = vmatpush.bf16.msra.mxu2 %v5532_v44  ;;  %v5276_v44 = vor.u32 %v7404_v36, %v5275_v35  ;;  %v5015_v36 = vld [vmem:[#allocation3 + $0x10] sm:$0xf] }
  0xb2   :  { %1688 = vmatpush.bf16.msra.mxu3 %v5692_v51  ;;  %v5596_v51 = vor.u32 %v7484_v43, %v5595_v42  ;;  %v5855_v43 = vld [vmem:[#allocation6 + $0x70] sm:$0xf] }
  0xb3   :  { %1650 = vmatpush.bf16.msra.mxu0 %v5192_v52  ;;  %v5096_v52 = vor.u32 %v7359_v46, %v5095_v45  ;;  %v5516_v45 = vor.u32 %v7464_v33, %v5515_v30 }
  0xb4   :  { %1663 = vmatpush.bf16.msra.mxu1 %v5352_v56  ;;  %v5256_v56 = vor.u32 %v7399_v48, %v5255_v47  ;;  %v5335_v47 = vld [vmem:[#allocation3 + $0x290] sm:$0xf]  ;;  %v7419_v48 = vld [vmem:[#allocation3 + $0x2a0] sm:$0xf0] }
  0xb5   :  { %1676 = vmatpush.bf16.msra.mxu2 %v5512_v57  ;;  %v5075_v57 = vld [vmem:[#allocation3 + $0x88] sm:$0xf] }
  0xb6   :  { %1689 = vmatpush.bf16.msra.mxu3 %v5672_v0  ;;  %v5076_v0 = vor.u32 %v7354_v58, %v5075_v57  ;;  %v5775_v58 = vld [vmem:[#allocation3 + $0x600] sm:$0xf] }
  0xb7   :  { %1651 = vmatpush.bf16.msra.mxu0 %v5172_v4  ;;  %v5236_v4 = vor.u32 %v7394_v60, %v5235_v59  ;;  %v7529_v59 = vld [vmem:[#allocation3 + $0x610] sm:$0xf0] }
  0xb8   :  { %1664 = vmatpush.bf16.msra.mxu1 %v5332_v7  ;;  %v5215_v7 = vld [vmem:[#allocation3 + $0x1a0] sm:$0xf] }
  0xb9   :  { %1677 = vmatpush.bf16.msra.mxu2 %v5492_v8  ;;  %v7389_v8 = vld [vmem:[#allocation3 + $0x1b0] sm:$0xf0] }
  0xba   :  { %1690 = vmatpush.bf16.msra.mxu3 %v5652_v17  ;;  %1652 = vmatmul.bf16.vlgmr.msra.gmra.mxu0 %v8193_v15  ;;  %v5535_v17 = vld [vmem:[#allocation3 + $0x420] sm:$0xf]  ;;  %v5216_v19 = vor.u32 %v7389_v8, %v5215_v7  ;;  %v5983_v7 = vld [vmem:[#allocation6 + $0x170] sm:$0xf] }
  0xbb   :  { %1696 = vmatpush.bf16.msrb.mxu0 %v5156_v10  ;;  %1665 = vmatmul.bf16.vlgmr.msra.gmra.mxu1 %v8199_v31  ;;  %v5375_v10 = vld [vmem:[#allocation3 + $0x2e0] sm:$0xf]  ;;  %v5536_v27 = vor.u32 %v7469_v18, %v5535_v17  ;;  %v7546_v17 = vld [vmem:[#allocation6 + $0x54] sm:$0xf0]  ;;  %v5912_v18 = vor.u32 %v7564_v6, %v5911_v5 }
  0xbc   :  { %1709 = vmatpush.bf16.msrb.mxu1 %v5316_v11  ;;  %1678 = vmatmul.bf16.vlgmr.msra.gmra.mxu2 %v8202_v32  ;;  %v5556_v11 = vor.u32 %v7474_v3, %v5555_v2  ;;  %v5496_v3 = vor.u32 %v7459_v55, %v5495_v54  ;;  %v5815_v55 = vld [vmem:[#allocation6 + $0x20] sm:$0xf] }
  0xbd   :  { %1722 = vmatpush.bf16.msrb.mxu2 %v5476_v22  ;;  %1691 = vmatmul.bf16.vlgmr.msra.gmra.mxu3 %v8209_v34  ;;  %v8227_v16 = vpop.f32.mrf.mxu0 }
  0xbe   :  { %1735 = vmatpush.bf16.msrb.mxu3 %v5636_v24  ;;  %v8229_v22 = vpop.f32.mrf.mxu1  ;;  %v7384_v24 = vld [vmem:[#allocation3 + $0x188] sm:$0xf0] }
  0xbf   :  { %1697 = vmatpush.bf16.msrb.mxu0 %v5136_v25  ;;  %v5376_v25 = vor.u32 %v7429_v13, %v5375_v10  ;;  %v5196_v35 = vor.u32 %v7384_v24, %v5195_v23  ;;  %v7524_v10 = vld [vmem:[#allocation3 + $0x5e8] sm:$0xf0]  ;;  %v5839_v13 = vld [vmem:[#allocation6 + $0x50] sm:$0xf]  ;;  %v7562_v23 = vld [vmem:[#allocation6 + $0xd4] sm:$0xf0] }
  0xc0   :  { %1710 = vmatpush.bf16.msrb.mxu1 %v5296_v29  ;;  %v7424_v29 = vld [vmem:[#allocation3 + $0x2c8] sm:$0xf0]  ;;  %v5840_v24 = vor.u32 %v7546_v17, %v5839_v13  ;;  %v5904_v33 = vor.u32 %v7562_v23, %v5903_v21  ;;  %v5871_v21 = vld [vmem:[#allocation6 + $0x90] sm:$0xf]  ;;  %v7554_v23 = vld [vmem:[#allocation6 + $0x94] sm:$0xf0] }
  0xc1   :  { %1723 = vmatpush.bf16.msrb.mxu2 %v5456_v37  ;;  %v7339_v37 = vld [vmem:[#allocation3 + $0x20] sm:$0xf0]  ;;  %v5356_v42 = vor.u32 %v7424_v29, %v5355_v26  ;;  %v7544_v29 = vld [vmem:[#allocation6 + $0x44] sm:$0xf0] }
  0xc2   :  { %1736 = vmatpush.bf16.msrb.mxu3 %v5616_v39  ;;  %v7379_v39 = vld [vmem:[#allocation3 + $0x160] sm:$0xf0]  ;;  %v5016_v46 = vor.u32 %v7339_v37, %v5015_v36  ;;  %v7560_v36 = vld [vmem:[#allocation6 + $0xc4] sm:$0xf0]  ;;  %v5975_v37 = vld [vmem:[#allocation6 + $0x160] sm:$0xf] }
  0xc3   :  { %1698 = vmatpush.bf16.msrb.mxu0 %v5116_v40  ;;  %v5795_v40 = vld [vmem:[#allocation3 + $0x628] sm:$0xf]  ;;  %v7519_v26 = vld [vmem:[#allocation3 + $0x5c0] sm:$0xf0] }
  0xc4   :  { %1711 = vmatpush.bf16.msrb.mxu1 %v5276_v44  ;;  %v7550_v44 = vld [vmem:[#allocation6 + $0x74] sm:$0xf0] }
  0xc5   :  { %1724 = vmatpush.bf16.msrb.mxu2 %v5436_v49  ;;  %v5919_v49 = vld [vmem:[#allocation6 + $0xf0] sm:$0xf]  ;;  %v1447_v50 = vpop.f32.mrf.mxu0  ;;  %v5856_v57 = vor.u32 %v7550_v44, %v5855_v43 }
  0xc6   :  { %1737 = vmatpush.bf16.msrb.mxu3 %v5596_v51  ;;  %v5176_v51 = vor.u32 %v7379_v39, %v5175_v38  ;;  %v8231_v60 = vpop.f32.mrf.mxu3  ;;  %v5920_v2 = vor.u32 %v7566_v53, %v5919_v49  ;;  %v7580_v38 = vld [vmem:[#allocation6 + $0x164] sm:$0xf0]  ;;  %v5823_v43 = vld [vmem:[#allocation6 + $0x30] sm:$0xf]  ;;  %v7578_v50 = vld [vmem:[#allocation6 + $0x154] sm:$0xf0] }
  0xc7   :  { %1699 = vmatpush.bf16.msrb.mxu0 %v5096_v52  ;;  %v5796_v52 = vor.u32 %v7534_v41, %v5795_v40  ;;  %v7514_v40 = vld [vmem:[#allocation3 + $0x598] sm:$0xf0]  ;;  %v5967_v49 = vld [vmem:[#allocation6 + $0x150] sm:$0xf]  ;;  %v7509_v53 = vld [vmem:[#allocation3 + $0x570] sm:$0xf0] }
  0xc8   :  { %1712 = vmatpush.bf16.msrb.mxu1 %v5256_v56  ;;  %v1460_v56 = vpop.f32.mrf.mxu1  ;;  %v5968_v54 = vor.u32 %v7578_v50, %v5967_v49  ;;  %v7545_v50 = vld [vmem:[#allocation6 + $0x54] sm:$0xf] }
  0xc9   :  { %1725 = vmatpush.bf16.msrb.mxu2 %v5416_v61  ;;  %v5336_v61 = vor.u32 %v7419_v48, %v5335_v47  ;;  %v7558_v48 = vld [vmem:[#allocation6 + $0xb4] sm:$0xf0]  ;;  %v7540_v56 = vld [vmem:[#allocation6 + $0x24] sm:$0xf0] }
  0xca   :  { %1738 = vmatpush.bf16.msrb.mxu3 %v5576_v63  ;;  %v7548_v63 = vld [vmem:[#allocation6 + $0x64] sm:$0xf0] }
  0xcb   :  { %1700 = vmatpush.bf16.msrb.mxu0 %v5076_v0  ;;  %v8233_v0 = vpop.f32.mrf.mxu2  ;;  %v5848_v8 = vor.u32 %v7548_v63, %v5847_v62  ;;  %v7556_v62 = vld [vmem:[#allocation6 + $0xa4] sm:$0xf0]  ;;  %v5959_v63 = vld [vmem:[#allocation6 + $0x140] sm:$0xf] }
  0xcc   :  { %1713 = vmatpush.bf16.msrb.mxu1 %v5236_v4  ;;  %v5776_v4 = vor.u32 %v7529_v59, %v5775_v58  ;;  %v5675_v58 = vld [vmem:[#allocation3 + $0x538] sm:$0xf]  ;;  %v5879_v59 = vld [vmem:[#allocation6 + $0xa0] sm:$0xf] }
  0xcd   :  { %1726 = vmatpush.bf16.msrb.mxu2 %v5396_v9  ;;  %v5755_v9 = vld [vmem:[#allocation3 + $0x5d8] sm:$0xf]  ;;  %v5880_v13 = vor.u32 %v7556_v62, %v5879_v59 }
  0xce   :  { %1739 = vmatpush.bf16.msrb.mxu3 %v5556_v11  ;;  %v7582_v11 = vld [vmem:[#allocation6 + $0x174] sm:$0xf0]  ;;  %v5756_v20 = vor.u32 %v7524_v10, %v5755_v9  ;;  %v5807_v10 = vld [vmem:[#allocation6 + $0x10] sm:$0xf] }
  0xcf   :  { %1701 = vmatpush.bf16.msrb.mxu0 %v5056_v12  ;;  %v368_v12 = vperm.slane %v8238_v1, 0 }
  0xd0   :  { %1714 = vmatpush.bf16.msrb.mxu1 %v5216_v19  ;;  %v5984_v19 = vor.u32 %v7582_v11, %v5983_v7  ;;  %v7538_v11 = vld [vmem:[#allocation6 + $0x14] sm:$0xf0] }
  0xd1   :  { %1727 = vmatpush.bf16.msrb.mxu2 %v5376_v25  ;;  %v5735_v25 = vld [vmem:[#allocation3 + $0x5b0] sm:$0xf] }
  0xd2   :  { %1740 = vmatpush.bf16.msrb.mxu3 %v5536_v27  ;;  %v1486_v27 = vpop.f32.mrf.mxu3 }
  0xd3   :  { %1702 = vmatpush.bf16.msrb.mxu0 %v5036_v28  ;;  %v5831_v28 = vld [vmem:[#allocation6 + $0x40] sm:$0xf]  ;;  %v1473_v30 = vpop.f32.mrf.mxu2  ;;  %v7572_v27 = vld [vmem:[#allocation6 + $0x124] sm:$0xf0] }
  0xd4   :  { %1715 = vmatpush.bf16.msrb.mxu1 %v5196_v35  ;;  %v5895_v35 = vld [vmem:[#allocation6 + $0xc0] sm:$0xf]  ;;  %v5832_v39 = vor.u32 %v7544_v29, %v5831_v28  ;;  %v7536_v28 = vld [vmem:[#allocation6 + $0x4] sm:$0xf0]  ;;  %v5872_v29 = vor.u32 %v7554_v23, %v5871_v21  ;;  %v6031_v21 = vld [vmem:[#allocation6 + $0x1d0] sm:$0xf] }
  0xd5   :  { %1728 = vmatpush.bf16.msrb.mxu2 %v5356_v42  ;;  %v7594_v23 = vld [vmem:[#allocation6 + $0x1d4] sm:$0xf0] }
  0xd6   :  { %1741 = vmatpush.bf16.msrb.mxu3 %v5516_v45  ;;  %v5896_v45 = vor.u32 %v7560_v36, %v5895_v35  ;;  %v7552_v36 = vld [vmem:[#allocation6 + $0x84] sm:$0xf0] }
  0xd7   :  { %1703 = vmatpush.bf16.msrb.mxu0 %v5016_v46  ;;  %v1497_v41 = vpop.f32.mrf.mxu0  ;;  %v5887_v46 = vld [vmem:[#allocation6 + $0xb0] sm:$0xf] }
  0xd8   :  { %1716 = vmatpush.bf16.msrb.mxu1 %v5176_v51  ;;  %v8247_v44 = vpop.f32.mrf.mxu1 }
  0xd9   :  { %1729 = vmatpush.bf16.msrb.mxu2 %v5336_v61 }
  0xda   :  { %1704 = vmatmul.bf16.vlgmr.msrb.gmra.mxu0 %v8191_v14  ;;  %1742 = vmatpush.bf16.msrb.mxu3 %v5496_v3  ;;  %v1446_v14 = vadd.f32 %v8227_v16, %v368_v12  ;;  %v5976_v16 = vor.u32 %v7580_v38, %v5975_v37  ;;  %v5816_v3 = vor.u32 %v7540_v56, %v5815_v55  ;;  %v7549_v38 = vld [vmem:[#allocation6 + $0x74] sm:$0xf]  ;;  %v5921_v56 = vld [vmem:[#allocation6 + $0xf8] sm:$0xf0] }
  0xdb   :  { %1748 = vmatpush.bf16.msra.mxu0 %v5796_v52  ;;  %1717 = vmatmul.bf16.vlgmr.msrb.gmra.mxu1 %v8193_v15  ;;  %v5736_v15 = vor.u32 %v7519_v26, %v5735_v25  ;;  %v5695_v52 = vld [vmem:[#allocation3 + $0x560] sm:$0xf]  ;;  %v7499_v25 = vld [vmem:[#allocation3 + $0x520] sm:$0xf0] }
  0xdc   :  { %2257 = vmatpush.bf16.msra.mxu1 %v5856_v57  ;;  %1730 = vmatmul.bf16.vlgmr.msrb.gmra.mxu2 %v8199_v31  ;;  %v5715_v31 = vld [vmem:[#allocation3 + $0x588] sm:$0xf]  ;;  %v1459_v42 = vadd.f32 %v8229_v22, %v1446_v14  ;;  %v5888_v57 = vor.u32 %v7558_v48, %v5887_v46  ;;  %v5696_v61 = vor.u32 %v7509_v53, %v5695_v52  ;;  %v5943_v26 = vld [vmem:[#allocation6 + $0x120] sm:$0xf]  ;;  %v7547_v46 = vld [vmem:[#allocation6 + $0x64] sm:$0xf] }
  0xdd   :  { %2270 = vmatpush.bf16.msra.mxu2 %v5920_v2  ;;  %1743 = vmatmul.bf16.vlgmr.msrb.gmra.mxu3 %v8202_v32  ;;  %v7542_v32 = vld [vmem:[#allocation6 + $0x34] sm:$0xf0]  ;;  %v5716_v47 = vor.u32 %v7514_v40, %v5715_v31  ;;  %v7576_v2 = vld [vmem:[#allocation6 + $0x144] sm:$0xf0]  ;;  %v5799_v14 = vld [vmem:[#allocation6] sm:$0xf]  ;;  %v5944_v30 = vor.u32 %v7572_v27, %v5943_v26 }
  0xde   :  { %2283 = vmatpush.bf16.msra.mxu3 %v5984_v19  ;;  %v5824_v51 = vor.u32 %v7542_v32, %v5823_v43  ;;  %v1472_v22 = vadd.f32 %v8233_v0, %v1459_v42  ;;  %v5960_v7 = vor.u32 %v7576_v2, %v5959_v63  ;;  %v7574_v0 = vld [vmem:[#allocation6 + $0x134] sm:$0xf0]  ;;  %v5800_v37 = vor.u32 %v7536_v28, %v5799_v14  ;;  %v7543_v63 = vld [vmem:[#allocation6 + $0x44] sm:$0xf]  ;;  %v5833_v2 = vld [vmem:[#allocation6 + $0x48] sm:$0xf0] }
  0xdf   :  { %1749 = vmatpush.bf16.msra.mxu0 %v5776_v4  ;;  %v7504_v4 = vld [vmem:[#allocation3 + $0x548] sm:$0xf0]  ;;  %v1499_v5 = vpop.f32.mrf.mxu0  ;;  %v1523_v6 = vpop.f32.mrf.mxu2  ;;  %v7559_v27 = vld [vmem:[#allocation6 + $0xc4] sm:$0xf] }
  0xe0   :  { %2258 = vmatpush.bf16.msra.mxu1 %v5848_v8  ;;  %v5951_v8 = vld [vmem:[#allocation6 + $0x130] sm:$0xf]  ;;  %v1485_v9 = vadd.f32 %v8231_v60, %v1472_v22  ;;  %v1512_v12 = vpop.f32.mrf.mxu1  ;;  %v8251_v17 = vpop.f32.mrf.mxu3  ;;  %v5676_v19 = vor.u32 %v7504_v4, %v5675_v58  ;;  %v7565_v22 = vld [vmem:[#allocation6 + $0xf4] sm:$0xf]  ;;  %v7598_v58 = vld [vmem:[#allocation6 + $0x1f4] sm:$0xf0] }
  0xe1   :  { %2271 = vmatpush.bf16.msra.mxu2 %v5912_v18  ;;  %v5952_v18 = vor.u32 %v7574_v0, %v5951_v8  ;;  %v5924_v59 = vor.u32 %v7565_v22, %v5921_v56  ;;  %v5913_v4 = vld [vmem:[#allocation6 + $0xe8] sm:$0xf0]  ;;  %v7596_v8 = vld [vmem:[#allocation6 + $0x1e4] sm:$0xf0]  ;;  %v7561_v12 = vld [vmem:[#allocation6 + $0xd4] sm:$0xf] }
  0xe2   :  { %2284 = vmatpush.bf16.msra.mxu3 %v5976_v16  ;;  %v1498_v60 = vadd.f32 %v1497_v41, %v1485_v9  ;;  %v5935_v16 = vld [vmem:[#allocation6 + $0x110] sm:$0xf]  ;;  %v7570_v41 = vld [vmem:[#allocation6 + $0x114] sm:$0xf0]  ;;  %v7539_v28 = vld [vmem:[#allocation6 + $0x24] sm:$0xf] }
  0xe3   :  { %1750 = vmatpush.bf16.msra.mxu0 %v5756_v20  ;;  %v5655_v20 = vld [vmem:[#allocation3 + $0x510] sm:$0xf]  ;;  %v5936_v48 = vor.u32 %v7570_v41, %v5935_v16  ;;  %v5809_v16 = vld [vmem:[#allocation6 + $0x18] sm:$0xf0]  ;;  %v7557_v41 = vld [vmem:[#allocation6 + $0xb4] sm:$0xf] }
  0xe4   :  { %2259 = vmatpush.bf16.msra.mxu1 %v5840_v24  ;;  %v5808_v24 = vor.u32 %v7538_v11, %v5807_v10  ;;  %v5656_v35 = vor.u32 %v7499_v25, %v5655_v20  ;;  %v1761_v40 = vmax.f32 %v1498_v60, 0.0  ;;  %v5836_v10 = vor.u32 %v7543_v63, %v5833_v2  ;;  %v5897_v60 = vld [vmem:[#allocation6 + $0xc8] sm:$0xf0]  ;;  %v7553_v56 = vld [vmem:[#allocation6 + $0x94] sm:$0xf] }
  0xe5   :  { %2272 = vmatpush.bf16.msra.mxu2 %v5904_v33  ;;  %v369_v33 = vperm.slane %v8238_v1, 1  ;;  %v6032_v25 = vor.u32 %v7594_v23, %v6031_v21 }
  0xe6   :  { %2285 = vmatpush.bf16.msra.mxu3 %v5968_v54  ;;  %v8255_v49 = vpack.c.bf16 %v1761_v40, %v1761_v40  ;;  %v5927_v54 = vld [vmem:[#allocation6 + $0x100] sm:$0xf] }
  0xe7   :  { %1751 = vmatpush.bf16.msra.mxu0 %v5736_v15  ;;  %v5863_v15 = vld [vmem:[#allocation6 + $0x80] sm:$0xf]  ;;  %v1525_v31 = vpop.f32.mrf.mxu2  ;;  %v1511_v32 = vadd.f32 %v8247_v44, %v369_v33  ;;  %v7568_v44 = vld [vmem:[#allocation6 + $0x104] sm:$0xf0]  ;;  %v5900_v33 = vor.u32 %v7559_v27, %v5897_v60 }
  0xe8   :  { %2260 = vmatpush.bf16.msra.mxu1 %v5832_v39  ;;  %v5857_v39 = vld [vmem:[#allocation6 + $0x78] sm:$0xf0]  ;;  %v5864_v42 = vor.u32 %v7552_v36, %v5863_v15  ;;  %v1538_v43 = vpop.f32.mrf.mxu3  ;;  %v5928_v55 = vor.u32 %v7568_v44, %v5927_v54  ;;  %v6023_v15 = vld [vmem:[#allocation6 + $0x1c0] sm:$0xf]  ;;  %v7592_v36 = vld [vmem:[#allocation6 + $0x1c4] sm:$0xf0] }
  0xe9   :  { %2273 = vmatpush.bf16.msra.mxu2 %v5896_v45  ;;  %v5860_v45 = vor.u32 %v7549_v38, %v5857_v39  ;;  %v1524_v52 = vadd.f32 %v1523_v6, %v1511_v32  ;;  %v6024_v31 = vor.u32 %v7592_v36, %v6023_v15  ;;  %v6015_v32 = vld [vmem:[#allocation6 + $0x1b0] sm:$0xf]  ;;  %v5801_v54 = vld [vmem:[#allocation6 + $0x8] sm:$0xf0] }
  0xea   :  { %2286 = vmatpush.bf16.msra.mxu3 %v5960_v7  ;;  %v6039_v7 = vld [vmem:[#allocation6 + $0x1e0] sm:$0xf] }
  0xeb   :  { %1752 = vmatpush.bf16.msra.mxu0 %v5716_v47  ;;  %v5849_v47 = vld [vmem:[#allocation6 + $0x68] sm:$0xf0]  ;;  %v6040_v11 = vor.u32 %v7596_v8, %v6039_v7 }
  0xec   :  { %2261 = vmatpush.bf16.msra.mxu1 %v5824_v51  ;;  %v5841_v51 = vld [vmem:[#allocation6 + $0x58] sm:$0xf0]  ;;  %v5852_v53 = vor.u32 %v7547_v46, %v5849_v47  ;;  %v7555_v46 = vld [vmem:[#allocation6 + $0xa4] sm:$0xf] }
  0xed   :  { %2274 = vmatpush.bf16.msra.mxu2 %v5888_v57  ;;  %v6047_v57 = vld [vmem:[#allocation6 + $0x1f0] sm:$0xf]  ;;  %v5844_v62 = vor.u32 %v7545_v50, %v5841_v51  ;;  %v6007_v50 = vld [vmem:[#allocation6 + $0x1a0] sm:$0xf]  ;;  %v7588_v51 = vld [vmem:[#allocation6 + $0x1a4] sm:$0xf0] }
  0xee   :  { %2287 = vmatpush.bf16.msra.mxu3 %v5952_v18  ;;  %v7541_v18 = vld [vmem:[#allocation6 + $0x34] sm:$0xf] }
  0xef   :  { %1753 = vmatpush.bf16.msra.mxu0 %v5696_v61  ;;  %v6048_v61 = vor.u32 %v7598_v58, %v6047_v57  ;;  %v5873_v57 = vld [vmem:[#allocation6 + $0x98] sm:$0xf0]  ;;  %v5999_v58 = vld [vmem:[#allocation6 + $0x190] sm:$0xf] }
  0xf0   :  { %2262 = vmatpush.bf16.msra.mxu1 %v5816_v3  ;;  %v7563_v3 = vld [vmem:[#allocation6 + $0xe4] sm:$0xf]  ;;  %v5876_v63 = vor.u32 %v7553_v56, %v5873_v57  ;;  %v371_v56 = vperm.slane %v8238_v1, 3 }
  0xf1   :  { %2275 = vmatpush.bf16.msra.mxu2 %v5880_v13  ;;  %v5916_v5 = vor.u32 %v7563_v3, %v5913_v4  ;;  %v5905_v13 = vld [vmem:[#allocation6 + $0xd8] sm:$0xf0]  ;;  %v7551_v3 = vld [vmem:[#allocation6 + $0x84] sm:$0xf]  ;;  %v5865_v4 = vld [vmem:[#allocation6 + $0x88] sm:$0xf0] }
  0xf2   :  { %2288 = vmatpush.bf16.msra.mxu3 %v5944_v30  ;;  %v5908_v20 = vor.u32 %v7561_v12, %v5905_v13  ;;  %v5868_v8 = vor.u32 %v7551_v3, %v5865_v4  ;;  %v7613_v3 = vld [vmem:[#allocation6 + $0x274] sm:$0xf]  ;;  %v6113_v4 = vld [vmem:[#allocation6 + $0x278] sm:$0xf0] }
  0xf3   :  { %1754 = vmatpush.bf16.msra.mxu0 %v5676_v19  ;;  %v5825_v19 = vld [vmem:[#allocation6 + $0x38] sm:$0xf0] }
  0xf4   :  { %2263 = vmatpush.bf16.msra.mxu1 %v5808_v24  ;;  %v5828_v26 = vor.u32 %v7541_v18, %v5825_v19  ;;  %v5977_v18 = vld [vmem:[#allocation6 + $0x168] sm:$0xf0] }
  0xf5   :  { %2276 = vmatpush.bf16.msra.mxu2 %v5872_v29  ;;  %v5817_v29 = vld [vmem:[#allocation6 + $0x28] sm:$0xf0] }
  0xf6   :  { %2289 = vmatpush.bf16.msra.mxu3 %v5936_v48  ;;  %v5820_v40 = vor.u32 %v7539_v28, %v5817_v29  ;;  %v5881_v48 = vld [vmem:[#allocation6 + $0xa8] sm:$0xf0]  ;;  %v7575_v28 = vld [vmem:[#allocation6 + $0x144] sm:$0xf] }
  0xf7   :  { %1755 = vmatpush.bf16.msra.mxu0 %v5656_v35  ;;  %v1549_v6 = vpop.f32.mrf.mxu0  ;;  %v5884_v22 = vor.u32 %v7555_v46, %v5881_v48  ;;  %v5961_v29 = vld [vmem:[#allocation6 + $0x148] sm:$0xf0]  ;;  %v7612_v46 = vld [vmem:[#allocation6 + $0x264] sm:$0xf0]  ;;  %v5937_v48 = vld [vmem:[#allocation6 + $0x118] sm:$0xf0] }
  0xf8   :  { %2264 = vmatpush.bf16.msra.mxu1 %v5800_v37  ;;  %v1562_v9 = vpop.f32.mrf.mxu1  ;;  %v7537_v37 = vld [vmem:[#allocation6 + $0x14] sm:$0xf] }
  0xf9   :  { %2277 = vmatpush.bf16.msra.mxu2 %v5864_v42  ;;  %v5889_v42 = vld [vmem:[#allocation6 + $0xb8] sm:$0xf0] }
  0xfa   :  { %1756 = vmatmul.bf16.vlgmr.msra.gmra.mxu0 %v8209_v34  ;;  %v1537_v34 = vadd.f32 %v8251_v17, %v1524_v52  ;;  %2290 = vmatpush.bf16.msra.mxu3 %v5928_v55  ;;  %v5892_v43 = vor.u32 %v7557_v41, %v5889_v42  ;;  %v5812_v52 = vor.u32 %v7537_v37, %v5809_v16  ;;  %v7573_v37 = vld [vmem:[#allocation6 + $0x134] sm:$0xf]  ;;  %v6111_v16 = vld [vmem:[#allocation6 + $0x270] sm:$0xf]  ;;  %v7614_v41 = vld [vmem:[#allocation6 + $0x274] sm:$0xf0] }
  0xfb   :  { %2265 = vmatmul.bf16.vlgmr.msra.gmra.mxu1 %v8255_v49  ;;  %2296 = vmatpush.bf16.msrb.mxu0 %v6048_v61  ;;  %v6008_v55 = vor.u32 %v7588_v51, %v6007_v50 }
  0xfc   :  { %v1550_v0 = vadd.f32 %v1549_v6, %v1537_v34  ;;  %v370_v34 = vperm.slane %v8238_v1, 2  ;;  %v7584_v6 = vld [vmem:[#allocation6 + $0x184] sm:$0xf0] }
  0xfd   :  { %2322 = vmatpush.bf16.msrb.mxu2 %v5860_v45  ;;  %v7590_v45 = vld [vmem:[#allocation6 + $0x1b4] sm:$0xf0] }
  0xfe   :  { %2335 = vmatpush.bf16.msrb.mxu3 %v5924_v59  ;;  %v1563_v17 = vadd.f32 %v1562_v9, %v1550_v0  ;;  %v6016_v47 = vor.u32 %v7590_v45, %v6015_v32  ;;  %v7586_v59 = vld [vmem:[#allocation6 + $0x194] sm:$0xf0]  ;;  %v7581_v9 = vld [vmem:[#allocation6 + $0x174] sm:$0xf]  ;;  %v6112_v32 = vor.u32 %v7614_v41, %v6111_v16  ;;  %v6103_v45 = vld [vmem:[#allocation6 + $0x260] sm:$0xf] }
  0xff   :  { %2297 = vmatpush.bf16.msrb.mxu0 %v6040_v11  ;;  %v1575_v30 = vpop.f32.mrf.mxu2  ;;  %v1551_v35 = vpop.f32.mrf.mxu0  ;;  %v6000_v2 = vor.u32 %v7586_v59, %v5999_v58  ;;  %v6104_v50 = vor.u32 %v7612_v46, %v6103_v45  ;;  %v6041_v46 = vld [vmem:[#allocation6 + $0x1e8] sm:$0xf0] }
 0x100   :  { %v1762_v24 = vmax.f32 %v1563_v17, 0.0  ;;  %v1564_v38 = vpop.f32.mrf.mxu1  ;;  %v1588_v39 = vpop.f32.mrf.mxu3  ;;  %v1576_v7 = vadd.f32 %v1575_v30, %v370_v34  ;;  %v7579_v17 = vld [vmem:[#allocation6 + $0x164] sm:$0xf]  ;;  %v5964_v30 = vor.u32 %v7575_v28, %v5961_v29  ;;  %2309 = vmatpush.bf16.msrb.mxu1 %v6112_v32  ;;  %v7608_v34 = vld [vmem:[#allocation6 + $0x244] sm:$0xf0] }
 0x101   :  { %2323 = vmatpush.bf16.msrb.mxu2 %v5852_v53  ;;  %v7535_v53 = vld [vmem:[#allocation6 + $0x4] sm:$0xf]  ;;  %v5953_v38 = vld [vmem:[#allocation6 + $0x138] sm:$0xf0] }
 0x102   :  { %2336 = vmatpush.bf16.msrb.mxu3 %v5916_v5  ;;  %v8260_v14 = vpack.c.bf16 %v1762_v24, %v1762_v24  ;;  %v5991_v5 = vld [vmem:[#allocation6 + $0x180] sm:$0xf]  ;;  %v1589_v11 = vadd.f32 %v1588_v39, %v1576_v7  ;;  %v7577_v24 = vld [vmem:[#allocation6 + $0x154] sm:$0xf]  ;;  %v5956_v39 = vor.u32 %v7573_v37, %v5953_v38  ;;  %v7606_v7 = vld [vmem:[#allocation6 + $0x234] sm:$0xf0] }
 0x103   :  { %2298 = vmatpush.bf16.msrb.mxu0 %v6032_v25  ;;  %v5992_v0 = vor.u32 %v7584_v6, %v5991_v5  ;;  %v5969_v25 = vld [vmem:[#allocation6 + $0x158] sm:$0xf0]  ;;  %v6079_v5 = vld [vmem:[#allocation6 + $0x230] sm:$0xf]  ;;  %v6116_v6 = vor.u32 %v7613_v3, %v6113_v4  ;;  %v7597_v37 = vld [vmem:[#allocation6 + $0x1f4] sm:$0xf] }
 0x104   :  { %2278 = vmatmul.bf16.vlgmr.msra.gmra.mxu2 %v8260_v14  ;;  %2310 = vmatpush.bf16.msrb.mxu1 %v6104_v50  ;;  %v6049_v38 = vld [vmem:[#allocation6 + $0x1f8] sm:$0xf0]  ;;  %v7595_v32 = vld [vmem:[#allocation6 + $0x1e4] sm:$0xf] }
 0x105   :  { %2324 = vmatpush.bf16.msrb.mxu2 %v5844_v62  ;;  %v5804_v62 = vor.u32 %v7535_v53, %v5801_v54  ;;  %v7610_v53 = vld [vmem:[#allocation6 + $0x254] sm:$0xf0]  ;;  %v6044_v50 = vor.u32 %v7595_v32, %v6041_v46  ;;  %v6017_v3 = vld [vmem:[#allocation6 + $0x1b8] sm:$0xf0] }
 0x106   :  { %2337 = vmatpush.bf16.msrb.mxu3 %v5908_v20  ;;  %v5980_v20 = vor.u32 %v7579_v17, %v5977_v18  ;;  %v7609_v17 = vld [vmem:[#allocation6 + $0x254] sm:$0xf]  ;;  %v6097_v18 = vld [vmem:[#allocation6 + $0x258] sm:$0xf0] }
 0x107   :  { %2299 = vmatpush.bf16.msrb.mxu0 %v6024_v31  ;;  %v1577_v44 = vpop.f32.mrf.mxu2  ;;  %v7571_v31 = vld [vmem:[#allocation6 + $0x124] sm:$0xf] }
 0x108   :  { %v1590_v61 = vpop.f32.mrf.mxu3  ;;  %v7567_v44 = vld [vmem:[#allocation6 + $0x104] sm:$0xf] }
 0x109   :  { %2325 = vmatpush.bf16.msrb.mxu2 %v5836_v10  ;;  %v5985_v10 = vld [vmem:[#allocation6 + $0x178] sm:$0xf0]  ;;  %v6087_v61 = vld [vmem:[#allocation6 + $0x240] sm:$0xf] }
 0x10a   :  { %2338 = vmatpush.bf16.msrb.mxu3 %v5900_v33  ;;  %v5988_v12 = vor.u32 %v7581_v9, %v5985_v10  ;;  %v6080_v9 = vor.u32 %v7606_v7, %v6079_v5  ;;  %v7587_v5 = vld [vmem:[#allocation6 + $0x1a4] sm:$0xf] }
 0x10b   :  { %2300 = vmatpush.bf16.msrb.mxu0 %v6016_v47  ;;  %v7569_v47 = vld [vmem:[#allocation6 + $0x114] sm:$0xf] }
 0x10c   :  { %v5940_v54 = vor.u32 %v7569_v47, %v5937_v48  ;;  %v7603_v47 = vld [vmem:[#allocation6 + $0x224] sm:$0xf]  ;;  %v6073_v48 = vld [vmem:[#allocation6 + $0x228] sm:$0xf0] }
 0x10d   :  { %2326 = vmatpush.bf16.msrb.mxu2 %v5828_v26  ;;  %v5972_v26 = vor.u32 %v7577_v24, %v5969_v25  ;;  %v6063_v24 = vld [vmem:[#allocation6 + $0x210] sm:$0xf]  ;;  %v7602_v25 = vld [vmem:[#allocation6 + $0x214] sm:$0xf0] }
 0x10e   :  { %2339 = vmatpush.bf16.msrb.mxu3 %v5892_v43  ;;  %v6064_v29 = vor.u32 %v7602_v25, %v6063_v24 }
 0x10f   :  { %2301 = vmatpush.bf16.msrb.mxu0 %v6008_v55 }
 0x111   :  { %2327 = vmatpush.bf16.msrb.mxu2 %v5820_v40  ;;  %v5945_v40 = vld [vmem:[#allocation6 + $0x128] sm:$0xf0] }
 0x112   :  { %2340 = vmatpush.bf16.msrb.mxu3 %v5884_v22  ;;  %v5948_v43 = vor.u32 %v7571_v31, %v5945_v40  ;;  %v5929_v22 = vld [vmem:[#allocation6 + $0x108] sm:$0xf0]  ;;  %v6081_v31 = vld [vmem:[#allocation6 + $0x238] sm:$0xf0] }
 0x113   :  { %2302 = vmatpush.bf16.msrb.mxu0 %v6000_v2  ;;  %v5932_v57 = vor.u32 %v7567_v44, %v5929_v22  ;;  %v6088_v2 = vor.u32 %v7608_v34, %v6087_v61  ;;  %v6065_v22 = vld [vmem:[#allocation6 + $0x218] sm:$0xf0]  ;;  %v6057_v34 = vld [vmem:[#allocation6 + $0x208] sm:$0xf0] }
 0x115   :  { %2328 = vmatpush.bf16.msrb.mxu2 %v5812_v52  ;;  %v6095_v52 = vld [vmem:[#allocation6 + $0x250] sm:$0xf] }
 0x116   :  { %2341 = vmatpush.bf16.msrb.mxu3 %v5876_v63  ;;  %v6096_v55 = vor.u32 %v7610_v53, %v6095_v52  ;;  %v7593_v52 = vld [vmem:[#allocation6 + $0x1d4] sm:$0xf]  ;;  %v6033_v53 = vld [vmem:[#allocation6 + $0x1d8] sm:$0xf0] }
 0x117   :  { %2303 = vmatpush.bf16.msrb.mxu0 %v5992_v0  ;;  %v1601_v13 = vpop.f32.mrf.mxu0  ;;  %v6105_v0 = vld [vmem:[#allocation6 + $0x268] sm:$0xf0]  ;;  %v6036_v44 = vor.u32 %v7593_v52, %v6033_v53 }
 0x118   :  { %v1602_v19 = vadd.f32 %v1601_v13, %v1589_v11  ;;  %v1614_v21 = vpop.f32.mrf.mxu1  ;;  %2311 = vmatpush.bf16.msrb.mxu1 %v6096_v55  ;;  %v7604_v13 = vld [vmem:[#allocation6 + $0x224] sm:$0xf0] }
 0x119   :  { %2329 = vmatpush.bf16.msrb.mxu2 %v5804_v62 }
 0x11a   :  { %2342 = vmatpush.bf16.msrb.mxu3 %v5868_v8  ;;  %v1615_v23 = vadd.f32 %v1614_v21, %v1602_v19  ;;  %v7611_v8 = vld [vmem:[#allocation6 + $0x264] sm:$0xf] }
 0x11b   :  { %2348 = vmatpush.bf16.msra.mxu0 %v5988_v12  ;;  %v6108_v11 = vor.u32 %v7611_v8, %v6105_v0  ;;  %v6071_v12 = vld [vmem:[#allocation6 + $0x220] sm:$0xf]  ;;  %v7585_v8 = vld [vmem:[#allocation6 + $0x194] sm:$0xf]  ;;  %v6001_v0 = vld [vmem:[#allocation6 + $0x198] sm:$0xf0] }
 0x11c   :  { %2330 = vmatmul.bf16.vlgmr.msrb.gmra.mxu2 %v8255_v49  ;;  %2312 = vmatpush.bf16.msrb.mxu1 %v6088_v2  ;;  %v6072_v19 = vor.u32 %v7604_v13, %v6071_v12  ;;  %v7589_v2 = vld [vmem:[#allocation6 + $0x1b4] sm:$0xf]  ;;  %v6004_v13 = vor.u32 %v7585_v8, %v6001_v0 }
 0x11d   :  { %2374 = vmatpush.bf16.msra.mxu2 %v6116_v6  ;;  %v6020_v4 = vor.u32 %v7589_v2, %v6017_v3  ;;  %v6009_v6 = vld [vmem:[#allocation6 + $0x1a8] sm:$0xf0]  ;;  %v7623_v3 = vld [vmem:[%s8470_s5 + $0x40] sm:$0xff] }
 0x11e   :  { %v6012_v7 = vor.u32 %v7587_v5, %v6009_v6  ;;  %v7624_v2 = vld [vmem:[%s8470_s5 + $0x48] sm:$0xff] }
 0x11f   :  { %2349 = vmatpush.bf16.msra.mxu0 %v5980_v20  ;;  %v1627_v27 = vpop.f32.mrf.mxu2  ;;  %v1603_v60 = vpop.f32.mrf.mxu0 }
 0x120   :  { %v1628_v49 = vadd.f32 %v1627_v27, %v1615_v23  ;;  %v1640_v35 = vpop.f32.mrf.mxu3  ;;  %v1616_v15 = vpop.f32.mrf.mxu1  ;;  %2313 = vmatpush.bf16.msrb.mxu1 %v6080_v9  ;;  %v6100_v23 = vor.u32 %v7609_v17, %v6097_v18  ;;  %v6089_v60 = vld [vmem:[#allocation6 + $0x248] sm:$0xf0]  ;;  %v7583_v17 = vld [vmem:[#allocation6 + $0x184] sm:$0xf]  ;;  %v372_v18 = vperm.slane %v8238_v1, 4 }
 0x121   :  { %v1641_v58 = vadd.f32 %v1640_v35, %v371_v56  ;;  %2375 = vmatpush.bf16.msra.mxu2 %v6108_v11  ;;  %v7600_v15 = vld [vmem:[#allocation6 + $0x204] sm:$0xf0]  ;;  %v7591_v56 = vld [vmem:[#allocation6 + $0x1c4] sm:$0xf]  ;;  %v1771_v1 = vld [vmem:[%s8469_s4] sm:$0x3] }
 0x122   :  { %v1763_v33 = vmax.f32 %v1628_v49, 0.0  ;;  %v7607_v49 = vld [vmem:[#allocation6 + $0x244] sm:$0xf] }
 0x123   :  { %2350 = vmatpush.bf16.msra.mxu0 %v5972_v26  ;;  %v6092_v35 = vor.u32 %v7607_v49, %v6089_v60 }
 0x124   :  { %v8265_v36 = vpack.c.bf16 %v1763_v33, %v1763_v33  ;;  %2314 = vmatpush.bf16.msrb.mxu1 %v6072_v19 }
 0x125   :  { %2376 = vmatpush.bf16.msra.mxu2 %v6100_v23 }
 0x126   :  { %2291 = vmatmul.bf16.vlgmr.msra.gmra.mxu3 %v8265_v36 }
 0x127   :  { %2351 = vmatpush.bf16.msra.mxu0 %v5964_v30  ;;  %v1629_v42 = vpop.f32.mrf.mxu2  ;;  %v6055_v30 = vld [vmem:[#allocation6 + $0x200] sm:$0xf] }
 0x128   :  { %v1642_v51 = vpop.f32.mrf.mxu3  ;;  %2315 = vmatpush.bf16.msrb.mxu1 %v6064_v29  ;;  %v6056_v41 = vor.u32 %v7600_v15, %v6055_v30  ;;  %v6052_v42 = vor.u32 %v7597_v37, %v6049_v38 }
 0x129   :  { %2377 = vmatpush.bf16.msra.mxu2 %v6092_v35  ;;  %v6076_v51 = vor.u32 %v7603_v47, %v6073_v48  ;;  %v7622_v47 = vld [vmem:[%s8470_s5 + $0x38] sm:$0xff]  ;;  %v7621_v48 = vld [vmem:[%s8470_s5 + $0x30] sm:$0xff] }
 0x12a   :  { %2523 = vmatpush.bf16.msra.mxu3 %v7622_v47 }
 0x12b   :  { %2352 = vmatpush.bf16.msra.mxu0 %v5956_v39  ;;  %v7605_v39 = vld [vmem:[#allocation6 + $0x234] sm:$0xf] }
 0x12c   :  { %2316 = vmatpush.bf16.msrb.mxu1 %v6056_v41 }
 0x12e   :  { %2524 = vmatpush.bf16.msra.mxu3 %v7621_v48  ;;  %v6191_v48 = vld [vmem:[%s8476_s11 + $0x10] sm:$0xf] }
 0x12f   :  { %2353 = vmatpush.bf16.msra.mxu0 %v5948_v43  ;;  %v6084_v43 = vor.u32 %v7605_v39, %v6081_v31 }
 0x130   :  { %2361 = vmatpush.bf16.msra.mxu1 %v6052_v42 }
 0x131   :  { %2378 = vmatpush.bf16.msra.mxu2 %v6084_v43  ;;  %v1854_v43 = vperm.slane %v1771_v1, 1 }
 0x133   :  { %2354 = vmatpush.bf16.msra.mxu0 %v5940_v54  ;;  %v7601_v54 = vld [vmem:[#allocation6 + $0x214] sm:$0xf] }
 0x134   :  { %2362 = vmatpush.bf16.msra.mxu1 %v6044_v50  ;;  %v6068_v55 = vor.u32 %v7601_v54, %v6065_v22  ;;  %v7629_v50 = vld [vmem:[%s8470_s5 + $0x70] sm:$0xff]  ;;  %v7619_v54 = vld [vmem:[%s8470_s5 + $0x20] sm:$0xff] }
 0x135   :  { %2379 = vmatpush.bf16.msra.mxu2 %v6076_v51  ;;  %v7620_v51 = vld [vmem:[%s8470_s5 + $0x28] sm:$0xff] }
 0x136   :  { %2343 = vmatmul.bf16.vlgmr.msrb.gmra.mxu3 %v8260_v14 }
 0x137   :  { %2355 = vmatpush.bf16.msra.mxu0 %v5932_v57  ;;  %v1653_v59 = vpop.f32.mrf.mxu0  ;;  %v6025_v57 = vld [vmem:[#allocation6 + $0x1c8] sm:$0xf0]  ;;  %2525 = vmatpush.bf16.msra.mxu3 %v7620_v51  ;;  %v7633_v51 = vld [vmem:[%s8476_s11 + $0x14] sm:$0xf] }
 0x138   :  { %v1654_v62 = vadd.f32 %v1653_v59, %v1641_v58  ;;  %v1666_v63 = vpop.f32.mrf.mxu1  ;;  %2363 = vmatpush.bf16.msra.mxu1 %v6036_v44  ;;  %v7599_v58 = vld [vmem:[#allocation6 + $0x204] sm:$0xf]  ;;  %v6028_v61 = vor.u32 %v7591_v56, %v6025_v57  ;;  %v7618_v44 = vld [vmem:[%s8470_s5 + $0x18] sm:$0xff] }
 0x139   :  { %2380 = vmatpush.bf16.msra.mxu2 %v6068_v55  ;;  %v7617_v55 = vld [vmem:[%s8470_s5 + $0x10] sm:$0xff]  ;;  %v7616_v57 = vld [vmem:[%s8470_s5 + $0x8] sm:$0xff] }
 0x13a   :  { %v1667_v10 = vadd.f32 %v1666_v63, %v1654_v62  ;;  %v6060_v62 = vor.u32 %v7599_v58, %v6057_v34  ;;  %v7628_v58 = vld [vmem:[%s8470_s5 + $0x68] sm:$0xff] }
 0x13b   :  { %2526 = vmatpush.bf16.msra.mxu3 %v7619_v54 }
 0x13c   :  { %2364 = vmatpush.bf16.msra.mxu1 %v6028_v61  ;;  %v7627_v61 = vld [vmem:[%s8470_s5 + $0x60] sm:$0xff] }
 0x13d   :  { %2381 = vmatpush.bf16.msra.mxu2 %v6060_v62  ;;  %v7626_v62 = vld [vmem:[%s8470_s5 + $0x58] sm:$0xff] }
 0x13f   :  { %v1679_v14 = vpop.f32.mrf.mxu2  ;;  %v1655_v21 = vpop.f32.mrf.mxu0  ;;  %2527 = vmatpush.bf16.msra.mxu3 %v7618_v44  ;;  %v6183_v44 = vld [vmem:[%s8476_s11] sm:$0xf] }
 0x140   :  { %v1680_v20 = vadd.f32 %v1679_v14, %v1667_v10  ;;  %v1692_v26 = vpop.f32.mrf.mxu3  ;;  %v1668_v27 = vpop.f32.mrf.mxu1  ;;  %2365 = vmatpush.bf16.msra.mxu1 %v6020_v4 }
 0x142   :  { %v1693_v28 = vadd.f32 %v1692_v26, %v1680_v20 }
 0x143   :  { %2528 = vmatpush.bf16.msra.mxu3 %v7617_v55  ;;  %v7631_v55 = vld [vmem:[%s8476_s11 + $0x4] sm:$0xf] }
 0x144   :  { %v1764_v33 = vmax.f32 %v1693_v28, 0.0  ;;  %2366 = vmatpush.bf16.msra.mxu1 %v6012_v7 }
 0x146   :  { %v8270_v40 = vpack.c.bf16 %v1764_v33, %v1764_v33  ;;  %v1853_v33 = vperm.slane %v1771_v1, 0  ;;  %v8081_v1 = vmov 0  }
 0x147   :  { %v1681_v16 = vpop.f32.mrf.mxu2  ;;  %2529 = vmatpush.bf16.msra.mxu3 %v7616_v57  ;;  %7929 = vset.pattern.permute.xlu0 %v8081_v1  ;;  %v6185_v57 = vld [vmem:[%s8476_s11 + $0x8] sm:$0xf0]  ;;  %v2565_v1 = vld [vmem:[%s8474_s9] sm:$0x1] }
 0x148   :  { %2304 = vmatmul.bf16.vlgmr.msrb.gmra.mxu0 %v8270_v40  ;;  %v1694_v45 = vpop.f32.mrf.mxu3  ;;  %2367 = vmatpush.bf16.msra.mxu1 %v6004_v13 }
 0x157   :  { %v1705_v59 = vpop.f32.mrf.mxu0 }
 0x158   :  { %2356 = vmatmul.bf16.vlgmr.msra.gmra.mxu0 %v8265_v36  ;;  %v1718_v63 = vpop.f32.mrf.mxu1  ;;  %v5993_v36 = vld [vmem:[#allocation6 + $0x188] sm:$0xf0]  ;;  %v1706_v19 = vadd.f32 %v1705_v59, %v372_v18  ;;  %v7615_v59 = vld [vmem:[%s8470_s5] sm:$0xff] }
 0x159   :  { %v5996_v14 = vor.u32 %v7583_v17, %v5993_v36  ;;  %2530 = vmatpush.bf16.msra.mxu3 %v7615_v59  ;;  %v6357_v59 = vld [vmem:[#allocation8 + $0x118] sm:$0xf] }
 0x15a   :  { %v1719_v23 = vadd.f32 %v1718_v63, %v1706_v19  ;;  %v7625_v63 = vld [vmem:[%s8470_s5 + $0x50] sm:$0xff] }
 0x15b   :  { %2368 = vmatpush.bf16.msra.mxu1 %v5996_v14 }
 0x15f   :  { %v1707_v9 = vpop.f32.mrf.mxu0  ;;  %v1731_v10 = vpop.f32.mrf.mxu2 }
 0x160   :  { %v1744_v11 = vpop.f32.mrf.mxu3  ;;  %v1720_v12 = vpop.f32.mrf.mxu1  ;;  %v1732_v24 = vadd.f32 %v1731_v10, %v1719_v23 }
 0x162   :  { %v1745_v25 = vadd.f32 %v1744_v11, %v1732_v24 }
 0x167   :  { %v1733_v20 = vpop.f32.mrf.mxu2 }
 0x168   :  { %v1746_v21 = vpop.f32.mrf.mxu3  ;;  %v2551_v20 = vld [vmem:[%s8472_s7] sm:$0x1] }
 0x169   :  { %v7930_v21 = vld [vmem:[%s8471_s6] ss:$0 sm:$0xff]  ;;  %v2552_v24 = vunpack.c.l.bf16 %v2551_v20 }
 0x16a   :  { %v7714_v20 = vld [vmem:[#allocation8 + $0x25c] sm:$0xf] }
 0x177   :  { %v1757_v26 = vpop.f32.mrf.mxu0 }
 0x178   :  { %v1758_v27 = vadd.f32 %v1757_v26, %v1745_v25  ;;  %v2266_v49 = vpop.f32.mrf.mxu1 }
 0x179   :  { %v2267_v35 = vadd.f32 %v2266_v49, %v1853_v33  ;;  %v2553_v49 = vperm.slane %v2552_v24, 0  ;;  %v6207_v33 = vld [vmem:[%s8476_s11 + $0x30] sm:$0xf]  ;;  %v7661_v24 = vld [vmem:[#allocation8 + $0xb0] sm:$0xf0] }
 0x17a   :  { %v1765_v60 = vmax.f32 %v1758_v27, 0.0 }
 0x17c   :  { %v1770_v28 = vpack.c.bf16 %v1765_v60, %v1765_v60 }
 0x17e   :  { %2317 = vmatmul.bf16.vlgmr.msrb.gmra.mxu1 %v1770_v28  ;;  %2382 = vmatmul.bf16.vlgmr.msra.gmra.mxu2 %v1770_v28 }
 0x17f   :  { %v1759_v29 = vpop.f32.mrf.mxu0 }
 0x180   :  { %v2268_v30 = vpop.f32.mrf.mxu1 }
 0x187   :  { %v2279_v15 = vpop.f32.mrf.mxu2 }
 0x188   :  { %v2280_v37 = vadd.f32 %v2279_v15, %v2267_v35  ;;  %v7638_v35 = vld [vmem:[%s8476_s11 + $0x34] sm:$0xf0]  ;;  %v7637_v15 = vld [vmem:[%s8476_s11 + $0x34] sm:$0xf] }
 0x18e   :  { %2369 = vmatmul.bf16.vlgmr.msra.gmra.mxu1 %v8270_v40  ;;  %v7630_v40 = vld [vmem:[%s8470_s5 + $0x78] sm:$0xff] }
 0x18f   :  { %v2281_v38 = vpop.f32.mrf.mxu2  ;;  %2536 = vmatpush.bf16.msrb.mxu0 %v7630_v40 }
 0x190   :  { %v6209_v38 = vld [vmem:[%s8476_s11 + $0x38] sm:$0xf0] }
 0x193   :  { %2537 = vmatpush.bf16.msrb.mxu0 %v7629_v50  ;;  %v7634_v50 = vld [vmem:[%s8476_s11 + $0x14] sm:$0xf0] }
 0x197   :  { %2538 = vmatpush.bf16.msrb.mxu0 %v7628_v58  ;;  %v6188_v58 = vor.u32 %v7631_v55, %v6185_v57  ;;  %v7691_v55 = vld [vmem:[#allocation8 + $0x1a0] sm:$0xf0] }
 0x19b   :  { %2539 = vmatpush.bf16.msrb.mxu0 %v7627_v61  ;;  %v7676_v61 = vld [vmem:[#allocation8 + $0x128] sm:$0xf0] }
 0x19f   :  { %v2331_v39 = vpop.f32.mrf.mxu2  ;;  %2540 = vmatpush.bf16.msrb.mxu0 %v7626_v62  ;;  %v6358_v62 = vor.u32 %v7676_v61, %v6357_v59  ;;  %v6237_v59 = vld [vmem:[#allocation8 + $0x28] sm:$0xf] }
 0x1a0   :  { %v2332_v32 = vadd.f32 %v2331_v39, %v1854_v43  ;;  %v6199_v39 = vld [vmem:[%s8476_s11 + $0x20] sm:$0xf] }
 0x1a1   :  { %3191 = vmatpush.bf16.msrb.mxu3 %v6358_v62  ;;  %v6439_v62 = vld [vmem:[#allocation8 + $0x1cc] sm:$0xf0] }
 0x1a3   :  { %2541 = vmatpush.bf16.msrb.mxu0 %v7625_v63  ;;  %v7671_v63 = vld [vmem:[#allocation8 + $0x100] sm:$0xf0] }
 0x1a7   :  { %v2333_v31 = vpop.f32.mrf.mxu2  ;;  %2542 = vmatpush.bf16.msrb.mxu0 %v7624_v2  ;;  %v6517_v2 = vld [vmem:[#allocation8 + $0x258] sm:$0xf] }
 0x1a8   :  { %v7636_v31 = vld [vmem:[%s8476_s11 + $0x24] sm:$0xf0] }
 0x1a9   :  { %v2292_v16 = vpop.f32.mrf.mxu3  ;;  %v6200_v43 = vor.u32 %v7636_v31, %v6199_v39  ;;  %v7659_v31 = vld [vmem:[#allocation8 + $0xa4] sm:$0xf] }
 0x1aa   :  { %v2293_v41 = vadd.f32 %v2292_v16, %v2280_v37  ;;  %v6208_v37 = vor.u32 %v7638_v35, %v6207_v33  ;;  %v6212_v16 = vor.u32 %v7637_v15, %v6209_v38  ;;  %v6277_v35 = vld [vmem:[#allocation8 + $0x78] sm:$0xf]  ;;  %v7656_v15 = vld [vmem:[#allocation8 + $0x88] sm:$0xf0] }
 0x1ab   :  { %2543 = vmatpush.bf16.msrb.mxu0 %v7623_v3  ;;  %v7716_v3 = vld [vmem:[#allocation8 + $0x268] sm:$0xf0] }
 0x1ac   :  { %2641 = vmatpush.bf16.msrb.mxu1 %v6208_v37  ;;  %2654 = vmatpush.bf16.msrb.mxu2 %v6212_v16  ;;  %v6299_v16 = vld [vmem:[#allocation8 + $0xb4] sm:$0xf0] }
 0x1b0   :  { %2642 = vmatpush.bf16.msrb.mxu1 %v6200_v43  ;;  %v7696_v43 = vld [vmem:[#allocation8 + $0x1c8] sm:$0xf0] }
 0x1b1   :  { %v2294_v42 = vpop.f32.mrf.mxu3 }
 0x1b2   :  { %v6201_v42 = vld [vmem:[%s8476_s11 + $0x28] sm:$0xf0] }
 0x1b9   :  { %v2344_v45 = vpop.f32.mrf.mxu3 }
 0x1ba   :  { %v2345_v46 = vadd.f32 %v2344_v45, %v2332_v32  ;;  %v7931_v45 = vld [vmem:[#allocation2] ss:$0 sm:$0xff] }
 0x1c1   :  { %v2346_v52 = vpop.f32.mrf.mxu3 }
 0x1c2   :  { %v6192_v52 = vor.u32 %v7634_v50, %v6191_v48  ;;  %v7651_v48 = vld [vmem:[#allocation8 + $0x60] sm:$0xf0]  ;;  %v6302_v50 = vor.u32 %v7659_v31, %v6299_v16  ;;  %v6345_v16 = vld [vmem:[#allocation8 + $0xf8] sm:$0xf] }
 0x1c4   :  { %2643 = vmatpush.bf16.msrb.mxu1 %v6192_v52 }
 0x1c5   :  { %v2305_v53 = vpop.f32.mrf.mxu0 }
 0x1c6   :  { %v2306_v4 = vadd.f32 %v2305_v53, %v2293_v41  ;;  %v7635_v41 = vld [vmem:[%s8476_s11 + $0x24] sm:$0xf]  ;;  %v6193_v53 = vld [vmem:[%s8476_s11 + $0x18] sm:$0xf0] }
 0x1c7   :  { %v6204_v32 = vor.u32 %v7635_v41, %v6201_v42  ;;  %v6196_v54 = vor.u32 %v7633_v51, %v6193_v53  ;;  %v7704_v41 = vld [vmem:[#allocation8 + $0x20c] sm:$0xf]  ;;  %v6437_v42 = vld [vmem:[#allocation8 + $0x1b8] sm:$0xf]  ;;  %v7654_v51 = vld [vmem:[#allocation8 + $0x7c] sm:$0xf] }
 0x1c8   :  { %v6438_v52 = vor.u32 %v7696_v43, %v6437_v42  ;;  %v6279_v53 = vld [vmem:[#allocation8 + $0x8c] sm:$0xf0]  ;;  %v6505_v43 = vld [vmem:[#allocation8 + $0x238] sm:$0xf] }
 0x1c9   :  { %2655 = vmatpush.bf16.msrb.mxu2 %v6204_v32  ;;  %v6479_v32 = vld [vmem:[#allocation8 + $0x21c] sm:$0xf0]  ;;  %v6282_v61 = vor.u32 %v7654_v51, %v6279_v53  ;;  %v6527_v51 = vld [vmem:[#allocation8 + $0x274] sm:$0xf0]  ;;  %v7670_v53 = vld [vmem:[#allocation8 + $0xfc] sm:$0xf] }
 0x1cd   :  { %v2307_v22 = vpop.f32.mrf.mxu0  ;;  %2656 = vmatpush.bf16.msrb.mxu2 %v6196_v54  ;;  %v7699_v54 = vld [vmem:[#allocation8 + $0x1e4] sm:$0xf] }
 0x1ce   :  { %v7632_v22 = vld [vmem:[%s8476_s11 + $0x4] sm:$0xf0] }
 0x1d1   :  { %2657 = vmatpush.bf16.msrb.mxu2 %v6188_v58 }
 0x1d5   :  { %v2357_v56 = vpop.f32.mrf.mxu0 }
 0x1d6   :  { %v2358_v11 = vadd.f32 %v2357_v56, %v2345_v46  ;;  %v6184_v56 = vor.u32 %v7632_v22, %v6183_v44  ;;  %v6459_v44 = vld [vmem:[#allocation8 + $0x1f4] sm:$0xf0]  ;;  %v6417_v22 = vld [vmem:[#allocation8 + $0x190] sm:$0xf] }
 0x1d7   :  { %v6462_v57 = vor.u32 %v7699_v54, %v6459_v44  ;;  %v6347_v54 = vld [vmem:[#allocation8 + $0x10c] sm:$0xf0] }
 0x1d8   :  { %2644 = vmatpush.bf16.msrb.mxu1 %v6184_v56  ;;  %v6325_v44 = vld [vmem:[#allocation8 + $0xd0] sm:$0xf] }
 0x1dd   :  { %v2359_v34 = vpop.f32.mrf.mxu0 }
 0x1de   :  { %v6337_v34 = vld [vmem:[#allocation8 + $0xf0] sm:$0xf] }
 0x1fb   :  { %v2318_v5 = vpop.f32.mrf.mxu1 }
 0x1fc   :  { %v2319_v6 = vadd.f32 %v2318_v5, %v2306_v4  ;;  %v6518_v4 = vor.u32 %v7716_v3, %v6517_v2  ;;  %v6497_v5 = vld [vmem:[#allocation8 + $0x230] sm:$0xf]  ;;  %v6418_v2 = vor.u32 %v7691_v55, %v6417_v22  ;;  %v7649_v3 = vld [vmem:[#allocation8 + $0x54] sm:$0xf]  ;;  %v7667_v22 = vld [vmem:[#allocation8 + $0xe0] sm:$0xf0] }
 0x1fe   :  { %v2387_v7 = vmax.f32 %v2319_v6, 0.0  ;;  %v6338_v6 = vor.u32 %v7671_v63, %v6337_v34  ;;  %3204 = vmatpush.bf16.msra.mxu1 %v6518_v4  ;;  %v7694_v34 = vld [vmem:[#allocation8 + $0x1bc] sm:$0xf]  ;;  %v6259_v4 = vld [vmem:[#allocation8 + $0x64] sm:$0xf0] }
 0x1ff   :  { %v7646_v63 = vld [vmem:[#allocation8 + $0x38] sm:$0xf0] }
 0x200   :  { %v2389_v8 = vpack.c.bf16 %v2387_v7, %v2387_v7  ;;  %v6317_v7 = vld [vmem:[#allocation8 + $0xc8] sm:$0xf]  ;;  %3192 = vmatpush.bf16.msrb.mxu3 %v6338_v6  ;;  %v7686_v6 = vld [vmem:[#allocation8 + $0x178] sm:$0xf0] }
 0x201   :  { %v2383_v0 = vpop.f32.mrf.mxu2 }
 0x202   :  { %2531 = vmatmul.bf16.vlgmr.msra.gmra.mxu3 %v2389_v8  ;;  %v7711_v8 = vld [vmem:[#allocation8 + $0x240] sm:$0xf0] }
 0x203   :  { %v2320_v9 = vpop.f32.mrf.mxu1 }
 0x204   :  { %v6498_v9 = vor.u32 %v7711_v8, %v6497_v5  ;;  %v6397_v5 = vld [vmem:[#allocation8 + $0x168] sm:$0xf]  ;;  %v6442_v8 = vor.u32 %v7694_v34, %v6439_v62  ;;  %v6326_v34 = vor.u32 %v7667_v22, %v6325_v44  ;;  %v7645_v44 = vld [vmem:[#allocation8 + $0x34] sm:$0xf] }
 0x205   :  { %v6305_v62 = vld [vmem:[#allocation8 + $0xa8] sm:$0xf] }
 0x206   :  { %3205 = vmatpush.bf16.msra.mxu1 %v6498_v9  ;;  %v6238_v9 = vor.u32 %v7646_v63, %v6237_v59  ;;  %v7662_v63 = vld [vmem:[#allocation8 + $0xb8] sm:$0xf0]  ;;  %v6247_v22 = vld [vmem:[#allocation8 + $0x44] sm:$0xf0] }
 0x209   :  { %v2385_v10 = vpop.f32.mrf.mxu2 }
 0x20a   :  { %v7674_v10 = vld [vmem:[#allocation8 + $0x11c] sm:$0xf] }
 0x20b   :  { %v2370_v12 = vpop.f32.mrf.mxu1 }
 0x20c   :  { %v2371_v13 = vadd.f32 %v2370_v12, %v2358_v11  ;;  %v6359_v11 = vld [vmem:[#allocation8 + $0x12c] sm:$0xf0] }
 0x20d   :  { %v6362_v12 = vor.u32 %v7674_v10, %v6359_v11  ;;  %v6217_v10 = vld [vmem:[#allocation8] sm:$0xf]  ;;  %v6262_v11 = vor.u32 %v7649_v3, %v6259_v4  ;;  %v6465_v3 = vld [vmem:[#allocation8 + $0x1e8] sm:$0xf]  ;;  %v7702_v4 = vld [vmem:[#allocation8 + $0x1f8] sm:$0xf0] }
 0x20e   :  { %v2384_v17 = vadd.f32 %v2383_v0, %v2371_v13  ;;  %v7666_v0 = vld [vmem:[#allocation8 + $0xd8] sm:$0xf0]  ;;  %v6477_v13 = vld [vmem:[#allocation8 + $0x208] sm:$0xf] }
 0x20f   :  { %3217 = vmatpush.bf16.msra.mxu2 %v6362_v12  ;;  %v7689_v12 = vld [vmem:[#allocation8 + $0x194] sm:$0xf] }
 0x210   :  { %v2388_v36 = vmax.f32 %v2384_v17, 0.0  ;;  %v7706_v17 = vld [vmem:[#allocation8 + $0x218] sm:$0xf0] }
 0x212   :  { %v2390_v18 = vpack.c.bf16 %v2388_v36, %v2388_v36  ;;  %v7669_v36 = vld [vmem:[#allocation8 + $0xf4] sm:$0xf] }
 0x213   :  { %v2372_v14 = vpop.f32.mrf.mxu1 }
 0x214   :  { %2544 = vmatmul.bf16.vlgmr.msrb.gmra.mxu0 %v2390_v18  ;;  %v6339_v18 = vld [vmem:[#allocation8 + $0x104] sm:$0xf0]  ;;  %v6318_v14 = vor.u32 %v7666_v0, %v6317_v7  ;;  %v7932_v7 = vld [vmem:[%s8475_s10] ss:$0 sm:$0xff] }
 0x216   :  { %3193 = vmatpush.bf16.msrb.mxu3 %v6318_v14  ;;  %v7644_v14 = vld [vmem:[#allocation8 + $0x2c] sm:$0xf] }
 0x285   :  { %v2532_v19 = vpop.f32.mrf.mxu3 }
 0x286   :  { %v2533_v25 = vadd.f32 %v7930_v21, %v2532_v19  ;;  %v6342_v19 = vor.u32 %v7669_v36, %v6339_v18  ;;  %v6519_v21 = vld [vmem:[#allocation8 + $0x26c] sm:$0xf0]  ;;  %v7641_v36 = vld [vmem:[#allocation8 + $0x10] sm:$0xf0]  ;;  %v6398_v18 = vor.u32 %v7686_v6, %v6397_v5  ;;  %v6306_v5 = vor.u32 %v7662_v63, %v6305_v62  ;;  %v6285_v6 = vld [vmem:[#allocation8 + $0x80] sm:$0xf] }
 0x287   :  { %v7685_v62 = vld [vmem:[#allocation8 + $0x174] sm:$0xf]  ;;  %v6407_v63 = vld [vmem:[#allocation8 + $0x184] sm:$0xf0] }
 0x288   :  { %3218 = vmatpush.bf16.msra.mxu2 %v6342_v19  ;;  %v6239_v19 = vld [vmem:[#allocation8 + $0x3c] sm:$0xf0] }
 0x28d   :  { %v2534_v23 = vpop.f32.mrf.mxu3 }
 0x28e   :  { %v6297_v23 = vld [vmem:[#allocation8 + $0xa0] sm:$0xf] }
 0x28f   :  { %v6298_v33 = vor.u32 %v7661_v24, %v6297_v23  ;;  %v6377_v24 = vld [vmem:[#allocation8 + $0x140] sm:$0xf] }
 0x291   :  { %v2545_v26 = vpop.f32.mrf.mxu0  ;;  %3194 = vmatpush.bf16.msrb.mxu3 %v6298_v33  ;;  %v7639_v33 = vld [vmem:[#allocation8 + $0x4] sm:$0xf] }
 0x292   :  { %v2546_v27 = vadd.f32 %v2545_v26, %v2533_v25  ;;  %v6478_v25 = vor.u32 %v7706_v17, %v6477_v13  ;;  %v6522_v26 = vor.u32 %v7714_v20, %v6519_v21  ;;  %v6419_v13 = vld [vmem:[#allocation8 + $0x1a4] sm:$0xf0]  ;;  %v6365_v20 = vld [vmem:[#allocation8 + $0x120] sm:$0xf]  ;;  %v7677_v21 = vld [vmem:[#allocation8 + $0x130] sm:$0xf0] }
 0x294   :  { %v2549_v60 = vmax.f32 %v2546_v27, 0.0  ;;  %v7664_v27 = vld [vmem:[#allocation8 + $0xcc] sm:$0xf]  ;;  %3230 = vmatpush.bf16.msra.mxu0 %v6522_v26  ;;  %3206 = vmatpush.bf16.msra.mxu1 %v6478_v25  ;;  %v7681_v25 = vld [vmem:[#allocation8 + $0x150] sm:$0xf0] }
 0x295   :  { %v6525_v26 = vld [vmem:[#allocation8 + $0x260] sm:$0xf] }
 0x296   :  { %v2554_v28 = vmul.f32 %v2553_v49, %v2549_v60  ;;  %v6457_v49 = vld [vmem:[#allocation8 + $0x1e0] sm:$0xf]  ;;  %v7701_v60 = vld [vmem:[#allocation8 + $0x1f0] sm:$0xf0] }
 0x297   :  { %v6458_v39 = vor.u32 %v7701_v60, %v6457_v49  ;;  %v6218_v49 = vor.u32 %v7641_v36, %v6217_v10  ;;  %v7717_v60 = vld [vmem:[#allocation8 + $0x270] sm:$0xf0]  ;;  %v7652_v10 = vld [vmem:[#allocation8 + $0x68] sm:$0xf0]  ;;  %v6445_v36 = vld [vmem:[#allocation8 + $0x1c0] sm:$0xf] }
 0x298   :  { %v2556_v29 = vsel %vm2555_vm0, %v2554_v28, 0.0  ;;  %v6319_v28 = vld [vmem:[#allocation8 + $0xdc] sm:$0xf0]  ;;  %v6526_v42 = vor.u32 %v7717_v60, %v6525_v26  ;;  %v7660_v26 = vld [vmem:[#allocation8 + $0xac] sm:$0xf] }
 0x299   :  { %v2547_v30 = vpop.f32.mrf.mxu0  ;;  %2557 = vadd.xlane.f32.xlu0 %v2556_v29  ;;  %v7709_v29 = vld [vmem:[#allocation8 + $0x234] sm:$0xf]  ;;  %v6322_v37 = vor.u32 %v7664_v27, %v6319_v28  ;;  %3207 = vmatpush.bf16.msra.mxu1 %v6458_v39  ;;  %v6422_v27 = vor.u32 %v7689_v12, %v6419_v13  ;;  %v6242_v28 = vor.u32 %v7644_v14, %v6239_v19  ;;  %v6367_v39 = vld [vmem:[#allocation8 + $0x134] sm:$0xf0]  ;;  %v6327_v13 = vld [vmem:[#allocation8 + $0xe4] sm:$0xf0] }
 0x29a   :  { %v6499_v30 = vld [vmem:[#allocation8 + $0x244] sm:$0xf0]  ;;  %v7665_v12 = vld [vmem:[#allocation8 + $0xd4] sm:$0xf]  ;;  %v7710_v19 = vld [vmem:[#allocation8 + $0x23c] sm:$0xf] }
 0x29b   :  { %v6502_v38 = vor.u32 %v7709_v29, %v6499_v30  ;;  %3219 = vmatpush.bf16.msra.mxu2 %v6322_v37  ;;  %v7684_v29 = vld [vmem:[#allocation8 + $0x16c] sm:$0xf]  ;;  %v6399_v30 = vld [vmem:[#allocation8 + $0x17c] sm:$0xf0]  ;;  %v6378_v37 = vor.u32 %v7681_v25, %v6377_v24  ;;  %v7647_v24 = vld [vmem:[#allocation8 + $0x40] sm:$0xf0] }
 0x29c   :  { %v6425_v60 = vld [vmem:[#allocation8 + $0x198] sm:$0xf] }
 0x29d   :  { %3231 = vmatpush.bf16.msra.mxu0 %v6502_v38  ;;  %3208 = vmatpush.bf16.msra.mxu1 %v6438_v52  ;;  %v7675_v38 = vld [vmem:[#allocation8 + $0x124] sm:$0xf] }
 0x29f   :  { %3220 = vmatpush.bf16.msra.mxu2 %v6302_v50  ;;  %v7715_v50 = vld [vmem:[#allocation8 + $0x264] sm:$0xf] }
 0x2a0   :  { %v6530_v59 = vor.u32 %v7715_v50, %v6527_v51  ;;  %v7682_v50 = vld [vmem:[#allocation8 + $0x158] sm:$0xf0] }
 0x2a1   :  { %3209 = vmatpush.bf16.msra.mxu1 %v6418_v2 }
 0x2a3   :  { %3221 = vmatpush.bf16.msra.mxu2 %v6282_v61  ;;  %v6350_v61 = vor.u32 %v7670_v53, %v6347_v54  ;;  %v6447_v53 = vld [vmem:[#allocation8 + $0x1d4] sm:$0xf0] }
 0x2a5   :  { %3210 = vmatpush.bf16.msra.mxu1 %v6398_v18  ;;  %v7697_v18 = vld [vmem:[#allocation8 + $0x1d0] sm:$0xf0] }
 0x2a6   :  { %v6446_v14 = vor.u32 %v7697_v18, %v6445_v36  ;;  %v6353_v36 = vld [vmem:[#allocation8 + $0x100] sm:$0xf]  ;;  %v7673_v18 = vld [vmem:[#allocation8 + $0x110] sm:$0xf0] }
 0x2a7   :  { %3222 = vmatpush.bf16.msra.mxu2 %v6262_v11 }
 0x2a9   :  { %3211 = vmatpush.bf16.msra.mxu1 %v6378_v37 }
 0x2ab   :  { %3223 = vmatpush.bf16.msra.mxu2 %v6242_v28  ;;  %v7692_v28 = vld [vmem:[#allocation8 + $0x1a8] sm:$0xf0] }
 0x30c   :  { %v2558_v46 = vpop.xlane.xlu0 %2557 }
 0x30d   :  { %v2562_v47 = vadd.f32 %v7931_v45, %v2558_v46  ;;  %v2566_v45 = vunpack.c.l.bf16 %v2565_v1  ;;  %v6482_v46 = vor.u32 %v7704_v41, %v6479_v32  ;;  %v7672_v41 = vld [vmem:[#allocation8 + $0x108] sm:$0xf0]  ;;  %v6402_v32 = vor.u32 %v7684_v29, %v6399_v30  ;;  %v7705_v30 = vld [vmem:[#allocation8 + $0x214] sm:$0xf] }
 0x30e   :  { %v6346_v52 = vor.u32 %v7672_v41, %v6345_v16  ;;  %v6426_v29 = vor.u32 %v7692_v28, %v6425_v60  ;;  %v6405_v16 = vld [vmem:[#allocation8 + $0x170] sm:$0xf]  ;;  %v7687_v41 = vld [vmem:[#allocation8 + $0x180] sm:$0xf0]  ;;  %v6513_v28 = vld [vmem:[#allocation8 + $0x240] sm:$0xf] }
 0x30f   :  { %7933 = vtanh.f32 %v2562_v47  ;;  %v6278_v47 = vor.u32 %v7656_v15, %v6277_v35  ;;  %v2572_v56 = vperm.slane %v2566_v45, 0  ;;  %3232 = vmatpush.bf16.msra.mxu0 %v6482_v46  ;;  %v6219_v35 = vld [vmem:[#allocation8 + $0x14] sm:$0xf0]  ;;  %v6366_v15 = vor.u32 %v7677_v21, %v6365_v20  ;;  %v7712_v45 = vld [vmem:[#allocation8 + $0x248] sm:$0xf0] }
 0x310   :  { %v6222_v46 = vor.u32 %v7639_v33, %v6219_v35  ;;  %v6506_v55 = vor.u32 %v7712_v45, %v6505_v43  ;;  %v6507_v20 = vld [vmem:[#allocation8 + $0x24c] sm:$0xf0]  ;;  %v6225_v35 = vld [vmem:[#allocation8 + $0x8] sm:$0xf]  ;;  %v7700_v43 = vld [vmem:[#allocation8 + $0x1ec] sm:$0xf] }
 0x311   :  { %3195 = vmatpush.bf16.msrb.mxu3 %v6278_v47  ;;  %v7679_v47 = vld [vmem:[#allocation8 + $0x144] sm:$0xf]  ;;  %v6510_v21 = vor.u32 %v7710_v19, %v6507_v20  ;;  %v6533_v20 = vld [vmem:[#allocation8 + $0x268] sm:$0xf] }
 0x312   :  { %3224 = vmatpush.bf16.msra.mxu2 %v6222_v46  ;;  %v7650_v46 = vld [vmem:[#allocation8 + $0x5c] sm:$0xf] }
 0x313   :  { %3233 = vmatpush.bf16.msra.mxu0 %v6462_v57  ;;  %v6485_v57 = vld [vmem:[#allocation8 + $0x210] sm:$0xf] }
 0x315   :  { %v7934_v40 = vpop.eup %7933 }
 0x316   :  { %2569 = vperm.xlu0 %7929, %v7934_v40   ;;  %v6257_v40 = vld [vmem:[#allocation8 + $0x50] sm:$0xf] }
 0x317   :  { %v6258_v58 = vor.u32 %v7651_v48, %v6257_v40  ;;  %3234 = vmatpush.bf16.msra.mxu0 %v6442_v8  ;;  %v6379_v40 = vld [vmem:[#allocation8 + $0x154] sm:$0xf0]  ;;  %v6370_v48 = vor.u32 %v7675_v38, %v6367_v39  ;;  %v6466_v8 = vor.u32 %v7702_v4, %v6465_v3  ;;  %v7655_v38 = vld [vmem:[#allocation8 + $0x84] sm:$0xf]  ;;  %v7680_v3 = vld [vmem:[#allocation8 + $0x14c] sm:$0xf] }
 0x318   :  { %v6287_v39 = vld [vmem:[#allocation8 + $0x94] sm:$0xf0]  ;;  %v6387_v4 = vld [vmem:[#allocation8 + $0x15c] sm:$0xf0] }
 0x319   :  { %3196 = vmatpush.bf16.msrb.mxu3 %v6258_v58  ;;  %v7707_v58 = vld [vmem:[#allocation8 + $0x220] sm:$0xf0] }
 0x31a   :  { %v6486_v2 = vor.u32 %v7707_v58, %v6485_v57  ;;  %v6427_v57 = vld [vmem:[#allocation8 + $0x1ac] sm:$0xf0] }
 0x31b   :  { %3235 = vmatpush.bf16.msra.mxu0 %v6422_v27  ;;  %v6307_v27 = vld [vmem:[#allocation8 + $0xbc] sm:$0xf0] }
 0x31d   :  { %3197 = vmatpush.bf16.msrb.mxu3 %v6238_v9  ;;  %v6265_v9 = vld [vmem:[#allocation8 + $0x58] sm:$0xf] }
 0x31e   :  { %v6266_v11 = vor.u32 %v7652_v10, %v6265_v9  ;;  %v6373_v9 = vld [vmem:[#allocation8 + $0x128] sm:$0xf]  ;;  %v7678_v10 = vld [vmem:[#allocation8 + $0x138] sm:$0xf0] }
 0x31f   :  { %3236 = vmatpush.bf16.msra.mxu0 %v6402_v32  ;;  %v6467_v32 = vld [vmem:[#allocation8 + $0x1fc] sm:$0xf0] }
 0x320   :  { %v6470_v45 = vor.u32 %v7700_v43, %v6467_v32  ;;  %v7791_v43 = vld [vmem:[#allocation9 + $0x240] sm:$0xf0]  ;;  %v7708_v32 = vld [vmem:[#allocation8 + $0x228] sm:$0xf0] }
 0x321   :  { %3198 = vmatpush.bf16.msrb.mxu3 %v6218_v49  ;;  %v6310_v49 = vor.u32 %v7660_v26, %v6307_v27  ;;  %v6333_v26 = vld [vmem:[#allocation8 + $0xd8] sm:$0xf]  ;;  %v7668_v27 = vld [vmem:[#allocation8 + $0xe8] sm:$0xf0] }
 0x325   :  { %3243 = vmatpush.bf16.msra.mxu3 %v6366_v15  ;;  %v7642_v15 = vld [vmem:[#allocation8 + $0x18] sm:$0xf0] }
 0x326   :  { %v6226_v37 = vor.u32 %v7642_v15, %v6225_v35  ;;  %v6493_v35 = vld [vmem:[#allocation8 + $0x218] sm:$0xf] }
 0x327   :  { %v6837_v15 = vld [vmem:[#allocation9 + $0x258] sm:$0xf] }
 0x329   :  { %3244 = vmatpush.bf16.msra.mxu3 %v6346_v52  ;;  %v7695_v52 = vld [vmem:[#allocation8 + $0x1c4] sm:$0xf] }
 0x32a   :  { %v6450_v54 = vor.u32 %v7695_v52, %v6447_v53  ;;  %v6797_v53 = vld [vmem:[#allocation9 + $0x208] sm:$0xf] }
 0x32d   :  { %3245 = vmatpush.bf16.msra.mxu3 %v6326_v34 }
 0x331   :  { %3246 = vmatpush.bf16.msra.mxu3 %v6306_v5  ;;  %v6390_v5 = vor.u32 %v7680_v3, %v6387_v4  ;;  %v6453_v4 = vld [vmem:[#allocation8 + $0x1c8] sm:$0xf] }
 0x388   :  { %v2570_v0 = vpop.permute.xlu0 %2569 }
 0x389   :  { %v2573_v17 = vmul.f32 %v2572_v56, %v2570_v0  ;;  %v6382_v56 = vor.u32 %v7679_v47, %v6379_v40  ;;  %v6267_v47 = vld [vmem:[#allocation8 + $0x6c] sm:$0xf0] }
 0x38a   :  { %v6270_v40 = vor.u32 %v7650_v46, %v6267_v47  ;;  %v6657_v46 = vld [vmem:[#allocation9 + $0xf0] sm:$0xf]  ;;  %v7751_v47 = vld [vmem:[#allocation9 + $0x100] sm:$0xf0] }
 0x38b   :  { %v2577_v23 = vadd.f32 %v7932_v7, %v2573_v17  ;;  %3237 = vmatpush.bf16.msra.mxu0 %v6382_v56  ;;  %v7657_v7 = vld [vmem:[#allocation8 + $0x90] sm:$0xf0]  ;;  %v6330_v17 = vor.u32 %v7665_v12, %v6327_v13  ;;  %v7690_v56 = vld [vmem:[#allocation8 + $0x19c] sm:$0xf]  ;;  %v6374_v13 = vor.u32 %v7678_v10, %v6373_v9  ;;  %v6658_v52 = vor.u32 %v7751_v47, %v6657_v46  ;;  %v7648_v10 = vld [vmem:[#allocation8 + $0x48] sm:$0xf0] }
 0x38c   :  { %v6286_v0 = vor.u32 %v7657_v7, %v6285_v6  ;;  %v6430_v58 = vor.u32 %v7690_v56, %v6427_v57  ;;  %v2580_v6 = vld [vmem:[%s8477_s12] sm:$0x3]  ;;  %v6473_v56 = vld [vmem:[#allocation8 + $0x1f0] sm:$0xf]  ;;  %v7703_v57 = vld [vmem:[#allocation8 + $0x200] sm:$0xf0] }
 0x38d   :  { %v2578_v1 = vmax.f32 %v2577_v23, 0.0  ;;  %v6245_v23 = vld [vmem:[#allocation8 + $0x30] sm:$0xf]  ;;  %v2590_v7 = vperm.slane %v2580_v6, 0  ;;  %v2591_v12 = vperm.slane %v2580_v6, 1  ;;  %v6474_v3 = vor.u32 %v7703_v57, %v6473_v56 }
 0x38e   :  { %3247 = vmatpush.bf16.msra.mxu3 %v6286_v0  ;;  %v6246_v25 = vor.u32 %v7647_v24, %v6245_v23  ;;  %v6354_v24 = vor.u32 %v7673_v18, %v6353_v36  ;;  %v6617_v6 = vld [vmem:[#allocation9 + $0xa0] sm:$0xf]  ;;  %v7683_v46 = vld [vmem:[#allocation8 + $0x160] sm:$0xf0]  ;;  %v6557_v47 = vld [vmem:[#allocation9 + $0x28] sm:$0xf] }
 0x38f   :  { %v2579_v31 = vpack.c.bf16 %v2578_v1, %v2578_v1  ;;  %3282 = vmatpush.bf16.msrb.mxu0 %v6530_v59  ;;  %v6487_v1 = vld [vmem:[#allocation8 + $0x224] sm:$0xf0]  ;;  %v7640_v59 = vld [vmem:[#allocation8 + $0xc] sm:$0xf]  ;;  %v6433_v36 = vld [vmem:[#allocation8 + $0x1a0] sm:$0xf] }
 0x390   :  { %v6490_v33 = vor.u32 %v7705_v30, %v6487_v1  ;;  %v6334_v30 = vor.u32 %v7668_v27, %v6333_v26  ;;  %v6313_v1 = vld [vmem:[#allocation8 + $0xb0] sm:$0xf]  ;;  %v7771_v27 = vld [vmem:[#allocation9 + $0x1a0] sm:$0xf0]  ;;  %v7826_v56 = vld [vmem:[#allocation9 + $0x358] sm:$0xf0] }
 0x391   :  { %6213 = vmatmul.msk.bf16.vlgmr.msrb.gmra.mxu1 %vm2555_vm0, %v2579_v31  ;;  %6214 = vmatmul.msk.bf16.vlgmr.msrb.gmra.mxu2 %vm2555_vm0, %v2579_v31  ;;  %v6290_v31 = vor.u32 %v7655_v38, %v6287_v39  ;;  %v6677_v38 = vld [vmem:[#allocation9 + $0x118] sm:$0xf]  ;;  %v6737_v26 = vld [vmem:[#allocation9 + $0x190] sm:$0xf] }
 0x392   :  { %3256 = vmatpush.bf16.msrb.mxu1 %v6526_v42  ;;  %3269 = vmatpush.bf16.msrb.mxu2 %v6370_v48  ;;  %v6406_v42 = vor.u32 %v7687_v41, %v6405_v16  ;;  %v6385_v48 = vld [vmem:[#allocation8 + $0x148] sm:$0xf]  ;;  %v7756_v41 = vld [vmem:[#allocation9 + $0x128] sm:$0xf0] }
 0x393   :  { %3248 = vmatpush.bf16.msra.mxu3 %v6266_v11  ;;  %3283 = vmatpush.bf16.msrb.mxu0 %v6510_v21  ;;  %v6386_v51 = vor.u32 %v7682_v50, %v6385_v48  ;;  %v7718_v21 = vld [vmem:[#allocation8 + $0x278] sm:$0xf0]  ;;  %v6293_v48 = vld [vmem:[#allocation8 + $0x88] sm:$0xf] }
 0x396   :  { %3257 = vmatpush.bf16.msrb.mxu1 %v6506_v55  ;;  %3270 = vmatpush.bf16.msrb.mxu2 %v6350_v61  ;;  %v6250_v55 = vor.u32 %v7645_v44, %v6247_v22  ;;  %v6227_v61 = vld [vmem:[#allocation8 + $0x1c] sm:$0xf0]  ;;  %v6494_v44 = vor.u32 %v7708_v32, %v6493_v35  ;;  %v6637_v22 = vld [vmem:[#allocation9 + $0xc8] sm:$0xf]  ;;  %v6577_v35 = vld [vmem:[#allocation9 + $0x50] sm:$0xf] }
 0x397   :  { %3249 = vmatpush.bf16.msra.mxu3 %v6246_v25  ;;  %3284 = vmatpush.bf16.msrb.mxu0 %v6490_v33  ;;  %v6230_v34 = vor.u32 %v7640_v59, %v6227_v61  ;;  %v7663_v33 = vld [vmem:[#allocation8 + $0xc0] sm:$0xf0]  ;;  %v6273_v59 = vld [vmem:[#allocation8 + $0x60] sm:$0xf] }
 0x398   :  { %v7831_v32 = vld [vmem:[#allocation9 + $0x380] sm:$0xf0] }
 0x39a   :  { %3258 = vmatpush.bf16.msrb.mxu1 %v6486_v2  ;;  %3271 = vmatpush.bf16.msrb.mxu2 %v6330_v17  ;;  %v6410_v2 = vor.u32 %v7685_v62, %v6407_v63  ;;  %v6777_v63 = vld [vmem:[#allocation9 + $0x1e0] sm:$0xf] }
 0x39b   :  { %3250 = vmatpush.bf16.msra.mxu3 %v6226_v37  ;;  %3285 = vmatpush.bf16.msrb.mxu0 %v6470_v45  ;;  %v7796_v37 = vld [vmem:[#allocation9 + $0x268] sm:$0xf0]  ;;  %v6678_v45 = vor.u32 %v7756_v41, %v6677_v38  ;;  %v6738_v38 = vor.u32 %v7771_v27, %v6737_v26  ;;  %v6639_v27 = vld [vmem:[#allocation9 + $0xdc] sm:$0xf0] }
 0x39c   :  { %v6838_v16 = vor.u32 %v7796_v37, %v6837_v15  ;;  %v7731_v15 = vld [vmem:[#allocation9 + $0x60] sm:$0xf0]  ;;  %v7744_v26 = vld [vmem:[#allocation9 + $0xcc] sm:$0xf] }
 0x39e   :  { %3259 = vmatpush.bf16.msrb.mxu1 %v6466_v8  ;;  %3272 = vmatpush.bf16.msrb.mxu2 %v6310_v49  ;;  %v6534_v49 = vor.u32 %v7718_v21, %v6533_v20  ;;  %v7736_v20 = vld [vmem:[#allocation9 + $0x88] sm:$0xf0] }
 0x39f   :  { %3286 = vmatpush.bf16.msrb.mxu0 %v6450_v54  ;;  %v7786_v54 = vld [vmem:[#allocation9 + $0x218] sm:$0xf0] }
 0x3a0   :  { %v6798_v61 = vor.u32 %v7786_v54, %v6797_v53  ;;  %v6697_v53 = vld [vmem:[#allocation9 + $0x140] sm:$0xf]  ;;  %v7761_v54 = vld [vmem:[#allocation9 + $0x150] sm:$0xf0] }
 0x3a2   :  { %3260 = vmatpush.bf16.msrb.mxu1 %v6446_v14  ;;  %3273 = vmatpush.bf16.msrb.mxu2 %v6290_v31 }
 0x3a3   :  { %3287 = vmatpush.bf16.msrb.mxu0 %v6430_v58 }
 0x3a6   :  { %3261 = vmatpush.bf16.msrb.mxu1 %v6426_v29  ;;  %3274 = vmatpush.bf16.msrb.mxu2 %v6270_v40  ;;  %v7713_v29 = vld [vmem:[#allocation8 + $0x250] sm:$0xf0]  ;;  %v6314_v40 = vor.u32 %v7663_v33, %v6313_v1  ;;  %v7688_v33 = vld [vmem:[#allocation8 + $0x188] sm:$0xf0] }
 0x3a7   :  { %3288 = vmatpush.bf16.msrb.mxu0 %v6410_v2  ;;  %v6514_v31 = vor.u32 %v7713_v29, %v6513_v28  ;;  %v7781_v2 = vld [vmem:[#allocation9 + $0x1f0] sm:$0xf0]  ;;  %v6413_v28 = vld [vmem:[#allocation8 + $0x178] sm:$0xf] }
 0x3a8   :  { %v6778_v9 = vor.u32 %v7781_v2, %v6777_v63  ;;  %v6997_v29 = vld [vmem:[#allocation9 + $0x398] sm:$0xf]  ;;  %v6414_v41 = vor.u32 %v7688_v33, %v6413_v28  ;;  %v7871_v63 = vld [vmem:[#allocation9 + $0x4c0] sm:$0xf0]  ;;  %v6698_v2 = vor.u32 %v7761_v54, %v6697_v53  ;;  %v7277_v28 = vld [vmem:[#allocation9 + $0x5c8] sm:$0xf]  ;;  %v6642_v33 = vor.u32 %v7744_v26, %v6639_v27 }
 0x3a9   :  { %v7896_v53 = vld [vmem:[#allocation9 + $0x588] sm:$0xf0]  ;;  %v6799_v26 = vld [vmem:[#allocation9 + $0x21c] sm:$0xf0] }
 0x3aa   :  { %3262 = vmatpush.bf16.msrb.mxu1 %v6406_v42  ;;  %3275 = vmatpush.bf16.msrb.mxu2 %v6250_v55  ;;  %v6817_v42 = vld [vmem:[#allocation9 + $0x230] sm:$0xf]  ;;  %v7746_v55 = vld [vmem:[#allocation9 + $0xd8] sm:$0xf0]  ;;  %v7824_v27 = vld [vmem:[#allocation9 + $0x34c] sm:$0xf] }
 0x3ab   :  { %3289 = vmatpush.bf16.msrb.mxu0 %v6390_v5  ;;  %v6818_v50 = vor.u32 %v7791_v43, %v6817_v42  ;;  %v6638_v62 = vor.u32 %v7746_v55, %v6637_v22  ;;  %v7698_v5 = vld [vmem:[#allocation8 + $0x1d8] sm:$0xf0]  ;;  %v6393_v42 = vld [vmem:[#allocation8 + $0x150] sm:$0xf]  ;;  %v6957_v55 = vld [vmem:[#allocation9 + $0x348] sm:$0xf] }
 0x3ac   :  { %v6977_v43 = vld [vmem:[#allocation9 + $0x370] sm:$0xf] }
 0x3ad   :  { %v7137_v22 = vld [vmem:[#allocation9 + $0x4b0] sm:$0xf] }
 0x3ae   :  { %3263 = vmatpush.bf16.msrb.mxu1 %v6386_v51  ;;  %3276 = vmatpush.bf16.msrb.mxu2 %v6230_v34  ;;  %v7658_v51 = vld [vmem:[#allocation8 + $0x98] sm:$0xf0]  ;;  %v7653_v34 = vld [vmem:[#allocation8 + $0x70] sm:$0xf0] }
 0x3af   :  { %v6294_v58 = vor.u32 %v7658_v51, %v6293_v48  ;;  %v7157_v48 = vld [vmem:[#allocation9 + $0x4d8] sm:$0xf] }
 0x40e   :  { %v2646_v8 = vpop.f32.mrf.mxu1 }
 0x40f   :  { %v2647_v0 = vadd.f32 %v2646_v8, %v2590_v7  ;;  %v7741_v7 = vld [vmem:[#allocation9 + $0xb0] sm:$0xf0]  ;;  %v6274_v8 = vor.u32 %v7653_v34, %v6273_v59  ;;  %v6537_v34 = vld [vmem:[#allocation9] sm:$0xf] }
 0x410   :  { %v6618_v18 = vor.u32 %v7741_v7, %v6617_v6  ;;  %v6937_v6 = vld [vmem:[#allocation9 + $0x320] sm:$0xf]  ;;  %v7821_v7 = vld [vmem:[#allocation9 + $0x330] sm:$0xf0] }
 0x411   :  { %v2663_v11 = vmax.f32 %v2647_v0, 0.0  ;;  %v6253_v0 = vld [vmem:[#allocation8 + $0x38] sm:$0xf] }
 0x412   :  { %v6254_v21 = vor.u32 %v7648_v10, %v6253_v0 }
 0x413   :  { %v8393_v17 = vpack.c.bf16 %v2663_v11, %v2663_v11  ;;  %v6757_v11 = vld [vmem:[#allocation9 + $0x1b8] sm:$0xf] }
 0x414   :  { %v2659_v14 = vpop.f32.mrf.mxu2 }
 0x415   :  { %v2660_v19 = vadd.f32 %v2659_v14, %v2591_v12  ;;  %3199 = vmatmul.bf16.vlgmr.msrb.gmra.mxu3 %v8393_v17  ;;  %3225 = vmatmul.bf16.vlgmr.msra.gmra.mxu2 %v8393_v17  ;;  %v7776_v12 = vld [vmem:[#allocation9 + $0x1c8] sm:$0xf0]  ;;  %v7693_v14 = vld [vmem:[#allocation8 + $0x1b0] sm:$0xf0] }
 0x416   :  { %v2648_v23 = vpop.f32.mrf.mxu1  ;;  %3295 = vmatpush.bf16.msrb.mxu3 %v6374_v13  ;;  %4623 = vmatpush.bf16.msra.mxu2 %v6678_v45  ;;  %v6454_v13 = vor.u32 %v7698_v5, %v6453_v4  ;;  %v6578_v45 = vor.u32 %v7731_v15, %v6577_v35  ;;  %v7916_v4 = vld [vmem:[#allocation9 + $0x628] sm:$0xf0]  ;;  %v6958_v5 = vor.u32 %v7826_v56, %v6957_v55  ;;  %v7077_v15 = vld [vmem:[#allocation9 + $0x438] sm:$0xf] }
 0x417   :  { %v2664_v25 = vmax.f32 %v2660_v19, 0.0  ;;  %v6597_v19 = vld [vmem:[#allocation9 + $0x78] sm:$0xf]  ;;  %v6233_v23 = vld [vmem:[#allocation8 + $0x10] sm:$0xf] }
 0x418   :  { %v6598_v1 = vor.u32 %v7736_v20, %v6597_v19  ;;  %v6917_v19 = vld [vmem:[#allocation9 + $0x2f8] sm:$0xf]  ;;  %v7816_v20 = vld [vmem:[#allocation9 + $0x308] sm:$0xf0] }
 0x419   :  { %v8397_v60 = vpack.c.bf16 %v2664_v25, %v2664_v25  ;;  %v7643_v25 = vld [vmem:[#allocation8 + $0x20] sm:$0xf0] }
 0x41a   :  { %3296 = vmatpush.bf16.msrb.mxu3 %v6354_v24  ;;  %4624 = vmatpush.bf16.msra.mxu2 %v6658_v52  ;;  %v6758_v24 = vor.u32 %v7776_v12, %v6757_v11  ;;  %v6234_v37 = vor.u32 %v7643_v25, %v6233_v23  ;;  %v6978_v52 = vor.u32 %v7831_v32, %v6977_v43  ;;  %v7749_v11 = vld [vmem:[#allocation9 + $0xf4] sm:$0xf]  ;;  %v6659_v12 = vld [vmem:[#allocation9 + $0x104] sm:$0xf0]  ;;  %v7806_v32 = vld [vmem:[#allocation9 + $0x2b8] sm:$0xf0] }
 0x41b   :  { %3212 = vmatmul.bf16.vlgmr.msra.gmra.mxu1 %v8397_v60  ;;  %3238 = vmatmul.bf16.vlgmr.msra.gmra.mxu0 %v8397_v60  ;;  %v6877_v43 = vld [vmem:[#allocation9 + $0x2a8] sm:$0xf] }
 0x41c   :  { %v2661_v39 = vpop.f32.mrf.mxu2  ;;  %3308 = vmatpush.bf16.msra.mxu1 %v6534_v49  ;;  %4636 = vmatpush.bf16.msra.mxu0 %v6838_v16  ;;  %v6434_v49 = vor.u32 %v7693_v14, %v6433_v36  ;;  %v7766_v16 = vld [vmem:[#allocation9 + $0x178] sm:$0xf0]  ;;  %v7297_v36 = vld [vmem:[#allocation9 + $0x5f0] sm:$0xf]  ;;  %v6938_v14 = vor.u32 %v7821_v7, %v6937_v6  ;;  %v6878_v54 = vor.u32 %v7806_v32, %v6877_v43  ;;  %v7881_v43 = vld [vmem:[#allocation9 + $0x510] sm:$0xf0] }
 0x41d   :  { %v6999_v6 = vld [vmem:[#allocation9 + $0x3ac] sm:$0xf0] }
 0x41e   :  { %3297 = vmatpush.bf16.msrb.mxu3 %v6334_v30  ;;  %4625 = vmatpush.bf16.msra.mxu2 %v6638_v62  ;;  %v7836_v30 = vld [vmem:[#allocation9 + $0x3a8] sm:$0xf0]  ;;  %v7721_v62 = vld [vmem:[#allocation9 + $0x10] sm:$0xf0] }
 0x41f   :  { %v6998_v39 = vor.u32 %v7836_v30, %v6997_v29  ;;  %v6538_v0 = vor.u32 %v7721_v62, %v6537_v34  ;;  %v7906_v29 = vld [vmem:[#allocation9 + $0x5d8] sm:$0xf0]  ;;  %v6918_v30 = vor.u32 %v7816_v20, %v6917_v19  ;;  %v7891_v19 = vld [vmem:[#allocation9 + $0x560] sm:$0xf0] }
 0x420   :  { %3309 = vmatpush.bf16.msra.mxu1 %v6514_v31  ;;  %4637 = vmatpush.bf16.msra.mxu0 %v6818_v50  ;;  %v6717_v31 = vld [vmem:[#allocation9 + $0x168] sm:$0xf]  ;;  %v7876_v50 = vld [vmem:[#allocation9 + $0x4e8] sm:$0xf0]  ;;  %v7846_v34 = vld [vmem:[#allocation9 + $0x3f8] sm:$0xf0] }
 0x421   :  { %v6718_v51 = vor.u32 %v7766_v16, %v6717_v31  ;;  %v7158_v59 = vor.u32 %v7876_v50, %v7157_v48  ;;  %v7856_v31 = vld [vmem:[#allocation9 + $0x448] sm:$0xf0]  ;;  %v7257_v16 = vld [vmem:[#allocation9 + $0x5a0] sm:$0xf]  ;;  %v7734_v48 = vld [vmem:[#allocation9 + $0x7c] sm:$0xf] }
 0x422   :  { %3298 = vmatpush.bf16.msrb.mxu3 %v6314_v40  ;;  %4626 = vmatpush.bf16.msra.mxu2 %v6618_v18  ;;  %v7726_v40 = vld [vmem:[#allocation9 + $0x38] sm:$0xf0]  ;;  %v7911_v18 = vld [vmem:[#allocation9 + $0x600] sm:$0xf0]  ;;  %v6599_v50 = vld [vmem:[#allocation9 + $0x8c] sm:$0xf0] }
 0x423   :  { %v6558_v57 = vor.u32 %v7726_v40, %v6557_v47  ;;  %v7298_v25 = vor.u32 %v7911_v18, %v7297_v36  ;;  %v7057_v47 = vld [vmem:[#allocation9 + $0x410] sm:$0xf]  ;;  %v6602_v55 = vor.u32 %v7734_v48, %v6599_v50 }
 0x424   :  { %3310 = vmatpush.bf16.msra.mxu1 %v6494_v44  ;;  %4638 = vmatpush.bf16.msra.mxu0 %v6798_v61  ;;  %v6394_v44 = vor.u32 %v7683_v46, %v6393_v42  ;;  %v6679_v61 = vld [vmem:[#allocation9 + $0x12c] sm:$0xf0]  ;;  %v7078_v46 = vor.u32 %v7856_v31, %v7077_v15  ;;  %v7779_v15 = vld [vmem:[#allocation9 + $0x1e4] sm:$0xf]  ;;  %v6939_v31 = vld [vmem:[#allocation9 + $0x334] sm:$0xf0] }
 0x425   :  { %3251 = vmatmul.bf16.vlgmr.msra.gmra.mxu3 %v8393_v17  ;;  %3277 = vmatmul.bf16.vlgmr.msrb.gmra.mxu2 %v8393_v17  ;;  %v6919_v48 = vld [vmem:[#allocation9 + $0x30c] sm:$0xf0] }
 0x426   :  { %3299 = vmatpush.bf16.msrb.mxu3 %v6294_v58  ;;  %4627 = vmatpush.bf16.msra.mxu2 %v6598_v1  ;;  %v7754_v58 = vld [vmem:[#allocation9 + $0x11c] sm:$0xf]  ;;  %v7811_v1 = vld [vmem:[#allocation9 + $0x2e0] sm:$0xf0] }
 0x428   :  { %3311 = vmatpush.bf16.msra.mxu1 %v6474_v3  ;;  %4639 = vmatpush.bf16.msra.mxu0 %v6778_v9  ;;  %v7317_v3 = vld [vmem:[#allocation9 + $0x618] sm:$0xf]  ;;  %v7138_v9 = vor.u32 %v7871_v63, %v7137_v22  ;;  %v7801_v22 = vld [vmem:[#allocation9 + $0x290] sm:$0xf0] }
 0x429   :  { %v7318_v10 = vor.u32 %v7916_v4, %v7317_v3  ;;  %v7017_v3 = vld [vmem:[#allocation9 + $0x3c0] sm:$0xf]  ;;  %v7841_v4 = vld [vmem:[#allocation9 + $0x3d0] sm:$0xf0] }
 0x42a   :  { %3300 = vmatpush.bf16.msrb.mxu3 %v6274_v8  ;;  %4628 = vmatpush.bf16.msra.mxu2 %v6578_v45  ;;  %v6682_v8 = vor.u32 %v7754_v58, %v6679_v61  ;;  %v6839_v58 = vld [vmem:[#allocation9 + $0x26c] sm:$0xf0]  ;;  %v7037_v61 = vld [vmem:[#allocation9 + $0x3e8] sm:$0xf]  ;;  %v7018_v7 = vor.u32 %v7841_v4, %v7017_v3  ;;  %v6859_v3 = vld [vmem:[#allocation9 + $0x294] sm:$0xf0] }
 0x42b   :  { %3264 = vmatmul.bf16.vlgmr.msrb.gmra.mxu1 %v8397_v60  ;;  %3290 = vmatmul.bf16.vlgmr.msrb.gmra.mxu0 %v8397_v60 }
 0x42c   :  { %3312 = vmatpush.bf16.msra.mxu1 %v6454_v13  ;;  %4640 = vmatpush.bf16.msra.mxu0 %v6758_v24  ;;  %v7866_v13 = vld [vmem:[#allocation9 + $0x498] sm:$0xf0]  ;;  %v7097_v24 = vld [vmem:[#allocation9 + $0x460] sm:$0xf] }
 0x42e   :  { %3301 = vmatpush.bf16.msrb.mxu3 %v6254_v21  ;;  %4629 = vmatpush.bf16.msra.mxu2 %v6558_v57  ;;  %v6662_v21 = vor.u32 %v7749_v11, %v6659_v12  ;;  %v7794_v57 = vld [vmem:[#allocation9 + $0x25c] sm:$0xf]  ;;  %v6819_v11 = vld [vmem:[#allocation9 + $0x244] sm:$0xf0]  ;;  %v7829_v12 = vld [vmem:[#allocation9 + $0x374] sm:$0xf] }
 0x42f   :  { %v6842_v63 = vor.u32 %v7794_v57, %v6839_v58  ;;  %v7804_v57 = vld [vmem:[#allocation9 + $0x2ac] sm:$0xf] }
 0x430   :  { %3313 = vmatpush.bf16.msra.mxu1 %v6434_v49  ;;  %4641 = vmatpush.bf16.msra.mxu0 %v6738_v38  ;;  %v7861_v49 = vld [vmem:[#allocation9 + $0x470] sm:$0xf0]  ;;  %v7739_v38 = vld [vmem:[#allocation9 + $0xa4] sm:$0xf] }
 0x431   :  { %v7098_v35 = vor.u32 %v7861_v49, %v7097_v24  ;;  %v7784_v24 = vld [vmem:[#allocation9 + $0x20c] sm:$0xf]  ;;  %v6959_v49 = vld [vmem:[#allocation9 + $0x35c] sm:$0xf0] }
 0x432   :  { %3302 = vmatpush.bf16.msrb.mxu3 %v6234_v37  ;;  %4630 = vmatpush.bf16.msra.mxu2 %v6538_v0  ;;  %v7278_v37 = vor.u32 %v7906_v29, %v7277_v28  ;;  %v7729_v0 = vld [vmem:[#allocation9 + $0x54] sm:$0xf]  ;;  %v6802_v28 = vor.u32 %v7784_v24, %v6799_v26  ;;  %v6962_v29 = vor.u32 %v7824_v27, %v6959_v49  ;;  %v7139_v27 = vld [vmem:[#allocation9 + $0x4c4] sm:$0xf0] }
 0x433   :  { %v7869_v26 = vld [vmem:[#allocation9 + $0x4b4] sm:$0xf] }
 0x434   :  { %3314 = vmatpush.bf16.msra.mxu1 %v6414_v41  ;;  %4642 = vmatpush.bf16.msra.mxu0 %v6718_v51  ;;  %v7901_v41 = vld [vmem:[#allocation9 + $0x5b0] sm:$0xf0]  ;;  %v7851_v51 = vld [vmem:[#allocation9 + $0x420] sm:$0xf0] }
 0x435   :  { %3303 = vmatmul.bf16.vlgmr.msrb.gmra.mxu3 %v8393_v17  ;;  %v7117_v17 = vld [vmem:[#allocation9 + $0x488] sm:$0xf]  ;;  %v7258_v40 = vor.u32 %v7901_v41, %v7257_v16  ;;  %v7058_v56 = vor.u32 %v7851_v51, %v7057_v47  ;;  %v7814_v47 = vld [vmem:[#allocation9 + $0x2fc] sm:$0xf]  ;;  %v7769_v51 = vld [vmem:[#allocation9 + $0x194] sm:$0xf] }
 0x436   :  { %4649 = vmatpush.bf16.msra.mxu3 %v6998_v39  ;;  %v7118_v23 = vor.u32 %v7866_v13, %v7117_v17  ;;  %4675 = vmatpush.bf16.msrb.mxu2 %v7318_v10  ;;  %v6619_v39 = vld [vmem:[#allocation9 + $0xb4] sm:$0xf0]  ;;  %v7789_v17 = vld [vmem:[#allocation9 + $0x234] sm:$0xf]  ;;  %v6979_v13 = vld [vmem:[#allocation9 + $0x384] sm:$0xf0]  ;;  %v6922_v50 = vor.u32 %v7814_v47, %v6919_v48 }
 0x437   :  { %v6622_v45 = vor.u32 %v7739_v38, %v6619_v39  ;;  %v6822_v36 = vor.u32 %v7789_v17, %v6819_v11  ;;  %v6982_v18 = vor.u32 %v7829_v12, %v6979_v13  ;;  %v6779_v38 = vld [vmem:[#allocation9 + $0x1f4] sm:$0xf0]  ;;  %v7819_v39 = vld [vmem:[#allocation9 + $0x324] sm:$0xf]  ;;  %v7874_v13 = vld [vmem:[#allocation9 + $0x4dc] sm:$0xf] }
 0x438   :  { %3315 = vmatpush.bf16.msra.mxu1 %v6394_v44  ;;  %4643 = vmatpush.bf16.msra.mxu0 %v6698_v2  ;;  %v6857_v44 = vld [vmem:[#allocation9 + $0x280] sm:$0xf]  ;;  %v7038_v2 = vor.u32 %v7846_v34, %v7037_v61  ;;  %v6782_v16 = vor.u32 %v7779_v15, %v6779_v38  ;;  %v6942_v41 = vor.u32 %v7819_v39, %v6939_v31  ;;  %v7759_v34 = vld [vmem:[#allocation9 + $0x144] sm:$0xf]  ;;  %v7904_v39 = vld [vmem:[#allocation9 + $0x5cc] sm:$0xf] }
 0x439   :  { %v6858_v62 = vor.u32 %v7801_v22, %v6857_v44  ;;  %v6899_v44 = vld [vmem:[#allocation9 + $0x2e4] sm:$0xf0]  ;;  %v7119_v38 = vld [vmem:[#allocation9 + $0x49c] sm:$0xf0]  ;;  %v7259_v48 = vld [vmem:[#allocation9 + $0x5b4] sm:$0xf0] }
 0x43a   :  { %4650 = vmatpush.bf16.msra.mxu3 %v6978_v52  ;;  %4676 = vmatpush.bf16.msrb.mxu2 %v7298_v25  ;;  %v7237_v52 = vld [vmem:[#allocation9 + $0x578] sm:$0xf]  ;;  %v7279_v31 = vld [vmem:[#allocation9 + $0x5dc] sm:$0xf0] }
 0x43b   :  { %3316 = vmatmul.bf16.vlgmr.msra.gmra.mxu1 %v8397_v60  ;;  %v6897_v60 = vld [vmem:[#allocation9 + $0x2d0] sm:$0xf] }
 0x43c   :  { %4662 = vmatpush.bf16.msrb.mxu1 %v7158_v59  ;;  %4688 = vmatpush.bf16.msrb.mxu0 %v6682_v8  ;;  %v6898_v42 = vor.u32 %v7811_v1, %v6897_v60  ;;  %v7238_v59 = vor.u32 %v7896_v53, %v7237_v52  ;;  %v7886_v60 = vld [vmem:[#allocation9 + $0x538] sm:$0xf0]  ;;  %v6739_v52 = vld [vmem:[#allocation9 + $0x1a4] sm:$0xf0] }
 0x43d   :  { %v6742_v53 = vor.u32 %v7769_v51, %v6739_v52 }
 0x43e   :  { %4651 = vmatpush.bf16.msra.mxu3 %v6958_v5  ;;  %4677 = vmatpush.bf16.msrb.mxu2 %v7278_v37  ;;  %v7834_v5 = vld [vmem:[#allocation9 + $0x39c] sm:$0xf] }
 0x43f   :  { %v7002_v8 = vor.u32 %v7834_v5, %v6999_v6  ;;  %v8410_v5 = vld [vmem:[%s8479_s14] sm:$0x1f] }
 0x440   :  { %4663 = vmatpush.bf16.msrb.mxu1 %v7138_v9  ;;  %4689 = vmatpush.bf16.msrb.mxu0 %v6662_v21  ;;  %v6579_v9 = vld [vmem:[#allocation9 + $0x64] sm:$0xf0]  ;;  %v7724_v21 = vld [vmem:[#allocation9 + $0x2c] sm:$0xf]  ;;  %v2765_v6 = vperm.slane %v8410_v5, 0 }
 0x441   :  { %v6582_v10 = vor.u32 %v7729_v0, %v6579_v9 }
 0x442   :  { %4652 = vmatpush.bf16.msra.mxu3 %v6938_v14  ;;  %4678 = vmatpush.bf16.msrb.mxu2 %v7258_v40  ;;  %v7217_v14 = vld [vmem:[#allocation9 + $0x550] sm:$0xf] }
 0x443   :  { %v7218_v20 = vor.u32 %v7891_v19, %v7217_v14  ;;  %v7914_v14 = vld [vmem:[#allocation9 + $0x61c] sm:$0xf]  ;;  %v7319_v19 = vld [vmem:[#allocation9 + $0x62c] sm:$0xf0] }
 0x444   :  { %4664 = vmatpush.bf16.msrb.mxu1 %v7118_v23  ;;  %4690 = vmatpush.bf16.msrb.mxu0 %v6642_v33  ;;  %v6559_v23 = vld [vmem:[#allocation9 + $0x3c] sm:$0xf0]  ;;  %v7719_v33 = vld [vmem:[#allocation9 + $0x4] sm:$0xf] }
 0x445   :  { %v6562_v25 = vor.u32 %v7724_v21, %v6559_v23 }
 0x446   :  { %4653 = vmatpush.bf16.msra.mxu3 %v6918_v30  ;;  %4679 = vmatpush.bf16.msrb.mxu2 %v7238_v59  ;;  %v7197_v30 = vld [vmem:[#allocation9 + $0x528] sm:$0xf]  ;;  %v6879_v59 = vld [vmem:[#allocation9 + $0x2bc] sm:$0xf0] }
 0x447   :  { %v7198_v1 = vor.u32 %v7886_v60, %v7197_v30  ;;  %v6882_v61 = vor.u32 %v7804_v57, %v6879_v59  ;;  %v7909_v30 = vld [vmem:[#allocation9 + $0x5f4] sm:$0xf]  ;;  %v7299_v60 = vld [vmem:[#allocation9 + $0x604] sm:$0xf0]  ;;  %v6685_v57 = vld [vmem:[#allocation9 + $0x120] sm:$0xf] }
 0x448   :  { %4665 = vmatpush.bf16.msrb.mxu1 %v7098_v35  ;;  %4691 = vmatpush.bf16.msrb.mxu0 %v6622_v45  ;;  %v6539_v35 = vld [vmem:[#allocation9 + $0x14] sm:$0xf0]  ;;  %v7774_v45 = vld [vmem:[#allocation9 + $0x1bc] sm:$0xf]  ;;  %v7302_v15 = vor.u32 %v7909_v30, %v7299_v60  ;;  %v7757_v59 = vld [vmem:[#allocation9 + $0x130] sm:$0xf0] }
 0x449   :  { %v6542_v37 = vor.u32 %v7719_v33, %v6539_v35  ;;  %v7142_v35 = vor.u32 %v7869_v26, %v7139_v27  ;;  %v2769_v27 = vperm.slane %v8410_v5, 4 }
 0x44a   :  { %4654 = vmatpush.bf16.msra.mxu3 %v6898_v42  ;;  %4680 = vmatpush.bf16.msrb.mxu2 %v7218_v20  ;;  %v7177_v42 = vld [vmem:[#allocation9 + $0x500] sm:$0xf] }
 0x44b   :  { %v7178_v32 = vor.u32 %v7881_v43, %v7177_v42  ;;  %v7282_v43 = vor.u32 %v7904_v39, %v7279_v31 }
 0x44c   :  { %4666 = vmatpush.bf16.msrb.mxu1 %v7078_v46  ;;  %4692 = vmatpush.bf16.msrb.mxu0 %v6602_v55  ;;  %v6759_v46 = vld [vmem:[#allocation9 + $0x1cc] sm:$0xf0]  ;;  %v7764_v55 = vld [vmem:[#allocation9 + $0x16c] sm:$0xf] }
 0x44d   :  { %v6762_v40 = vor.u32 %v7774_v45, %v6759_v46  ;;  %v7099_v45 = vld [vmem:[#allocation9 + $0x474] sm:$0xf0] }
 0x44e   :  { %4655 = vmatpush.bf16.msra.mxu3 %v6878_v54  ;;  %4681 = vmatpush.bf16.msrb.mxu2 %v7198_v1  ;;  %v7809_v54 = vld [vmem:[#allocation9 + $0x2d4] sm:$0xf] }
 0x44f   :  { %v6902_v22 = vor.u32 %v7809_v54, %v6899_v44 }
 0x450   :  { %4667 = vmatpush.bf16.msrb.mxu1 %v7058_v56  ;;  %4693 = vmatpush.bf16.msrb.mxu0 %v6582_v10  ;;  %v6719_v56 = vld [vmem:[#allocation9 + $0x17c] sm:$0xf0] }
 0x451   :  { %v6722_v58 = vor.u32 %v7764_v55, %v6719_v56  ;;  %v7894_v55 = vld [vmem:[#allocation9 + $0x57c] sm:$0xf]  ;;  %v7239_v56 = vld [vmem:[#allocation9 + $0x58c] sm:$0xf0] }
 0x452   :  { %4656 = vmatpush.bf16.msra.mxu3 %v6858_v62  ;;  %4682 = vmatpush.bf16.msrb.mxu2 %v7178_v32  ;;  %v6699_v62 = vld [vmem:[#allocation9 + $0x154] sm:$0xf0]  ;;  %v7859_v32 = vld [vmem:[#allocation9 + $0x464] sm:$0xf] }
 0x453   :  { %v7102_v54 = vor.u32 %v7859_v32, %v7099_v45  ;;  %v6625_v45 = vld [vmem:[#allocation9 + $0xa8] sm:$0xf] }
 0x454   :  { %4668 = vmatpush.bf16.msrb.mxu1 %v7038_v2  ;;  %4694 = vmatpush.bf16.msrb.mxu0 %v6562_v25  ;;  %v6702_v2 = vor.u32 %v7759_v34, %v6699_v62  ;;  %v7322_v25 = vor.u32 %v7914_v14, %v7319_v19  ;;  %v7797_v34 = vld [vmem:[#allocation9 + $0x270] sm:$0xf0] }
 0x456   :  { %4701 = vmatpush.bf16.msrb.mxu3 %v6842_v63  ;;  %v7799_v63 = vld [vmem:[#allocation9 + $0x284] sm:$0xf] }
 0x457   :  { %v6862_v4 = vor.u32 %v7799_v63, %v6859_v3  ;;  %v7854_v63 = vld [vmem:[#allocation9 + $0x43c] sm:$0xf] }
 0x458   :  { %4669 = vmatpush.bf16.msrb.mxu1 %v7018_v7  ;;  %4695 = vmatpush.bf16.msrb.mxu0 %v6542_v37  ;;  %v2766_v7 = vperm.slane %v8410_v5, 1  ;;  %v7864_v37 = vld [vmem:[#allocation9 + $0x48c] sm:$0xf] }
 0x459   :  { %v7122_v42 = vor.u32 %v7864_v37, %v7119_v38  ;;  %v7844_v37 = vld [vmem:[#allocation9 + $0x3ec] sm:$0xf]  ;;  %v7039_v38 = vld [vmem:[#allocation9 + $0x3fc] sm:$0xf0] }
 0x45a   :  { %4702 = vmatpush.bf16.msrb.mxu3 %v6822_v36  ;;  %v7159_v36 = vld [vmem:[#allocation9 + $0x4ec] sm:$0xf0]  ;;  %v7042_v32 = vor.u32 %v7844_v37, %v7039_v38  ;;  %v7862_v37 = vld [vmem:[#allocation9 + $0x478] sm:$0xf0] }
 0x45b   :  { %v7162_v23 = vor.u32 %v7874_v13, %v7159_v36  ;;  %v6665_v13 = vld [vmem:[#allocation9 + $0xf8] sm:$0xf]  ;;  %v7752_v36 = vld [vmem:[#allocation9 + $0x108] sm:$0xf0] }
 0x45c   :  { %4714 = vmatpush.bf16.msra.mxu1 %v7002_v8  ;;  %v6666_v26 = vor.u32 %v7752_v36, %v6665_v13  ;;  %v7732_v13 = vld [vmem:[#allocation9 + $0x68] sm:$0xf0]  ;;  %v6745_v36 = vld [vmem:[#allocation9 + $0x198] sm:$0xf] }
 0x45e   :  { %4703 = vmatpush.bf16.msrb.mxu3 %v6802_v28 }
 0x460   :  { %4715 = vmatpush.bf16.msra.mxu1 %v6982_v18 }
 0x462   :  { %4704 = vmatpush.bf16.msrb.mxu3 %v6782_v16  ;;  %v2767_v16 = vperm.slane %v8410_v5, 2 }
 0x464   :  { %4716 = vmatpush.bf16.msra.mxu1 %v6962_v29 }
 0x466   :  { %4705 = vmatpush.bf16.msrb.mxu3 %v6762_v40  ;;  %v7899_v40 = vld [vmem:[#allocation9 + $0x5a4] sm:$0xf] }
 0x468   :  { %4717 = vmatpush.bf16.msra.mxu1 %v6942_v41  ;;  %v2768_v41 = vperm.slane %v8410_v5, 3 }
 0x46a   :  { %4706 = vmatpush.bf16.msrb.mxu3 %v6742_v53 }
 0x46c   :  { %4718 = vmatpush.bf16.msra.mxu1 %v6922_v50 }
 0x46e   :  { %4707 = vmatpush.bf16.msrb.mxu3 %v6722_v58 }
 0x470   :  { %4719 = vmatpush.bf16.msra.mxu1 %v6902_v22  ;;  %v7262_v22 = vor.u32 %v7899_v40, %v7259_v48  ;;  %v7782_v48 = vld [vmem:[#allocation9 + $0x1f8] sm:$0xf0] }
 0x472   :  { %4708 = vmatpush.bf16.msrb.mxu3 %v6702_v2  ;;  %v7079_v2 = vld [vmem:[#allocation9 + $0x44c] sm:$0xf0] }
 0x474   :  { %4720 = vmatpush.bf16.msra.mxu1 %v6882_v61  ;;  %v6845_v61 = vld [vmem:[#allocation9 + $0x260] sm:$0xf] }
 0x478   :  { %4721 = vmatpush.bf16.msra.mxu1 %v6862_v4 }
 0x498   :  { %v3200_v8 = vpop.f32.mrf.mxu3  ;;  %v3213_v0 = vpop.f32.mrf.mxu1 }
 0x499   :  { %v3201_v9 = vadd.f32 %v3200_v8, %v2765_v6  ;;  %v3226_v17 = vpop.f32.mrf.mxu2  ;;  %v3239_v10 = vpop.f32.mrf.mxu0  ;;  %v7242_v6 = vor.u32 %v7894_v55, %v7239_v56  ;;  %v7889_v8 = vld [vmem:[#allocation9 + $0x554] sm:$0xf]  ;;  %v6605_v55 = vld [vmem:[#allocation9 + $0x80] sm:$0xf] }
 0x49a   :  { %v3227_v11 = vadd.f32 %v3226_v17, %v2766_v7  ;;  %v6686_v7 = vor.u32 %v7757_v59, %v6685_v57  ;;  %v6765_v59 = vld [vmem:[#allocation9 + $0x1c0] sm:$0xf] }
 0x49b   :  { %v3214_v12 = vadd.f32 %v3213_v0, %v3201_v9  ;;  %v7219_v0 = vld [vmem:[#allocation9 + $0x564] sm:$0xf0] }
 0x49c   :  { %v3240_v18 = vadd.f32 %v3239_v10, %v3227_v11  ;;  %v6846_v11 = vor.u32 %v7797_v34, %v6845_v61  ;;  %v7777_v61 = vld [vmem:[#allocation9 + $0x1d0] sm:$0xf0] }
 0x49d   :  { %v3321_v20 = vmax.f32 %v3214_v12, 0.0  ;;  %v7082_v12 = vor.u32 %v7854_v63, %v7079_v2  ;;  %v7005_v63 = vld [vmem:[#allocation9 + $0x3a0] sm:$0xf]  ;;  %v7837_v2 = vld [vmem:[#allocation9 + $0x3b0] sm:$0xf0] }
 0x49e   :  { %v3322_v21 = vmax.f32 %v3240_v18, 0.0  ;;  %v6825_v18 = vld [vmem:[#allocation9 + $0x238] sm:$0xf] }
 0x49f   :  { %v8414_v24 = vpack.c.bf16 %v3321_v20, %v3321_v20  ;;  %v7792_v20 = vld [vmem:[#allocation9 + $0x248] sm:$0xf0] }
 0x4a0   :  { %v8416_v49 = vpack.c.bf16 %v3322_v21, %v3322_v21  ;;  %v3202_v28 = vpop.f32.mrf.mxu3  ;;  %v3215_v29 = vpop.f32.mrf.mxu1  ;;  %v7849_v21 = vld [vmem:[#allocation9 + $0x414] sm:$0xf]  ;;  %v6826_v30 = vor.u32 %v7792_v20, %v6825_v18  ;;  %v7832_v20 = vld [vmem:[#allocation9 + $0x388] sm:$0xf0] }
 0x4a1   :  { %v3228_v1 = vpop.f32.mrf.mxu2  ;;  %v3241_v33 = vpop.f32.mrf.mxu0  ;;  %4631 = vmatmul.bf16.vlgmr.msra.gmra.mxu2 %v8414_v24  ;;  %v7884_v28 = vld [vmem:[#allocation9 + $0x52c] sm:$0xf]  ;;  %v7199_v29 = vld [vmem:[#allocation9 + $0x53c] sm:$0xf0] }
 0x4a2   :  { %4644 = vmatmul.bf16.vlgmr.msra.gmra.mxu0 %v8416_v49  ;;  %4727 = vmatpush.bf16.msra.mxu2 %v7162_v23  ;;  %v7059_v23 = vld [vmem:[#allocation9 + $0x424] sm:$0xf0]  ;;  %v6645_v1 = vld [vmem:[#allocation9 + $0xd0] sm:$0xf]  ;;  %v7747_v33 = vld [vmem:[#allocation9 + $0xe0] sm:$0xf0]  ;;  %v7202_v39 = vor.u32 %v7884_v28, %v7199_v29 }
 0x4a3   :  { %4740 = vmatpush.bf16.msra.mxu0 %v7322_v25  ;;  %v7222_v25 = vor.u32 %v7889_v8, %v7219_v0  ;;  %v7062_v60 = vor.u32 %v7849_v21, %v7059_v23  ;;  %v6646_v31 = vor.u32 %v7747_v33, %v6645_v1  ;;  %v7125_v21 = vld [vmem:[#allocation9 + $0x490] sm:$0xf]  ;;  %v7867_v23 = vld [vmem:[#allocation9 + $0x4a0] sm:$0xf0] }
 0x4a4   :  { %v6565_v28 = vld [vmem:[#allocation9 + $0x30] sm:$0xf]  ;;  %v7727_v29 = vld [vmem:[#allocation9 + $0x40] sm:$0xf0] }
 0x4a5   :  { %v7767_v1 = vld [vmem:[#allocation9 + $0x180] sm:$0xf0]  ;;  %v6965_v33 = vld [vmem:[#allocation9 + $0x350] sm:$0xf]  ;;  %v6566_v38 = vor.u32 %v7727_v29, %v6565_v28  ;;  %v7265_v28 = vld [vmem:[#allocation9 + $0x5a8] sm:$0xf] }
 0x4a6   :  { %4728 = vmatpush.bf16.msra.mxu2 %v7142_v35  ;;  %v6805_v35 = vld [vmem:[#allocation9 + $0x210] sm:$0xf]  ;;  %v7902_v29 = vld [vmem:[#allocation9 + $0x5b8] sm:$0xf0] }
 0x4a7   :  { %4741 = vmatpush.bf16.msra.mxu0 %v7302_v15  ;;  %v7787_v15 = vld [vmem:[#allocation9 + $0x220] sm:$0xf0] }
 0x4a8   :  { %v3252_v46 = vpop.f32.mrf.mxu3  ;;  %v3265_v47 = vpop.f32.mrf.mxu1 }
 0x4a9   :  { %v3253_v50 = vadd.f32 %v3252_v46, %v2767_v16  ;;  %v3278_v51 = vpop.f32.mrf.mxu2  ;;  %v3291_v52 = vpop.f32.mrf.mxu0  ;;  %v7879_v16 = vld [vmem:[#allocation9 + $0x504] sm:$0xf]  ;;  %v7742_v46 = vld [vmem:[#allocation9 + $0xb8] sm:$0xf0] }
 0x4aa   :  { %v3279_v53 = vadd.f32 %v3278_v51, %v2768_v41  ;;  %4729 = vmatpush.bf16.msra.mxu2 %v7122_v42  ;;  %v7179_v41 = vld [vmem:[#allocation9 + $0x514] sm:$0xf0]  ;;  %v7877_v51 = vld [vmem:[#allocation9 + $0x4f0] sm:$0xf0] }
 0x4ab   :  { %v3266_v44 = vadd.f32 %v3265_v47, %v3253_v50  ;;  %4742 = vmatpush.bf16.msra.mxu0 %v7282_v43  ;;  %v6806_v43 = vor.u32 %v7787_v15, %v6805_v35  ;;  %v6785_v47 = vld [vmem:[#allocation9 + $0x1e8] sm:$0xf]  ;;  %v7165_v50 = vld [vmem:[#allocation9 + $0x4e0] sm:$0xf]  ;;  %v7827_v35 = vld [vmem:[#allocation9 + $0x360] sm:$0xf0] }
 0x4ac   :  { %v3292_v58 = vadd.f32 %v3291_v52, %v3279_v53  ;;  %v7839_v52 = vld [vmem:[#allocation9 + $0x3c4] sm:$0xf]  ;;  %v7019_v53 = vld [vmem:[#allocation9 + $0x3d4] sm:$0xf0]  ;;  %v6786_v56 = vor.u32 %v7782_v48, %v6785_v47  ;;  %v7166_v57 = vor.u32 %v7877_v51, %v7165_v50  ;;  %v7105_v15 = vld [vmem:[#allocation9 + $0x468] sm:$0xf] }
 0x4ad   :  { %v3323_v62 = vmax.f32 %v3266_v44, 0.0  ;;  %v7182_v44 = vor.u32 %v7879_v16, %v7179_v41  ;;  %v6966_v16 = vor.u32 %v7827_v35, %v6965_v33  ;;  %v7722_v41 = vld [vmem:[#allocation9 + $0x18] sm:$0xf0]  ;;  %v7857_v47 = vld [vmem:[#allocation9 + $0x450] sm:$0xf0] }
 0x4ae   :  { %v3324_v3 = vmax.f32 %v3292_v58, 0.0  ;;  %4730 = vmatpush.bf16.msra.mxu2 %v7102_v54  ;;  %v7737_v58 = vld [vmem:[#allocation9 + $0x90] sm:$0xf0]  ;;  %v7755_v51 = vld [vmem:[#allocation9 + $0x124] sm:$0xf] }
 0x4af   :  { %v8422_v4 = vpack.c.bf16 %v3323_v62, %v3323_v62  ;;  %4743 = vmatpush.bf16.msra.mxu0 %v7262_v22  ;;  %v6626_v22 = vor.u32 %v7742_v46, %v6625_v45  ;;  %v7022_v62 = vor.u32 %v7839_v52, %v7019_v53  ;;  %v6606_v8 = vor.u32 %v7737_v58, %v6605_v55  ;;  %v7822_v45 = vld [vmem:[#allocation9 + $0x338] sm:$0xf0]  ;;  %v7085_v46 = vld [vmem:[#allocation9 + $0x440] sm:$0xf]  ;;  %v7917_v48 = vld [vmem:[#allocation9 + $0x630] sm:$0xf0] }
 0x4b0   :  { %v8424_v9 = vpack.c.bf16 %v3324_v3, %v3324_v3  ;;  %v3254_v17 = vpop.f32.mrf.mxu3  ;;  %v3267_v10 = vpop.f32.mrf.mxu1  ;;  %v7145_v3 = vld [vmem:[#allocation9 + $0x4b8] sm:$0xf]  ;;  %v6925_v55 = vld [vmem:[#allocation9 + $0x300] sm:$0xf] }
 0x4b1   :  { %v3280_v14 = vpop.f32.mrf.mxu2  ;;  %v3293_v19 = vpop.f32.mrf.mxu0  ;;  %4657 = vmatmul.bf16.vlgmr.msra.gmra.mxu3 %v8422_v4  ;;  %v6766_v10 = vor.u32 %v7777_v61, %v6765_v59  ;;  %v6687_v52 = vld [vmem:[#allocation9 + $0x134] sm:$0xf0]  ;;  %v7852_v59 = vld [vmem:[#allocation9 + $0x428] sm:$0xf0] }
 0x4b2   :  { %4670 = vmatmul.bf16.vlgmr.msrb.gmra.mxu1 %v8424_v9  ;;  %4696 = vmatmul.bf16.vlgmr.msrb.gmra.mxu0 %v8414_v24  ;;  %v7772_v14 = vld [vmem:[#allocation9 + $0x1a8] sm:$0xf0]  ;;  %v6985_v19 = vld [vmem:[#allocation9 + $0x378] sm:$0xf]  ;;  %v6690_v58 = vor.u32 %v7755_v51, %v6687_v52 }
 0x4b3   :  { %4744 = vmatpush.bf16.msra.mxu0 %v7242_v6  ;;  %4753 = vmatpush.bf16.msra.mxu3 %v6686_v7  ;;  %v7872_v6 = vld [vmem:[#allocation9 + $0x4c8] sm:$0xf0]  ;;  %v7305_v61 = vld [vmem:[#allocation9 + $0x5f8] sm:$0xf] }
 0x4b4   :  { %4766 = vmatpush.bf16.msrb.mxu1 %v6846_v11  ;;  %4731 = vmatpush.bf16.msra.mxu2 %v7082_v12  ;;  %v7006_v11 = vor.u32 %v7837_v2, %v7005_v63  ;;  %v6585_v12 = vld [vmem:[#allocation9 + $0x58] sm:$0xf]  ;;  %v7146_v18 = vor.u32 %v7872_v6, %v7145_v3  ;;  %v6667_v63 = vld [vmem:[#allocation9 + $0x10c] sm:$0xf0]  ;;  %v7892_v52 = vld [vmem:[#allocation9 + $0x568] sm:$0xf0] }
 0x4b5   :  { %v7007_v33 = vld [vmem:[#allocation9 + $0x3b4] sm:$0xf0] }
 0x4b6   :  { %v7225_v51 = vld [vmem:[#allocation9 + $0x558] sm:$0xf] }
 0x4b7   :  { %4745 = vmatpush.bf16.msra.mxu0 %v7222_v25  ;;  %4754 = vmatpush.bf16.msra.mxu3 %v6666_v26  ;;  %v6586_v25 = vor.u32 %v7732_v13, %v6585_v12  ;;  %v6746_v26 = vor.u32 %v7772_v14, %v6745_v36  ;;  %v7285_v12 = vld [vmem:[#allocation9 + $0x5d0] sm:$0xf]  ;;  %v7907_v13 = vld [vmem:[#allocation9 + $0x5e0] sm:$0xf0]  ;;  %v7745_v36 = vld [vmem:[#allocation9 + $0xd4] sm:$0xf] }
 0x4b8   :  { %4767 = vmatpush.bf16.msrb.mxu1 %v6826_v30  ;;  %v3304_v5 = vpop.f32.mrf.mxu3  ;;  %v3317_v42 = vpop.f32.mrf.mxu1  ;;  %4732 = vmatpush.bf16.msra.mxu2 %v7062_v60  ;;  %v6725_v30 = vld [vmem:[#allocation9 + $0x170] sm:$0xf]  ;;  %v7126_v60 = vor.u32 %v7867_v23, %v7125_v21  ;;  %v7286_v21 = vor.u32 %v7907_v13, %v7285_v12  ;;  %v7807_v23 = vld [vmem:[#allocation9 + $0x2c0] sm:$0xf0]  ;;  %v7185_v13 = vld [vmem:[#allocation9 + $0x508] sm:$0xf] }
 0x4b9   :  { %v3305_v40 = vadd.f32 %v3304_v5, %v2769_v27  ;;  %v6986_v27 = vor.u32 %v7832_v20, %v6985_v19  ;;  %v6705_v5 = vld [vmem:[#allocation9 + $0x148] sm:$0xf]  ;;  %v6885_v19 = vld [vmem:[#allocation9 + $0x2b0] sm:$0xf] }
 0x4ba   :  { %v6886_v35 = vor.u32 %v7807_v23, %v6885_v19  ;;  %v6787_v23 = vld [vmem:[#allocation9 + $0x1fc] sm:$0xf0] }
 0x4bb   :  { %v3318_v54 = vadd.f32 %v3317_v42, %v3305_v40  ;;  %4746 = vmatpush.bf16.msra.mxu0 %v7202_v39  ;;  %4755 = vmatpush.bf16.msra.mxu3 %v6646_v31  ;;  %v6545_v39 = vld [vmem:[#allocation9 + $0x8] sm:$0xf]  ;;  %v6726_v31 = vor.u32 %v7767_v1, %v6725_v30  ;;  %v7762_v42 = vld [vmem:[#allocation9 + $0x158] sm:$0xf0]  ;;  %v7325_v40 = vld [vmem:[#allocation9 + $0x620] sm:$0xf] }
 0x4bc   :  { %4768 = vmatpush.bf16.msrb.mxu1 %v6806_v43  ;;  %4733 = vmatpush.bf16.msra.mxu2 %v7042_v32  ;;  %v7106_v43 = vor.u32 %v7862_v37, %v7105_v15  ;;  %v6945_v32 = vld [vmem:[#allocation9 + $0x328] sm:$0xf]  ;;  %v6546_v50 = vor.u32 %v7722_v41, %v6545_v39  ;;  %v6706_v53 = vor.u32 %v7762_v42, %v6705_v5  ;;  %v7740_v30 = vld [vmem:[#allocation9 + $0xac] sm:$0xf]  ;;  %v7835_v1 = vld [vmem:[#allocation9 + $0x3a4] sm:$0xf] }
 0x4bd   :  { %v3325_v34 = vmax.f32 %v3318_v54, 0.0  ;;  %v6946_v54 = vor.u32 %v7822_v45, %v6945_v32  ;;  %v6865_v15 = vld [vmem:[#allocation9 + $0x288] sm:$0xf]  ;;  %v7802_v39 = vld [vmem:[#allocation9 + $0x298] sm:$0xf0]  ;;  %v7010_v5 = vor.u32 %v7835_v1, %v7007_v33 }
 0x4be   :  { %v7735_v42 = vld [vmem:[#allocation9 + $0x84] sm:$0xf]  ;;  %v6847_v32 = vld [vmem:[#allocation9 + $0x274] sm:$0xf0] }
 0x4bf   :  { %v8430_v7 = vpack.c.bf16 %v3325_v34, %v3325_v34  ;;  %4747 = vmatpush.bf16.msra.mxu0 %v7182_v44  ;;  %4756 = vmatpush.bf16.msra.mxu3 %v6626_v22  ;;  %v7086_v44 = vor.u32 %v7857_v47, %v7085_v46  ;;  %v7326_v22 = vor.u32 %v7917_v48, %v7325_v40  ;;  %v7912_v34 = vld [vmem:[#allocation9 + $0x608] sm:$0xf0]  ;;  %v6607_v45 = vld [vmem:[#allocation9 + $0x94] sm:$0xf0]  ;;  %v7830_v46 = vld [vmem:[#allocation9 + $0x37c] sm:$0xf] }
 0x4c0   :  { %4769 = vmatpush.bf16.msrb.mxu1 %v6786_v56  ;;  %v3306_v0 = vpop.f32.mrf.mxu3  ;;  %v3319_v17 = vpop.f32.mrf.mxu1  ;;  %4734 = vmatpush.bf16.msra.mxu2 %v7022_v62  ;;  %v7817_v56 = vld [vmem:[#allocation9 + $0x310] sm:$0xf0]  ;;  %v7750_v62 = vld [vmem:[#allocation9 + $0xfc] sm:$0xf]  ;;  %v7306_v6 = vor.u32 %v7912_v34, %v7305_v61  ;;  %v6987_v47 = vld [vmem:[#allocation9 + $0x38c] sm:$0xf0]  ;;  %v6866_v40 = vor.u32 %v7802_v39, %v6865_v15 }
 0x4c1   :  { %4709 = vmatmul.bf16.vlgmr.msrb.gmra.mxu3 %v8416_v49  ;;  %4683 = vmatmul.bf16.vlgmr.msrb.gmra.mxu2 %v8430_v7  ;;  %v6926_v2 = vor.u32 %v7817_v56, %v6925_v55  ;;  %v7812_v0 = vld [vmem:[#allocation9 + $0x2e8] sm:$0xf0]  ;;  %v7045_v17 = vld [vmem:[#allocation9 + $0x3f0] sm:$0xf]  ;;  %v7775_v15 = vld [vmem:[#allocation9 + $0x1c4] sm:$0xf] }
 0x4c2   :  { %4722 = vmatmul.bf16.vlgmr.msra.gmra.mxu1 %v8422_v4  ;;  %4748 = vmatmul.bf16.vlgmr.msra.gmra.mxu0 %v8430_v7  ;;  %v6827_v55 = vld [vmem:[#allocation9 + $0x24c] sm:$0xf0] }
 0x4c3   :  { %4792 = vmatpush.bf16.msrb.mxu0 %v7166_v57  ;;  %4757 = vmatpush.bf16.msra.mxu3 %v6606_v8  ;;  %v7065_v57 = vld [vmem:[#allocation9 + $0x418] sm:$0xf]  ;;  %v6587_v56 = vld [vmem:[#allocation9 + $0x6c] sm:$0xf0] }
 0x4c4   :  { %4770 = vmatpush.bf16.msrb.mxu1 %v6766_v10  ;;  %4779 = vmatpush.bf16.msrb.mxu2 %v7006_v11  ;;  %v7066_v3 = vor.u32 %v7852_v59, %v7065_v57  ;;  %v6905_v8 = vld [vmem:[#allocation9 + $0x2d8] sm:$0xf]  ;;  %v6670_v10 = vor.u32 %v7750_v62, %v6667_v63  ;;  %v7847_v11 = vld [vmem:[#allocation9 + $0x400] sm:$0xf0]  ;;  %v7825_v57 = vld [vmem:[#allocation9 + $0x354] sm:$0xf]  ;;  %v7226_v59 = vor.u32 %v7892_v52, %v7225_v51 }
 0x4c5   :  { %v6906_v14 = vor.u32 %v7812_v0, %v6905_v8  ;;  %v7046_v20 = vor.u32 %v7847_v11, %v7045_v17  ;;  %v7205_v34 = vld [vmem:[#allocation9 + $0x530] sm:$0xf]  ;;  %v7887_v62 = vld [vmem:[#allocation9 + $0x540] sm:$0xf0]  ;;  %v6807_v8 = vld [vmem:[#allocation9 + $0x224] sm:$0xf0] }
 0x4c6   :  { %v6567_v0 = vld [vmem:[#allocation9 + $0x44] sm:$0xf0]  ;;  %v7820_v17 = vld [vmem:[#allocation9 + $0x32c] sm:$0xf]  ;;  %v7206_v11 = vor.u32 %v7887_v62, %v7205_v34  ;;  %v7865_v52 = vld [vmem:[#allocation9 + $0x494] sm:$0xf] }
 0x4c7   :  { %4793 = vmatpush.bf16.msrb.mxu0 %v7146_v18  ;;  %4758 = vmatpush.bf16.msra.mxu3 %v6586_v25  ;;  %v6647_v18 = vld [vmem:[#allocation9 + $0xe4] sm:$0xf0]  ;;  %v6867_v34 = vld [vmem:[#allocation9 + $0x29c] sm:$0xf0]  ;;  %v7860_v62 = vld [vmem:[#allocation9 + $0x46c] sm:$0xf] }
 0x4c8   :  { %4771 = vmatpush.bf16.msrb.mxu1 %v6746_v26  ;;  %4780 = vmatpush.bf16.msrb.mxu2 %v6986_v27  ;;  %v7025_v25 = vld [vmem:[#allocation9 + $0x3c8] sm:$0xf]  ;;  %v7842_v26 = vld [vmem:[#allocation9 + $0x3d8] sm:$0xf0]  ;;  %v6650_v27 = vor.u32 %v7745_v36, %v6647_v18  ;;  %v7720_v18 = vld [vmem:[#allocation9 + $0xc] sm:$0xf] }
 0x4c9   :  { %v7026_v37 = vor.u32 %v7842_v26, %v7025_v25  ;;  %v7882_v36 = vld [vmem:[#allocation9 + $0x518] sm:$0xf0]  ;;  %v7815_v25 = vld [vmem:[#allocation9 + $0x304] sm:$0xf]  ;;  %v6927_v26 = vld [vmem:[#allocation9 + $0x314] sm:$0xf0] }
 0x4ca   :  { %v6887_v51 = vld [vmem:[#allocation9 + $0x2c4] sm:$0xf0] }
 0x4cb   :  { %4794 = vmatpush.bf16.msrb.mxu0 %v7126_v60  ;;  %4759 = vmatpush.bf16.msra.mxu3 %v6566_v38  ;;  %v6627_v60 = vld [vmem:[#allocation9 + $0xbc] sm:$0xf0]  ;;  %v7266_v38 = vor.u32 %v7902_v29, %v7265_v28  ;;  %v7167_v28 = vld [vmem:[#allocation9 + $0x4f4] sm:$0xf0]  ;;  %v7915_v29 = vld [vmem:[#allocation9 + $0x624] sm:$0xf] }
 0x4cc   :  { %4772 = vmatpush.bf16.msrb.mxu1 %v6726_v31  ;;  %4781 = vmatpush.bf16.msrb.mxu2 %v6966_v16  ;;  %v7245_v31 = vld [vmem:[#allocation9 + $0x580] sm:$0xf]  ;;  %v7897_v16 = vld [vmem:[#allocation9 + $0x590] sm:$0xf0]  ;;  %v6630_v41 = vor.u32 %v7740_v30, %v6627_v60  ;;  %v7327_v30 = vld [vmem:[#allocation9 + $0x634] sm:$0xf0]  ;;  %v7186_v60 = vor.u32 %v7882_v36, %v7185_v13 }
 0x4cd   :  { %v7246_v48 = vor.u32 %v7897_v16, %v7245_v31  ;;  %v7330_v39 = vor.u32 %v7915_v29, %v7327_v30  ;;  %v7810_v31 = vld [vmem:[#allocation9 + $0x2dc] sm:$0xf]  ;;  %v6907_v16 = vld [vmem:[#allocation9 + $0x2ec] sm:$0xf0]  ;;  %v7855_v36 = vld [vmem:[#allocation9 + $0x444] sm:$0xf] }
 0x4cf   :  { %4795 = vmatpush.bf16.msrb.mxu0 %v7106_v43  ;;  %4760 = vmatpush.bf16.msra.mxu3 %v6546_v50  ;;  %v7795_v43 = vld [vmem:[#allocation9 + $0x264] sm:$0xf] }
 0x4d0   :  { %4773 = vmatpush.bf16.msrb.mxu1 %v6706_v53  ;;  %4782 = vmatpush.bf16.msrb.mxu2 %v6946_v54  ;;  %v6850_v50 = vor.u32 %v7795_v43, %v6847_v32  ;;  %v6610_v53 = vor.u32 %v7735_v42, %v6607_v45  ;;  %v6990_v54 = vor.u32 %v7830_v46, %v6987_v47  ;;  %v7910_v42 = vld [vmem:[#allocation9 + $0x5fc] sm:$0xf]  ;;  %v7307_v43 = vld [vmem:[#allocation9 + $0x60c] sm:$0xf0] }
 0x4d1   :  { %4735 = vmatmul.bf16.vlgmr.msra.gmra.mxu2 %v8424_v9  ;;  %v6910_v45 = vor.u32 %v7810_v31, %v6907_v16  ;;  %v7770_v46 = vld [vmem:[#allocation9 + $0x19c] sm:$0xf]  ;;  %v6747_v47 = vld [vmem:[#allocation9 + $0x1ac] sm:$0xf0]  ;;  %v7788_v31 = vld [vmem:[#allocation9 + $0x228] sm:$0xf0] }
 0x4d2   :  { %4761 = vmatmul.bf16.vlgmr.msra.gmra.mxu3 %v8414_v24 }
 0x4d3   :  { %4796 = vmatpush.bf16.msrb.mxu0 %v7086_v44  ;;  %4805 = vmatpush.bf16.msrb.mxu3 %v7326_v22  ;;  %v7730_v44 = vld [vmem:[#allocation9 + $0x5c] sm:$0xf] }
 0x4d4   :  { %4818 = vmatpush.bf16.msra.mxu1 %v6690_v58  ;;  %4783 = vmatpush.bf16.msrb.mxu2 %v6926_v2  ;;  %v7790_v22 = vld [vmem:[#allocation9 + $0x23c] sm:$0xf]  ;;  %v6967_v58 = vld [vmem:[#allocation9 + $0x364] sm:$0xf0]  ;;  %v6590_v63 = vor.u32 %v7730_v44, %v6587_v56  ;;  %v7765_v56 = vld [vmem:[#allocation9 + $0x174] sm:$0xf] }
 0x4d5   :  { %4774 = vmatmul.bf16.vlgmr.msrb.gmra.mxu1 %v8416_v49  ;;  %v6830_v61 = vor.u32 %v7790_v22, %v6827_v55  ;;  %v6970_v2 = vor.u32 %v7825_v57, %v6967_v58  ;;  %v7287_v44 = vld [vmem:[#allocation9 + $0x5e4] sm:$0xf0]  ;;  %v6750_v22 = vor.u32 %v7770_v46, %v6747_v47  ;;  %v7885_v47 = vld [vmem:[#allocation9 + $0x534] sm:$0xf] }
 0x4d6   :  { %v6727_v57 = vld [vmem:[#allocation9 + $0x184] sm:$0xf0] }
 0x4d7   :  { %4797 = vmatpush.bf16.msrb.mxu0 %v7066_v3  ;;  %4806 = vmatpush.bf16.msrb.mxu3 %v7306_v6  ;;  %v7725_v3 = vld [vmem:[#allocation9 + $0x34] sm:$0xf]  ;;  %v7047_v46 = vld [vmem:[#allocation9 + $0x404] sm:$0xf0] }
 0x4d8   :  { %4819 = vmatpush.bf16.msra.mxu1 %v6670_v10  ;;  %4784 = vmatpush.bf16.msrb.mxu2 %v6906_v14  ;;  %v7785_v6 = vld [vmem:[#allocation9 + $0x214] sm:$0xf]  ;;  %v6947_v10 = vld [vmem:[#allocation9 + $0x33c] sm:$0xf0]  ;;  %v6570_v14 = vor.u32 %v7725_v3, %v6567_v0  ;;  %v7798_v0 = vld [vmem:[#allocation9 + $0x278] sm:$0xf0] }
 0x4d9   :  { %v6810_v12 = vor.u32 %v7785_v6, %v6807_v8  ;;  %v6950_v19 = vor.u32 %v7820_v17, %v6947_v10  ;;  %v7267_v3 = vld [vmem:[#allocation9 + $0x5bc] sm:$0xf0]  ;;  %v6730_v6 = vor.u32 %v7765_v56, %v6727_v57  ;;  %v6853_v8 = vld [vmem:[#allocation9 + $0x268] sm:$0xf]  ;;  %v7760_v10 = vld [vmem:[#allocation9 + $0x14c] sm:$0xf] }
 0x4da   :  { %v7880_v57 = vld [vmem:[#allocation9 + $0x50c] sm:$0xf] }
 0x4db   :  { %4798 = vmatpush.bf16.msrb.mxu0 %v7046_v20  ;;  %4807 = vmatpush.bf16.msrb.mxu3 %v7286_v21  ;;  %v6547_v20 = vld [vmem:[#allocation9 + $0x1c] sm:$0xf0]  ;;  %v7780_v21 = vld [vmem:[#allocation9 + $0x1ec] sm:$0xf] }
 0x4dc   :  { %4820 = vmatpush.bf16.msra.mxu1 %v6650_v27  ;;  %4785 = vmatpush.bf16.msrb.mxu2 %v6886_v35  ;;  %v7875_v27 = vld [vmem:[#allocation9 + $0x4e4] sm:$0xf]  ;;  %v6790_v1 = vor.u32 %v7780_v21, %v6787_v23  ;;  %v6550_v33 = vor.u32 %v7720_v18, %v6547_v20  ;;  %v6930_v35 = vor.u32 %v7815_v25, %v6927_v26  ;;  %v6693_v18 = vld [vmem:[#allocation9 + $0x128] sm:$0xf]  ;;  %v7087_v20 = vld [vmem:[#allocation9 + $0x454] sm:$0xf0] }
 0x4dd   :  { %v7895_v21 = vld [vmem:[#allocation9 + $0x584] sm:$0xf]  ;;  %v7247_v23 = vld [vmem:[#allocation9 + $0x594] sm:$0xf0]  ;;  %v6833_v26 = vld [vmem:[#allocation9 + $0x240] sm:$0xf]  ;;  %v7090_v29 = vor.u32 %v7855_v36, %v7087_v20 }
 0x4de   :  { %v7250_v30 = vor.u32 %v7895_v21, %v7247_v23  ;;  %v7773_v36 = vld [vmem:[#allocation9 + $0x1b0] sm:$0xf0] }
 0x4df   :  { %4799 = vmatpush.bf16.msrb.mxu0 %v7026_v37  ;;  %4808 = vmatpush.bf16.msrb.mxu3 %v7266_v38  ;;  %v6767_v37 = vld [vmem:[#allocation9 + $0x1d4] sm:$0xf0]  ;;  %v7170_v38 = vor.u32 %v7875_v27, %v7167_v28  ;;  %v7793_v27 = vld [vmem:[#allocation9 + $0x250] sm:$0xf0] }
 0x4e0   :  { %4821 = vmatpush.bf16.msra.mxu1 %v6630_v41  ;;  %4786 = vmatpush.bf16.msrb.mxu2 %v6866_v40  ;;  %v7870_v41 = vld [vmem:[#allocation9 + $0x4bc] sm:$0xf]  ;;  %v6770_v32 = vor.u32 %v7775_v15, %v6767_v37  ;;  %v7067_v15 = vld [vmem:[#allocation9 + $0x42c] sm:$0xf0]  ;;  %v7873_v20 = vld [vmem:[#allocation9 + $0x4d0] sm:$0xf0] }
 0x4e1   :  { %v7890_v37 = vld [vmem:[#allocation9 + $0x55c] sm:$0xf] }
 0x4e2   :  { %4800 = vmatmul.bf16.vlgmr.msrb.gmra.mxu0 %v8424_v9 }
 0x4e3   :  { %4844 = vmatpush.bf16.msra.mxu0 %v7010_v5  ;;  %4809 = vmatpush.bf16.msrb.mxu3 %v7246_v48  ;;  %v7147_v5 = vld [vmem:[#allocation9 + $0x4cc] sm:$0xf0]  ;;  %v7310_v48 = vor.u32 %v7910_v42, %v7307_v43  ;;  %v7845_v42 = vld [vmem:[#allocation9 + $0x3f4] sm:$0xf]  ;;  %v6653_v43 = vld [vmem:[#allocation9 + $0xd8] sm:$0xf] }
 0x4e4   :  { %4831 = vmatpush.bf16.msra.mxu2 %v6850_v50  ;;  %4822 = vmatpush.bf16.msra.mxu1 %v6610_v53  ;;  %v7150_v40 = vor.u32 %v7870_v41, %v7147_v5  ;;  %v7805_v50 = vld [vmem:[#allocation9 + $0x2b4] sm:$0xf]  ;;  %v7127_v53 = vld [vmem:[#allocation9 + $0x4a4] sm:$0xf0] }
 0x4e5   :  { %4787 = vmatmul.bf16.vlgmr.msrb.gmra.mxu2 %v8422_v4  ;;  %v6890_v55 = vor.u32 %v7805_v50, %v6887_v51  ;;  %v7130_v58 = vor.u32 %v7865_v52, %v7127_v53  ;;  %v7783_v50 = vld [vmem:[#allocation9 + $0x200] sm:$0xf0]  ;;  %v7840_v52 = vld [vmem:[#allocation9 + $0x3cc] sm:$0xf]  ;;  %v7050_v53 = vor.u32 %v7845_v42, %v7047_v46  ;;  %v6953_v42 = vld [vmem:[#allocation9 + $0x330] sm:$0xf] }
 0x4e7   :  { %4845 = vmatpush.bf16.msra.mxu0 %v6990_v54  ;;  %4810 = vmatpush.bf16.msrb.mxu3 %v7226_v59  ;;  %v7905_v54 = vld [vmem:[#allocation9 + $0x5d4] sm:$0xf] }
 0x4e8   :  { %4832 = vmatpush.bf16.msra.mxu2 %v6830_v61  ;;  %4823 = vmatpush.bf16.msra.mxu1 %v6590_v63  ;;  %v7290_v59 = vor.u32 %v7905_v54, %v7287_v44  ;;  %v7800_v61 = vld [vmem:[#allocation9 + $0x28c] sm:$0xf]  ;;  %v7107_v63 = vld [vmem:[#allocation9 + $0x47c] sm:$0xf0] }
 0x4e9   :  { %v6870_v17 = vor.u32 %v7800_v61, %v6867_v34  ;;  %v7027_v44 = vld [vmem:[#allocation9 + $0x3dc] sm:$0xf0]  ;;  %v7778_v61 = vld [vmem:[#allocation9 + $0x1d8] sm:$0xf0]  ;;  %v7013_v34 = vld [vmem:[#allocation9 + $0x3a8] sm:$0xf] }
 0x4eb   :  { %4846 = vmatpush.bf16.msra.mxu0 %v6970_v2  ;;  %4811 = vmatpush.bf16.msrb.mxu3 %v7206_v11  ;;  %v7900_v2 = vld [vmem:[#allocation9 + $0x5ac] sm:$0xf]  ;;  %v6707_v11 = vld [vmem:[#allocation9 + $0x15c] sm:$0xf0] }
 0x4ec   :  { %4833 = vmatpush.bf16.msra.mxu2 %v6810_v12  ;;  %4824 = vmatpush.bf16.msra.mxu1 %v6570_v14  ;;  %v7110_v12 = vor.u32 %v7860_v62, %v7107_v63  ;;  %v7270_v13 = vor.u32 %v7900_v2, %v7267_v3  ;;  %v7758_v14 = vld [vmem:[#allocation9 + $0x138] sm:$0xf0]  ;;  %v6710_v25 = vor.u32 %v7760_v10, %v6707_v11  ;;  %v7173_v2 = vld [vmem:[#allocation9 + $0x4e8] sm:$0xf] }
 0x4ed   :  { %v6694_v28 = vor.u32 %v7758_v14, %v6693_v18  ;;  %v7838_v62 = vld [vmem:[#allocation9 + $0x3b8] sm:$0xf0]  ;;  %v6613_v10 = vld [vmem:[#allocation9 + $0x88] sm:$0xf]  ;;  %v6993_v18 = vld [vmem:[#allocation9 + $0x380] sm:$0xf] }
 0x4ee   :  { %v7878_v3 = vld [vmem:[#allocation9 + $0x4f8] sm:$0xf0]  ;;  %v7833_v14 = vld [vmem:[#allocation9 + $0x390] sm:$0xf0] }
 0x4ef   :  { %4847 = vmatpush.bf16.msra.mxu0 %v6950_v19  ;;  %4812 = vmatpush.bf16.msrb.mxu3 %v7186_v60  ;;  %v6854_v19 = vor.u32 %v7798_v0, %v6853_v8  ;;  %v7850_v60 = vld [vmem:[#allocation9 + $0x41c] sm:$0xf] }
 0x4f0   :  { %4834 = vmatpush.bf16.msra.mxu2 %v6790_v1  ;;  %4825 = vmatpush.bf16.msra.mxu1 %v6550_v33  ;;  %v6673_v1 = vld [vmem:[#allocation9 + $0x100] sm:$0xf]  ;;  %v7753_v33 = vld [vmem:[#allocation9 + $0x110] sm:$0xf0]  ;;  %v7070_v41 = vor.u32 %v7850_v60, %v7067_v15  ;;  %v7738_v11 = vld [vmem:[#allocation9 + $0x98] sm:$0xf0] }
 0x4f1   :  { %v6674_v16 = vor.u32 %v7753_v33, %v6673_v1  ;;  %v6614_v21 = vor.u32 %v7738_v11, %v6613_v10  ;;  %v6973_v60 = vld [vmem:[#allocation9 + $0x358] sm:$0xf]  ;;  %v7828_v1 = vld [vmem:[#allocation9 + $0x368] sm:$0xf0] }
 0x4f2   :  { %4813 = vmatmul.bf16.vlgmr.msrb.gmra.mxu3 %v8430_v7  ;;  %v7133_v33 = vld [vmem:[#allocation9 + $0x498] sm:$0xf]  ;;  %v7808_v10 = vld [vmem:[#allocation9 + $0x2c8] sm:$0xf0] }
 0x4f3   :  { %4848 = vmatpush.bf16.msra.mxu0 %v6930_v35  ;;  %4857 = vmatpush.bf16.msra.mxu3 %v7170_v38  ;;  %v6834_v35 = vor.u32 %v7793_v27, %v6833_v26  ;;  %v7227_v38 = vld [vmem:[#allocation9 + $0x56c] sm:$0xf0]  ;;  %v6593_v26 = vld [vmem:[#allocation9 + $0x60] sm:$0xf]  ;;  %v7733_v27 = vld [vmem:[#allocation9 + $0x70] sm:$0xf0] }
 0x4f4   :  { %4870 = vmatpush.bf16.msrb.mxu1 %v7330_v39  ;;  %4835 = vmatpush.bf16.msra.mxu2 %v6770_v32  ;;  %v6813_v39 = vld [vmem:[#allocation9 + $0x218] sm:$0xf]  ;;  %v7230_v5 = vor.u32 %v7890_v37, %v7227_v38  ;;  %v7748_v32 = vld [vmem:[#allocation9 + $0xe8] sm:$0xf0]  ;;  %v6594_v15 = vor.u32 %v7733_v27, %v6593_v26  ;;  %v6974_v38 = vor.u32 %v7828_v1, %v6973_v60  ;;  %v7033_v26 = vld [vmem:[#allocation9 + $0x3d0] sm:$0xf] }
 0x4f5   :  { %4826 = vmatmul.bf16.vlgmr.msra.gmra.mxu1 %v8414_v24  ;;  %v6654_v51 = vor.u32 %v7748_v32, %v6653_v43  ;;  %v7823_v43 = vld [vmem:[#allocation9 + $0x340] sm:$0xf0]  ;;  %v7113_v32 = vld [vmem:[#allocation9 + $0x470] sm:$0xf]  ;;  %v7293_v11 = vld [vmem:[#allocation9 + $0x5d8] sm:$0xf] }
 0x4f6   :  { %v7843_v27 = vld [vmem:[#allocation9 + $0x3e0] sm:$0xf0]  ;;  %v7253_v60 = vld [vmem:[#allocation9 + $0x588] sm:$0xf]  ;;  %v7898_v1 = vld [vmem:[#allocation9 + $0x598] sm:$0xf0] }
 0x4f7   :  { %4849 = vmatpush.bf16.msra.mxu0 %v6910_v45  ;;  %4858 = vmatpush.bf16.msra.mxu3 %v7150_v40  ;;  %v6814_v45 = vor.u32 %v7788_v31, %v6813_v39  ;;  %v7207_v40 = vld [vmem:[#allocation9 + $0x544] sm:$0xf0]  ;;  %v6573_v39 = vld [vmem:[#allocation9 + $0x38] sm:$0xf]  ;;  %v7728_v31 = vld [vmem:[#allocation9 + $0x48] sm:$0xf0] }
 0x4f8   :  { %4871 = vmatpush.bf16.msrb.mxu1 %v7310_v48  ;;  %4836 = vmatpush.bf16.msra.mxu2 %v6750_v22  ;;  %v6793_v48 = vld [vmem:[#allocation9 + $0x1f0] sm:$0xf]  ;;  %v7210_v54 = vor.u32 %v7885_v47, %v7207_v40  ;;  %v6574_v46 = vor.u32 %v7728_v31, %v6573_v39  ;;  %v6954_v40 = vor.u32 %v7823_v43, %v6953_v42  ;;  %v7213_v31 = vld [vmem:[#allocation9 + $0x538] sm:$0xf] }
 0x4f9   :  { %v6633_v22 = vld [vmem:[#allocation9 + $0xb0] sm:$0xf]  ;;  %v6794_v56 = vor.u32 %v7783_v50, %v6793_v48  ;;  %v7723_v50 = vld [vmem:[#allocation9 + $0x20] sm:$0xf0] }
 0x4fa   :  { %v6553_v48 = vld [vmem:[#allocation9 + $0x10] sm:$0xf] }
 0x4fb   :  { %4850 = vmatpush.bf16.msra.mxu0 %v6890_v55  ;;  %4859 = vmatpush.bf16.msra.mxu3 %v7130_v58  ;;  %v7743_v55 = vld [vmem:[#allocation9 + $0xc0] sm:$0xf0]  ;;  %v7187_v58 = vld [vmem:[#allocation9 + $0x51c] sm:$0xf0]  ;;  %v7193_v43 = vld [vmem:[#allocation9 + $0x510] sm:$0xf] }
 0x4fc   :  { %4872 = vmatpush.bf16.msrb.mxu1 %v7290_v59  ;;  %4837 = vmatpush.bf16.msra.mxu2 %v6730_v6  ;;  %v6773_v59 = vld [vmem:[#allocation9 + $0x1c8] sm:$0xf]  ;;  %v6634_v63 = vor.u32 %v7743_v55, %v6633_v22  ;;  %v7030_v6 = vor.u32 %v7840_v52, %v7027_v44  ;;  %v7190_v8 = vor.u32 %v7880_v57, %v7187_v58  ;;  %v7918_v44 = vld [vmem:[#allocation9 + $0x638] sm:$0xf0] }
 0x4fd   :  { %v6774_v0 = vor.u32 %v7778_v61, %v6773_v59  ;;  %v7093_v22 = vld [vmem:[#allocation9 + $0x448] sm:$0xf]  ;;  %v7858_v55 = vld [vmem:[#allocation9 + $0x458] sm:$0xf0]  ;;  %v6913_v59 = vld [vmem:[#allocation9 + $0x2e0] sm:$0xf] }
 0x4fe   :  { %v7094_v61 = vor.u32 %v7858_v55, %v7093_v22 }
 0x4ff   :  { %4851 = vmatpush.bf16.msra.mxu0 %v6870_v17  ;;  %4860 = vmatpush.bf16.msra.mxu3 %v7110_v12  ;;  %v7014_v17 = vor.u32 %v7838_v62, %v7013_v34  ;;  %v6753_v12 = vld [vmem:[#allocation9 + $0x1a0] sm:$0xf]  ;;  %v7813_v34 = vld [vmem:[#allocation9 + $0x2f0] sm:$0xf0] }
 0x500   :  { %4873 = vmatpush.bf16.msrb.mxu1 %v7270_v13  ;;  %4838 = vmatpush.bf16.msra.mxu2 %v6710_v25  ;;  %v7174_v13 = vor.u32 %v7878_v3, %v7173_v2  ;;  %v6754_v23 = vor.u32 %v7773_v36, %v6753_v12  ;;  %v6994_v25 = vor.u32 %v7833_v14, %v6993_v18  ;;  %v7313_v62 = vld [vmem:[#allocation9 + $0x600] sm:$0xf]  ;;  %v7853_v3 = vld [vmem:[#allocation9 + $0x430] sm:$0xf0]  ;;  %v7908_v12 = vld [vmem:[#allocation9 + $0x5e8] sm:$0xf0] }
 0x501   :  { %v7073_v2 = vld [vmem:[#allocation9 + $0x420] sm:$0xf]  ;;  %v7848_v36 = vld [vmem:[#allocation9 + $0x408] sm:$0xf0] }
 0x502   :  { %4852 = vmatmul.bf16.vlgmr.msra.gmra.mxu0 %v8422_v4 }
 0x503   :  { %4896 = vmatpush.bf16.msrb.mxu0 %v6854_v19  ;;  %4861 = vmatpush.bf16.msra.mxu3 %v7090_v29  ;;  %v7153_v19 = vld [vmem:[#allocation9 + $0x4c0] sm:$0xf] }
 0x504   :  { %4883 = vmatpush.bf16.msrb.mxu2 %v6694_v28  ;;  %4874 = vmatpush.bf16.msrb.mxu1 %v7250_v30  ;;  %v6733_v28 = vld [vmem:[#allocation9 + $0x178] sm:$0xf]  ;;  %v7154_v29 = vor.u32 %v7873_v20, %v7153_v19  ;;  %v7768_v30 = vld [vmem:[#allocation9 + $0x188] sm:$0xf0]  ;;  %v7294_v19 = vor.u32 %v7908_v12, %v7293_v11 }
 0x505   :  { %4839 = vmatmul.bf16.vlgmr.msra.gmra.mxu2 %v8416_v49  ;;  %v6734_v37 = vor.u32 %v7768_v30, %v6733_v28  ;;  %v7034_v30 = vor.u32 %v7843_v27, %v7033_v26 }
 0x507   :  { %4897 = vmatpush.bf16.msrb.mxu0 %v6834_v35  ;;  %4862 = vmatpush.bf16.msra.mxu3 %v7070_v41  ;;  %v7868_v35 = vld [vmem:[#allocation9 + $0x4a8] sm:$0xf0] }
 0x508   :  { %4884 = vmatpush.bf16.msrb.mxu2 %v6674_v16  ;;  %4875 = vmatpush.bf16.msrb.mxu1 %v7230_v5  ;;  %v6713_v16 = vld [vmem:[#allocation9 + $0x150] sm:$0xf]  ;;  %v7134_v41 = vor.u32 %v7868_v35, %v7133_v33  ;;  %v7763_v5 = vld [vmem:[#allocation9 + $0x160] sm:$0xf0]  ;;  %v7254_v35 = vor.u32 %v7898_v1, %v7253_v60 }
 0x509   :  { %v6714_v47 = vor.u32 %v7763_v5, %v6713_v16  ;;  %v7888_v16 = vld [vmem:[#allocation9 + $0x548] sm:$0xf0] }
 0x50a   :  { %v7214_v42 = vor.u32 %v7888_v16, %v7213_v31 }
 0x50b   :  { %4898 = vmatpush.bf16.msrb.mxu0 %v6814_v45  ;;  %4863 = vmatpush.bf16.msra.mxu3 %v7050_v53  ;;  %v7863_v45 = vld [vmem:[#allocation9 + $0x480] sm:$0xf0]  ;;  %v7818_v53 = vld [vmem:[#allocation9 + $0x318] sm:$0xf0] }
 0x50c   :  { %4885 = vmatpush.bf16.msrb.mxu2 %v6654_v51  ;;  %4876 = vmatpush.bf16.msrb.mxu1 %v7210_v54  ;;  %v6933_v51 = vld [vmem:[#allocation9 + $0x308] sm:$0xf]  ;;  %v7114_v52 = vor.u32 %v7863_v45, %v7113_v32  ;;  %v7883_v32 = vld [vmem:[#allocation9 + $0x520] sm:$0xf0]  ;;  %v8454_v45 = vld [vmem:[%s8481_s16] sm:$0x1f] }
 0x50d   :  { %v7333_v54 = vld [vmem:[#allocation9 + $0x628] sm:$0xf]  ;;  %v6934_v57 = vor.u32 %v7818_v53, %v6933_v51  ;;  %s8082_s16 = smov [#allocation11]  }
 0x50e   :  { %v7334_v58 = vor.u32 %v7918_v44, %v7333_v54  ;;  %s4983_s29 = sshll.u32 %s8082_s16, 4  ;;  %s4984_s29 = int_to_ptr.vmem [resolvable:$true] %s4983_s29 }
 0x50f   :  { %4899 = vmatpush.bf16.msrb.mxu0 %v6794_v56  ;;  %4864 = vmatpush.bf16.msra.mxu3 %v7030_v6  ;;  %v6554_v56 = vor.u32 %v7723_v50, %v6553_v48  ;;  %v6914_v6 = vor.u32 %v7813_v34, %v6913_v59 }
 0x510   :  { %4886 = vmatpush.bf16.msrb.mxu2 %v6634_v63  ;;  %4877 = vmatpush.bf16.msrb.mxu1 %v7190_v8  ;;  %v7913_v63 = vld [vmem:[#allocation9 + $0x610] sm:$0xf0] }
 0x511   :  { %v7314_v8 = vor.u32 %v7913_v63, %v7313_v62 }
 0x512   :  { %4865 = vmatmul.bf16.vlgmr.msra.gmra.mxu3 %v8424_v9 }
 0x513   :  { %4900 = vmatpush.bf16.msrb.mxu0 %v6774_v0  ;;  %4909 = vmatpush.bf16.msrb.mxu3 %v7014_v17  ;;  %v6893_v0 = vld [vmem:[#allocation9 + $0x2b8] sm:$0xf]  ;;  %v7074_v17 = vor.u32 %v7853_v3, %v7073_v2 }
 0x514   :  { %4922 = vmatpush.bf16.msra.mxu1 %v7174_v13  ;;  %4887 = vmatpush.bf16.msrb.mxu2 %v6614_v21  ;;  %v7053_v13 = vld [vmem:[#allocation9 + $0x3f8] sm:$0xf]  ;;  %v6894_v14 = vor.u32 %v7808_v10, %v6893_v0  ;;  %v7803_v21 = vld [vmem:[#allocation9 + $0x2a0] sm:$0xf0] }
 0x515   :  { %4878 = vmatmul.bf16.vlgmr.msrb.gmra.mxu1 %v8430_v7  ;;  %v7054_v20 = vor.u32 %v7848_v36, %v7053_v13 }
 0x517   :  { %4901 = vmatpush.bf16.msrb.mxu0 %v6754_v23  ;;  %4910 = vmatpush.bf16.msrb.mxu3 %v6994_v25  ;;  %v7273_v23 = vld [vmem:[#allocation9 + $0x5b0] sm:$0xf]  ;;  %v7903_v25 = vld [vmem:[#allocation9 + $0x5c0] sm:$0xf0] }
 0x518   :  { %4923 = vmatpush.bf16.msra.mxu1 %v7154_v29  ;;  %4888 = vmatpush.bf16.msrb.mxu2 %v6594_v15  ;;  %v7233_v15 = vld [vmem:[#allocation9 + $0x560] sm:$0xf] }
 0x51b   :  { %4902 = vmatpush.bf16.msrb.mxu0 %v6734_v37  ;;  %4911 = vmatpush.bf16.msrb.mxu3 %v6974_v38  ;;  %v7893_v37 = vld [vmem:[#allocation9 + $0x570] sm:$0xf0] }
 0x51c   :  { %4924 = vmatpush.bf16.msra.mxu1 %v7134_v41  ;;  %4889 = vmatpush.bf16.msrb.mxu2 %v6574_v46  ;;  %v7234_v39 = vor.u32 %v7893_v37, %v7233_v15  ;;  %v7194_v46 = vor.u32 %v7883_v32, %v7193_v43 }
 0x51f   :  { %4903 = vmatpush.bf16.msrb.mxu0 %v6714_v47  ;;  %4912 = vmatpush.bf16.msrb.mxu3 %v6954_v40  ;;  %v4645_v18 = vpop.f32.mrf.mxu0 }
 0x520   :  { %4925 = vmatpush.bf16.msra.mxu1 %v7114_v52  ;;  %4890 = vmatpush.bf16.msrb.mxu2 %v6554_v56 }
 0x522   :  { %4904 = vmatmul.bf16.vlgmr.msrb.gmra.mxu0 %v8416_v49  ;;  %v6873_v49 = vld [vmem:[#allocation9 + $0x290] sm:$0xf] }
 0x523   :  { %4913 = vmatpush.bf16.msrb.mxu3 %v6934_v57  ;;  %4891 = vmatmul.bf16.vlgmr.msrb.gmra.mxu2 %v8414_v24  ;;  %v6874_v29 = vor.u32 %v7803_v21, %v6873_v49  ;;  %v7274_v24 = vor.u32 %v7903_v25, %v7273_v23  ;;  %v3575_v23 = vperm.slane %v8454_v45, 2 }
 0x524   :  { %4935 = vmatpush.bf16.msra.mxu2 %v7334_v58  ;;  %4926 = vmatpush.bf16.msra.mxu1 %v7094_v61  ;;  %v4632_v28 = vpop.f32.mrf.mxu2  ;;  %v3574_v61 = vperm.slane %v8454_v45, 1 }
 0x527   :  { %4914 = vmatpush.bf16.msrb.mxu3 %v6914_v6  ;;  %v4647_v33 = vpop.f32.mrf.mxu0 }
 0x528   :  { %4936 = vmatpush.bf16.msra.mxu2 %v7314_v8  ;;  %4927 = vmatpush.bf16.msra.mxu1 %v7074_v17 }
 0x52b   :  { %4915 = vmatpush.bf16.msrb.mxu3 %v6894_v14 }
 0x52c   :  { %4937 = vmatpush.bf16.msra.mxu2 %v7294_v19  ;;  %4928 = vmatpush.bf16.msra.mxu1 %v7054_v20  ;;  %v4634_v38 = vpop.f32.mrf.mxu2 }
 0x52f   :  { %4916 = vmatpush.bf16.msrb.mxu3 %v6874_v29  ;;  %v4671_v41 = vpop.f32.mrf.mxu1  ;;  %v4697_v5 = vpop.f32.mrf.mxu0 }
 0x530   :  { %4938 = vmatpush.bf16.msra.mxu2 %v7274_v24  ;;  %4929 = vmatpush.bf16.msra.mxu1 %v7034_v30  ;;  %v4698_v2 = vadd.f32 %v4697_v5, %v3574_v61 }
 0x532   :  { %4917 = vmatmul.bf16.vlgmr.msrb.gmra.mxu3 %v8422_v4 }
 0x533   :  { %4930 = vmatmul.bf16.vlgmr.msra.gmra.mxu1 %v8424_v9  ;;  %v3573_v9 = vperm.slane %v8454_v45, 0 }
 0x534   :  { %4939 = vmatpush.bf16.msra.mxu2 %v7254_v35  ;;  %v4658_v4 = vpop.f32.mrf.mxu3 }
 0x535   :  { %v4633_v48 = vadd.f32 %v4632_v28, %v3573_v9 }
 0x537   :  { %v4673_v47 = vpop.f32.mrf.mxu1  ;;  %v4699_v40 = vpop.f32.mrf.mxu0  ;;  %v4646_v51 = vadd.f32 %v4645_v18, %v4633_v48 }
 0x538   :  { %4940 = vmatpush.bf16.msra.mxu2 %v7234_v39 }
 0x539   :  { %v4659_v53 = vadd.f32 %v4658_v4, %v4646_v51  ;;  %v3576_v4 = vperm.slane %v8454_v45, 3 }
 0x53b   :  { %v4672_v44 = vadd.f32 %v4671_v41, %v4659_v53 }
 0x53c   :  { %4941 = vmatpush.bf16.msra.mxu2 %v7214_v42  ;;  %v4660_v50 = vpop.f32.mrf.mxu3 }
 0x53f   :  { %v4723_v52 = vpop.f32.mrf.mxu1  ;;  %v4749_v54 = vpop.f32.mrf.mxu0 }
 0x540   :  { %4942 = vmatpush.bf16.msra.mxu2 %v7194_v46 }
 0x543   :  { %4943 = vmatmul.bf16.vlgmr.msra.gmra.mxu2 %v8430_v7 }
 0x544   :  { %v4710_v22 = vpop.f32.mrf.mxu3  ;;  %v4684_v55 = vpop.f32.mrf.mxu2 }
 0x545   :  { %v4685_v56 = vadd.f32 %v4684_v55, %v4672_v44  ;;  %v4711_v7 = vadd.f32 %v4710_v22, %v4698_v2  ;;  %v3577_v2 = vperm.slane %v8454_v45, 4 }
 0x547   :  { %v4725_v57 = vpop.f32.mrf.mxu1  ;;  %v4948_v58 = vpack.c.bf16 %v4685_v56, %v4685_v56  ;;  %v4751_v59 = vpop.f32.mrf.mxu0  ;;  %v4724_v0 = vadd.f32 %v4723_v52, %v4711_v7 }
 0x549   :  { %v4953_v34 = vunpack.c.l.bf16 %v4948_v58 }
 0x54b   :  { %7935 = vtanh.f32 %v4953_v34 }
 0x54c   :  { %v4712_v62 = vpop.f32.mrf.mxu3  ;;  %v4686_v63 = vpop.f32.mrf.mxu2 }
 0x551   :  { %v7936_v6 = vpop.eup %7935 }
 0x552   :  { %v4775_v3 = vpop.f32.mrf.mxu1  ;;  %v4963_v8 = vpack.c.bf16 %v7936_v6, %v7936_v6 }
 0x554   :  { %v4968_v17 = vunpack.c.l.bf16 %v4963_v8  ;;  %v4736_v10 = vpop.f32.mrf.mxu2 }
 0x555   :  { %v4737_v11 = vadd.f32 %v4736_v10, %v4724_v0  ;;  %v4762_v12 = vpop.f32.mrf.mxu3 }
 0x556   :  { %4973 = vst [vmem:[#allocation11] sm:$0xff] %v4968_v17  ;;  %v4763_v29 = vadd.f32 %v4762_v12, %v3575_v23 }
 0x557   :  { %v4750_v13 = vadd.f32 %v4749_v54, %v4737_v11 }
 0x558   :  { %v4776_v24 = vadd.f32 %v4775_v3, %v4763_v29 }
 0x559   :  { %v4949_v18 = vpack.c.bf16 %v4750_v13, %v4750_v13 }
 0x55a   :  { %v4777_v36 = vpop.f32.mrf.mxu1 }
 0x55b   :  { %v4954_v14 = vunpack.c.l.bf16 %v4949_v18 }
 0x55c   :  { %v4738_v49 = vpop.f32.mrf.mxu2 }
 0x55d   :  { %7937 = vtanh.f32 %v4954_v14  ;;  %v4764_v20 = vpop.f32.mrf.mxu3 }
 0x55f   :  { %v4801_v19 = vpop.f32.mrf.mxu0 }
 0x563   :  { %v7938_v21 = vpop.eup %7937 }
 0x564   :  { %v4964_v25 = vpack.c.bf16 %v7938_v21, %v7938_v21 }
 0x566   :  { %v4969_v28 = vunpack.c.l.bf16 %v4964_v25 }
 0x567   :  { %v4803_v26 = vpop.f32.mrf.mxu0 }
 0x568   :  { %v4788_v27 = vpop.f32.mrf.mxu2  ;;  %4974 = vst [vmem:[#allocation11 + $0x8] sm:$0xff] %v4969_v28 }
 0x569   :  { %v4789_v30 = vadd.f32 %v4788_v27, %v4776_v24 }
 0x56b   :  { %v4802_v33 = vadd.f32 %v4801_v19, %v4789_v30 }
 0x570   :  { %v4790_v1 = vpop.f32.mrf.mxu2 }
 0x572   :  { %v4827_v60 = vpop.f32.mrf.mxu1 }
 0x573   :  { %v4828_v46 = vadd.f32 %v4827_v60, %v3576_v4 }
 0x575   :  { %v4814_v35 = vpop.f32.mrf.mxu3 }
 0x576   :  { %v4815_v15 = vadd.f32 %v4814_v35, %v4802_v33 }
 0x578   :  { %v4950_v37 = vpack.c.bf16 %v4815_v15, %v4815_v15 }
 0x57a   :  { %v4829_v38 = vpop.f32.mrf.mxu1  ;;  %v4955_v39 = vunpack.c.l.bf16 %v4950_v37 }
 0x57c   :  { %7939 = vtanh.f32 %v4955_v39 }
 0x57d   :  { %v4816_v16 = vpop.f32.mrf.mxu3 }
 0x57f   :  { %v4853_v31 = vpop.f32.mrf.mxu0 }
 0x582   :  { %v7940_v41 = vpop.eup %7939 }
 0x583   :  { %v4965_v5 = vpack.c.bf16 %v7940_v41, %v7940_v41 }
 0x585   :  { %v4970_v43 = vunpack.c.l.bf16 %v4965_v5 }
 0x587   :  { %v4855_v42 = vpop.f32.mrf.mxu0  ;;  %4975 = vst [vmem:[#allocation11 + $0x10] sm:$0xff] %v4970_v43 }
 0x588   :  { %v4840_v32 = vpop.f32.mrf.mxu2 }
 0x589   :  { %v4841_v40 = vadd.f32 %v4840_v32, %v4828_v46 }
 0x58b   :  { %v4854_v48 = vadd.f32 %v4853_v31, %v4841_v40 }
 0x590   :  { %v4842_v47 = vpop.f32.mrf.mxu2 }
 0x592   :  { %v4879_v9 = vpop.f32.mrf.mxu1 }
 0x595   :  { %v4866_v50 = vpop.f32.mrf.mxu3 }
 0x596   :  { %v4867_v51 = vadd.f32 %v4866_v50, %v4854_v48 }
 0x598   :  { %v4880_v53 = vadd.f32 %v4879_v9, %v4867_v51 }
 0x59a   :  { %v4881_v52 = vpop.f32.mrf.mxu1  ;;  %v4951_v54 = vpack.c.bf16 %v4880_v53, %v4880_v53 }
 0x59c   :  { %v4956_v44 = vunpack.c.l.bf16 %v4951_v54 }
 0x59d   :  { %v4868_v55 = vpop.f32.mrf.mxu3 }
 0x59e   :  { %7941 = vtanh.f32 %v4956_v44 }
 0x59f   :  { %v4905_v22 = vpop.f32.mrf.mxu0 }
 0x5a4   :  { %v7942_v56 = vpop.eup %7941 }
 0x5a5   :  { %v4966_v58 = vpack.c.bf16 %v7942_v56, %v7942_v56 }
 0x5a6   :  { %v4892_v59 = vpop.f32.mrf.mxu2 }
 0x5a7   :  { %v4907_v57 = vpop.f32.mrf.mxu0  ;;  %v4971_v61 = vunpack.c.l.bf16 %v4966_v58  ;;  %v4893_v3 = vadd.f32 %v4892_v59, %v3577_v2 }
 0x5a9   :  { %4976 = vst [vmem:[#allocation11 + $0x18] sm:$0xff] %v4971_v61  ;;  %v4906_v8 = vadd.f32 %v4905_v22, %v4893_v3 }
 0x5ae   :  { %v4894_v62 = vpop.f32.mrf.mxu2 }
 0x5b0   :  { %v4931_v34 = vpop.f32.mrf.mxu1 }
 0x5b5   :  { %v4918_v63 = vpop.f32.mrf.mxu3 }
 0x5b6   :  { %v4919_v0 = vadd.f32 %v4918_v63, %v4906_v8 }
 0x5b8   :  { %v4933_v7 = vpop.f32.mrf.mxu1  ;;  %v4932_v17 = vadd.f32 %v4931_v34, %v4919_v0 }
 0x5bd   :  { %v4920_v6 = vpop.f32.mrf.mxu3 }
 0x5c6   :  { %v4944_v10 = vpop.f32.mrf.mxu2 }
 0x5c7   :  { %v4945_v11 = vadd.f32 %v4944_v10, %v4932_v17 }
 0x5c9   :  { %v4952_v12 = vpack.c.bf16 %v4945_v11, %v4945_v11 }
 0x5cb   :  { %v4957_v13 = vunpack.c.l.bf16 %v4952_v12 }
 0x5cd   :  { %7943 = vtanh.f32 %v4957_v13 }
 0x5ce   :  { %v4946_v36 = vpop.f32.mrf.mxu2 }
 0x5d3   :  { %v7944_v18 = vpop.eup %7943 }
 0x5d4   :  { %v4967_v45 = vpack.c.bf16 %v7944_v18, %v7944_v18 }
 0x5d6   :  { %v4972_v14 = vunpack.c.l.bf16 %v4967_v45 }
 0x5d8   :  { %4977 = vst [vmem:[#allocation11 + $0x20] sm:$0xff] %v4972_v14 }
 0x5d9   :  { %4988 = dma.vmem_to_hbm [thread:$0]  %s4984_s29, 640, %s4986_s19, [#allocation5]  }
 0x5da   :  { %8071 = dma.done.wait [#allocation5], 640  }
 0x5db   :  { %8072 = vsyncadd [#allocation5], 4294966656 }
 0x5dc   :  { %4993 = vsyncpa [#allocation4], 1 }
 0x5dd   :  { %4994 = vsyncpa [#allocation7], 1 }
 0x5de   :  { %4995 = vsyncpa [#allocation10], 1 }
 0x5df   :  { %4996 = vsyncpa [#allocation5], 1 }

</bundles_post_ra>
